<compile_context>
chip_gen: v5e
topology: v5e:2x2
jax: 0.10.0
libtpu: 0.0.40
codegen_flags: <defaults>
</compile_context>

<pallas_src>
import functools

import jax
import jax.numpy as jnp
from jax.experimental import pallas as pl
from jax.experimental.pallas import tpu as pltpu

IN_DIM = 784      # 28 * 28
H1_DIM = 400
LAT_DIM = 20
H3_DIM = 400
OUT_DIM = 784


# ----------------------------------------------------------------------------
# Pallas kernel: the full generator MLP on one batch tile.
# ----------------------------------------------------------------------------
def _generator_mlp_kernel(x_ref, y_ref,
                          w1_ref, b1_ref,
                          w2_ref, b2_ref,
                          wy_ref, by_ref,
                          w3a_ref, w3b_ref, b3_ref,
                          w4_ref, b4_ref,
                          o_ref):
    x = x_ref[...]                                   # (TM, 784)
    y = y_ref[...]                                   # (TM, y_dim)

    # fc1 + ReLU
    h1 = jnp.dot(x, w1_ref[...], preferred_element_type=jnp.float32) + b1_ref[...]
    h1 = jnp.maximum(h1, 0.0)                        # (TM, 400)

    # fc2 (no activation)
    h2 = jnp.dot(h1, w2_ref[...], preferred_element_type=jnp.float32) + b2_ref[...]

    # y_map (no activation)
    hy = jnp.dot(y, wy_ref[...], preferred_element_type=jnp.float32) + by_ref[...]

    # fc3(cat(h2, hy)) + ReLU, with the weight pre-split so no concat is needed
    h3 = (jnp.dot(h2, w3a_ref[...], preferred_element_type=jnp.float32)
          + jnp.dot(hy, w3b_ref[...], preferred_element_type=jnp.float32)
          + b3_ref[...])
    h3 = jnp.maximum(h3, 0.0)                        # (TM, 400)

    # fc4 + tanh
    h4 = jnp.dot(h3, w4_ref[...], preferred_element_type=jnp.float32) + b4_ref[...]
    o_ref[...] = jnp.tanh(h4).astype(o_ref.dtype)    # (TM, 784)


# ----------------------------------------------------------------------------
# Wrapper around pallas_call
# ----------------------------------------------------------------------------
def _round_up(v, m):
    return ((v + m - 1) // m) * m


def generator_mlp(x_flat, y_flat, params, *, tile_m=256):
    """x_flat: (B, 784), y_flat: (B, y_dim) -> (B, 784) tanh output."""
    b = x_flat.shape[0]
    y_dim = y_flat.shape[1]

    # Batch tiling: pad to a sublane multiple; tile over M for large batches.
    if b <= tile_m:
        tm = _round_up(b, 8)
        pb = tm
    else:
        tm = tile_m
        pb = _round_up(b, tile_m)
    if pb != b:
        x_flat = jnp.pad(x_flat, ((0, pb - b), (0, 0)))
        y_flat = jnp.pad(y_flat, ((0, pb - b), (0, 0)))

    grid = (pb // tm,)

    def row_spec(cols):           # batch-tiled operands
        return pl.BlockSpec((tm, cols), lambda i: (i, 0))

    def const_spec(shape):        # weights/biases: same block every grid step
        return pl.BlockSpec(shape, lambda i: (0, 0))

    p = params
    out = pl.pallas_call(
        _generator_mlp_kernel,
        out_shape=jax.ShapeDtypeStruct((pb, OUT_DIM), x_flat.dtype),
        grid=grid,
        in_specs=[
            row_spec(IN_DIM), row_spec(y_dim),
            const_spec(p["w1"].shape), const_spec(p["b1"].shape),
            const_spec(p["w2"].shape), const_spec(p["b2"].shape),
            const_spec(p["wy"].shape), const_spec(p["by"].shape),
            const_spec(p["w3a"].shape), const_spec(p["w3b"].shape),
            const_spec(p["b3"].shape),
            const_spec(p["w4"].shape), const_spec(p["b4"].shape),
        ],
        out_specs=row_spec(OUT_DIM),
        compiler_params=pltpu.CompilerParams(
            dimension_semantics=("parallel",)),
    )(x_flat, y_flat,
      p["w1"], p["b1"], p["w2"], p["b2"],
      p["wy"], p["by"], p["w3a"], p["w3b"], p["b3"],
      p["w4"], p["b4"])

    return out[:b]


# ----------------------------------------------------------------------------
# Module-level forward (matches MNISTFullyConnectedGenerator.forward)
# ----------------------------------------------------------------------------
@jax.jit
def mnist_generator_forward(x, y, params):
    """x: (B, C, 28, 28), y: (B, y_dim) -> (B, 3, 28, 28)."""
    b = x.shape[0]
    x_flat = x[:, 0, :, :].reshape(b, IN_DIM)        # x[:, 0, :, :].view(-1, 784)
    y_flat = y.reshape(b, -1)                        # y.view(-1, y_dim)
    h4 = generator_mlp(x_flat, y_flat, params)       # fused Pallas MLP
    img = h4.reshape(b, 1, 28, 28)
    return jnp.broadcast_to(img, (b, 3, 28, 28))     # .expand(B, 3, 28, 28)


# ----------------------------------------------------------------------------
# Parameters (deterministic synthetic values, Linear semantics; stored
# pre-transposed as (in, out) with fc3 pre-split, per the perf feedback).
# ----------------------------------------------------------------------------
def init_params(y_dim, seed=42, dtype=jnp.float32):
    layer_cfg = [  # name, (in_dim, out_dim)
        ("1", (IN_DIM, H1_DIM)),
        ("2", (H1_DIM, LAT_DIM)),
        ("y", (y_dim, LAT_DIM)),
        ("3", (2 * LAT_DIM, H3_DIM)),
        ("4", (H3_DIM, OUT_DIM)),
    ]
    params = {}
    key = jax.random.PRNGKey(seed)
    for name, (din, dout) in layer_cfg:
        key, kw, kb = jax.random.split(key, 3)
        bound = 1.0 / (din ** 0.5)                   # PyTorch Linear default init range
        w = jax.random.uniform(kw, (din, dout), minval=-bound, maxval=bound)
        b = jax.random.uniform(kb, (1, dout), minval=-bound, maxval=bound)
        if name == "3":
            # split along the concat dim: rows 0:20 act on h2, rows 20:40 on hy
            params["w3a"] = w[:LAT_DIM].astype(dtype)
            params["w3b"] = w[LAT_DIM:].astype(dtype)
            params["b3"] = b.astype(dtype)
        else:
            params[f"w{name}"] = w.astype(dtype)
            params[f"b{name}"] = b.astype(dtype)
    return params


# Pure-JAX reference for numerical validation.
def reference_forward(x, y, p):
    b = x.shape[0]
    xf = x[:, 0, :, :].reshape(b, IN_DIM)
    yf = y.reshape(b, -1)
    h1 = jax.nn.relu(xf @ p["w1"] + p["b1"])
    h2 = h1 @ p["w2"] + p["b2"]
    hy = yf @ p["wy"] + p["by"]
    h3 = jax.nn.relu(h2 @ p["w3a"] + hy @ p["w3b"] + p["b3"])
    h4 = jnp.tanh(h3 @ p["w4"] + p["b4"])
    return jnp.broadcast_to(h4.reshape(b, 1, 28, 28), (b, 3, 28, 28))


if __name__ == "__main__":
    B, Y_DIM = 2, 10
    key = jax.random.PRNGKey(0)
    kx, ky = jax.random.split(key)
    x = jax.random.normal(kx, (B, 3, 28, 28), dtype=jnp.float32)
    y = jax.random.normal(ky, (B, Y_DIM), dtype=jnp.float32)
    params = init_params(y_dim=Y_DIM, seed=42)

    out = mnist_generator_forward(x, y, params)
    out = jax.block_until_ready(out)

    assert out.shape == (B, 3, 28, 28), out.shape
    assert out.dtype == jnp.float32
    assert bool(jnp.all(jnp.isfinite(out)))
    assert bool(jnp.all(jnp.abs(out) <= 1.0 + 1e-6))      # tanh range

    ref = reference_forward(x, y, params)
    assert bool(jnp.allclose(out, ref, atol=2e-4, rtol=2e-4)), (
        float(jnp.max(jnp.abs(out - ref))))

    print("KERNEL_OK")
</pallas_src>

<mosaic_0001>
module attributes {stable_mosaic.version = 11 : i64} {
  func.func @_generator_mlp_kernel(%arg0: i32, %arg1: memref<8x784xf32, #tpu.memory_space<vmem>>, %arg2: memref<8x10xf32, #tpu.memory_space<vmem>>, %arg3: memref<784x400xf32, #tpu.memory_space<vmem>>, %arg4: memref<1x400xf32, #tpu.memory_space<vmem>>, %arg5: memref<400x20xf32, #tpu.memory_space<vmem>>, %arg6: memref<1x20xf32, #tpu.memory_space<vmem>>, %arg7: memref<10x20xf32, #tpu.memory_space<vmem>>, %arg8: memref<1x20xf32, #tpu.memory_space<vmem>>, %arg9: memref<20x400xf32, #tpu.memory_space<vmem>>, %arg10: memref<20x400xf32, #tpu.memory_space<vmem>>, %arg11: memref<1x400xf32, #tpu.memory_space<vmem>>, %arg12: memref<400x784xf32, #tpu.memory_space<vmem>>, %arg13: memref<1x784xf32, #tpu.memory_space<vmem>>, %arg14: memref<8x784xf32, #tpu.memory_space<vmem>>) attributes {dimension_semantics = [#tpu.dimension_semantics<parallel>], iteration_bounds = array<i64: 1>, scalar_prefetch = 0 : i64, scratch_operands = 0 : i64, tpu.core_type = #tpu.core_type<tc>, window_params = [{transform_indices = @transform_0, window_bounds = array<i64: 8, 784>}, {transform_indices = @transform_1, window_bounds = array<i64: 8, 10>}, {pipeline_mode = #tpu.pipeline_mode<synchronous>, transform_indices = @transform_2, window_bounds = array<i64: 784, 400>}, {pipeline_mode = #tpu.pipeline_mode<synchronous>, transform_indices = @transform_3, window_bounds = array<i64: 1, 400>}, {pipeline_mode = #tpu.pipeline_mode<synchronous>, transform_indices = @transform_4, window_bounds = array<i64: 400, 20>}, {pipeline_mode = #tpu.pipeline_mode<synchronous>, transform_indices = @transform_5, window_bounds = array<i64: 1, 20>}, {pipeline_mode = #tpu.pipeline_mode<synchronous>, transform_indices = @transform_6, window_bounds = array<i64: 10, 20>}, {pipeline_mode = #tpu.pipeline_mode<synchronous>, transform_indices = @transform_7, window_bounds = array<i64: 1, 20>}, {pipeline_mode = #tpu.pipeline_mode<synchronous>, transform_indices = @transform_8, window_bounds = array<i64: 20, 400>}, {pipeline_mode = #tpu.pipeline_mode<synchronous>, transform_indices = @transform_9, window_bounds = array<i64: 20, 400>}, {pipeline_mode = #tpu.pipeline_mode<synchronous>, transform_indices = @transform_10, window_bounds = array<i64: 1, 400>}, {pipeline_mode = #tpu.pipeline_mode<synchronous>, transform_indices = @transform_11, window_bounds = array<i64: 400, 784>}, {pipeline_mode = #tpu.pipeline_mode<synchronous>, transform_indices = @transform_12, window_bounds = array<i64: 1, 784>}, {transform_indices = @transform_13, window_bounds = array<i64: 8, 784>}]} {
    %c0 = arith.constant 0 : index
    %c0_0 = arith.constant 0 : index
    %0 = vector.load %arg1[%c0, %c0_0] : memref<8x784xf32, #tpu.memory_space<vmem>>, vector<8x784xf32>
    %c0_1 = arith.constant 0 : index
    %c0_2 = arith.constant 0 : index
    %1 = vector.load %arg2[%c0_1, %c0_2] : memref<8x10xf32, #tpu.memory_space<vmem>>, vector<8x10xf32>
    %c0_3 = arith.constant 0 : index
    %c0_4 = arith.constant 0 : index
    %2 = vector.load %arg3[%c0_3, %c0_4] : memref<784x400xf32, #tpu.memory_space<vmem>>, vector<784x400xf32>
    %cst = arith.constant dense<0.000000e+00> : vector<8x400xf32>
    %3 = tpu.matmul %0, %2, %cst {dimension_numbers = #tpu.dot_dimension_numbers<[1], [0], [0], [1], [0, 0, 1, 1], [], []>} : vector<8x784xf32>, vector<784x400xf32>, vector<8x400xf32> -> vector<8x400xf32>
    %c0_5 = arith.constant 0 : index
    %c0_6 = arith.constant 0 : index
    %4 = vector.load %arg4[%c0_5, %c0_6] : memref<1x400xf32, #tpu.memory_space<vmem>>, vector<1x400xf32>
    %5 = vector.broadcast %4 : vector<1x400xf32> to vector<8x400xf32>
    %6 = arith.addf %3, %5 : vector<8x400xf32>
    %cst_7 = arith.constant 0.000000e+00 : f32
    %7 = vector.broadcast %cst_7 : f32 to vector<8x400xf32>
    %8 = arith.maximumf %6, %7 : vector<8x400xf32>
    %c0_8 = arith.constant 0 : index
    %c0_9 = arith.constant 0 : index
    %9 = vector.load %arg5[%c0_8, %c0_9] : memref<400x20xf32, #tpu.memory_space<vmem>>, vector<400x20xf32>
    %cst_10 = arith.constant dense<0.000000e+00> : vector<8x20xf32>
    %10 = tpu.matmul %8, %9, %cst_10 {dimension_numbers = #tpu.dot_dimension_numbers<[1], [0], [0], [1], [0, 0, 1, 1], [], []>} : vector<8x400xf32>, vector<400x20xf32>, vector<8x20xf32> -> vector<8x20xf32>
    %c0_11 = arith.constant 0 : index
    %c0_12 = arith.constant 0 : index
    %11 = vector.load %arg6[%c0_11, %c0_12] : memref<1x20xf32, #tpu.memory_space<vmem>>, vector<1x20xf32>
    %12 = vector.broadcast %11 : vector<1x20xf32> to vector<8x20xf32>
    %13 = arith.addf %10, %12 : vector<8x20xf32>
    %c0_13 = arith.constant 0 : index
    %c0_14 = arith.constant 0 : index
    %14 = vector.load %arg7[%c0_13, %c0_14] : memref<10x20xf32, #tpu.memory_space<vmem>>, vector<10x20xf32>
    %cst_15 = arith.constant dense<0.000000e+00> : vector<8x20xf32>
    %15 = tpu.matmul %1, %14, %cst_15 {dimension_numbers = #tpu.dot_dimension_numbers<[1], [0], [0], [1], [0, 0, 1, 1], [], []>} : vector<8x10xf32>, vector<10x20xf32>, vector<8x20xf32> -> vector<8x20xf32>
    %c0_16 = arith.constant 0 : index
    %c0_17 = arith.constant 0 : index
    %16 = vector.load %arg8[%c0_16, %c0_17] : memref<1x20xf32, #tpu.memory_space<vmem>>, vector<1x20xf32>
    %17 = vector.broadcast %16 : vector<1x20xf32> to vector<8x20xf32>
    %18 = arith.addf %15, %17 : vector<8x20xf32>
    %c0_18 = arith.constant 0 : index
    %c0_19 = arith.constant 0 : index
    %19 = vector.load %arg9[%c0_18, %c0_19] : memref<20x400xf32, #tpu.memory_space<vmem>>, vector<20x400xf32>
    %cst_20 = arith.constant dense<0.000000e+00> : vector<8x400xf32>
    %20 = tpu.matmul %13, %19, %cst_20 {dimension_numbers = #tpu.dot_dimension_numbers<[1], [0], [0], [1], [0, 0, 1, 1], [], []>} : vector<8x20xf32>, vector<20x400xf32>, vector<8x400xf32> -> vector<8x400xf32>
    %c0_21 = arith.constant 0 : index
    %c0_22 = arith.constant 0 : index
    %21 = vector.load %arg10[%c0_21, %c0_22] : memref<20x400xf32, #tpu.memory_space<vmem>>, vector<20x400xf32>
    %cst_23 = arith.constant dense<0.000000e+00> : vector<8x400xf32>
    %22 = tpu.matmul %18, %21, %cst_23 {dimension_numbers = #tpu.dot_dimension_numbers<[1], [0], [0], [1], [0, 0, 1, 1], [], []>} : vector<8x20xf32>, vector<20x400xf32>, vector<8x400xf32> -> vector<8x400xf32>
    %23 = arith.addf %20, %22 : vector<8x400xf32>
    %c0_24 = arith.constant 0 : index
    %c0_25 = arith.constant 0 : index
    %24 = vector.load %arg11[%c0_24, %c0_25] : memref<1x400xf32, #tpu.memory_space<vmem>>, vector<1x400xf32>
    %25 = vector.broadcast %24 : vector<1x400xf32> to vector<8x400xf32>
    %26 = arith.addf %23, %25 : vector<8x400xf32>
    %cst_26 = arith.constant 0.000000e+00 : f32
    %27 = vector.broadcast %cst_26 : f32 to vector<8x400xf32>
    %28 = arith.maximumf %26, %27 : vector<8x400xf32>
    %c0_27 = arith.constant 0 : index
    %c0_28 = arith.constant 0 : index
    %29 = vector.load %arg12[%c0_27, %c0_28] : memref<400x784xf32, #tpu.memory_space<vmem>>, vector<400x784xf32>
    %cst_29 = arith.constant dense<0.000000e+00> : vector<8x784xf32>
    %30 = tpu.matmul %28, %29, %cst_29 {dimension_numbers = #tpu.dot_dimension_numbers<[1], [0], [0], [1], [0, 0, 1, 1], [], []>} : vector<8x400xf32>, vector<400x784xf32>, vector<8x784xf32> -> vector<8x784xf32>
    %c0_30 = arith.constant 0 : index
    %c0_31 = arith.constant 0 : index
    %31 = vector.load %arg13[%c0_30, %c0_31] : memref<1x784xf32, #tpu.memory_space<vmem>>, vector<1x784xf32>
    %32 = vector.broadcast %31 : vector<1x784xf32> to vector<8x784xf32>
    %33 = arith.addf %30, %32 : vector<8x784xf32>
    %34 = math.tanh %33 : vector<8x784xf32>
    %c0_32 = arith.constant 0 : index
    %c0_33 = arith.constant 0 : index
    %35 = vector.load %arg14[%c0_32, %c0_33] : memref<8x784xf32, #tpu.memory_space<vmem>>, vector<8x784xf32>
    tpu.vector_store %arg14[%c0_32, %c0_33], %34 {strides = array<i32>} : memref<8x784xf32, #tpu.memory_space<vmem>>, vector<8x784xf32>,
    return
  }
  func.func @transform_0(%arg0: i32) -> (i32, i32) {
    %c0_i32 = arith.constant 0 : i32
    %c0_i32_0 = arith.constant 0 : i32
    return %arg0, %c0_i32 : i32, i32
  }
  func.func @transform_1(%arg0: i32) -> (i32, i32) {
    %c0_i32 = arith.constant 0 : i32
    %c0_i32_0 = arith.constant 0 : i32
    return %arg0, %c0_i32 : i32, i32
  }
  func.func @transform_2(%arg0: i32) -> (i32, i32) {
    %c0_i32 = arith.constant 0 : i32
    %c0_i32_0 = arith.constant 0 : i32
    %c0_i32_1 = arith.constant 0 : i32
    return %c0_i32, %c0_i32_0 : i32, i32
  }
  func.func @transform_3(%arg0: i32) -> (i32, i32) {
    %c0_i32 = arith.constant 0 : i32
    %c0_i32_0 = arith.constant 0 : i32
    %c0_i32_1 = arith.constant 0 : i32
    return %c0_i32, %c0_i32_0 : i32, i32
  }
  func.func @transform_4(%arg0: i32) -> (i32, i32) {
    %c0_i32 = arith.constant 0 : i32
    %c0_i32_0 = arith.constant 0 : i32
    %c0_i32_1 = arith.constant 0 : i32
    return %c0_i32, %c0_i32_0 : i32, i32
  }
  func.func @transform_5(%arg0: i32) -> (i32, i32) {
    %c0_i32 = arith.constant 0 : i32
    %c0_i32_0 = arith.constant 0 : i32
    %c0_i32_1 = arith.constant 0 : i32
    return %c0_i32, %c0_i32_0 : i32, i32
  }
  func.func @transform_6(%arg0: i32) -> (i32, i32) {
    %c0_i32 = arith.constant 0 : i32
    %c0_i32_0 = arith.constant 0 : i32
    %c0_i32_1 = arith.constant 0 : i32
    return %c0_i32, %c0_i32_0 : i32, i32
  }
  func.func @transform_7(%arg0: i32) -> (i32, i32) {
    %c0_i32 = arith.constant 0 : i32
    %c0_i32_0 = arith.constant 0 : i32
    %c0_i32_1 = arith.constant 0 : i32
    return %c0_i32, %c0_i32_0 : i32, i32
  }
  func.func @transform_8(%arg0: i32) -> (i32, i32) {
    %c0_i32 = arith.constant 0 : i32
    %c0_i32_0 = arith.constant 0 : i32
    %c0_i32_1 = arith.constant 0 : i32
    return %c0_i32, %c0_i32_0 : i32, i32
  }
  func.func @transform_9(%arg0: i32) -> (i32, i32) {
    %c0_i32 = arith.constant 0 : i32
    %c0_i32_0 = arith.constant 0 : i32
    %c0_i32_1 = arith.constant 0 : i32
    return %c0_i32, %c0_i32_0 : i32, i32
  }
  func.func @transform_10(%arg0: i32) -> (i32, i32) {
    %c0_i32 = arith.constant 0 : i32
    %c0_i32_0 = arith.constant 0 : i32
    %c0_i32_1 = arith.constant 0 : i32
    return %c0_i32, %c0_i32_0 : i32, i32
  }
  func.func @transform_11(%arg0: i32) -> (i32, i32) {
    %c0_i32 = arith.constant 0 : i32
    %c0_i32_0 = arith.constant 0 : i32
    %c0_i32_1 = arith.constant 0 : i32
    return %c0_i32, %c0_i32_0 : i32, i32
  }
  func.func @transform_12(%arg0: i32) -> (i32, i32) {
    %c0_i32 = arith.constant 0 : i32
    %c0_i32_0 = arith.constant 0 : i32
    %c0_i32_1 = arith.constant 0 : i32
    return %c0_i32, %c0_i32_0 : i32, i32
  }
  func.func @transform_13(%arg0: i32) -> (i32, i32) {
    %c0_i32 = arith.constant 0 : i32
    %c0_i32_0 = arith.constant 0 : i32
    return %arg0, %c0_i32 : i32, i32
  }
}

</mosaic_0001>

<bundles_post_ra>
// kernel: squeeze.1
= control target key start
LH: loop header
LB: loop body
LE: loop exit
PB: predicated region body
PF: predicated region fallthrough
CT: control target
= control target key end

     0   :  { %vm5_vm0 = vcmask 1041409   ;;  %vm65_vm1 = vcmask 97280   ;;  %vm21_vm2 = vcmask 31744   ;;  %s510_s24 = smov 116   ;;  %s511_s6 = smov 124   ;;  %vm69_vm3 = vcmask 130048   ;;  %s818_s0 = inlined_call_operand.vmem [shape: f32[2,1,28,28], index: 0, kind: input, shape index: {}]   ;;  %s819_s1 = inlined_call_operand.vmem [shape: f32[2,784], index: 1, kind: output, shape index: {}]  }
   0x1   :  { %v419_v0 = vld [vmem:[%s818_s0 + $0x1b] sm:$0x1]   ;;  %v411_v6 = vld [vmem:[%s818_s0 + $0x9] sm:$0x1]   ;;  %v423_v12 = vld [vmem:[%s818_s0 + $0x4] sm:$0x1]  }
   0x2   :  { %v420_v1 = vld [vmem:[%s818_s0 + $0x3a] sm:$0x2]   ;;  %v412_v7 = vld [vmem:[%s818_s0 + $0x28] sm:$0x2]   ;;  %v424_v14 = vld [vmem:[%s818_s0 + $0x23] sm:$0x2]  }
   0x3   :  { %v58_v2 = vsel %vm5_vm0, %v420_v1, %v419_v0  ;;  %v421_v3 = vld [vmem:[%s818_s0 + $0x1b] sm:$0x1]   ;;  %v413_v8 = vld [vmem:[%s818_s0 + $0x9] sm:$0x1]   ;;  %v14_v10 = vsel %vm5_vm0, %v412_v7, %v411_v6  ;;  %v425_v15 = vld [vmem:[%s818_s0 + $0x4] sm:$0x1]   ;;  %v80_v20 = vsel %vm5_vm0, %v424_v14, %v423_v12 }
   0x4   :  { %v422_v4 = vld [vmem:[%s818_s0 + $0x3a] sm:$0x2]   ;;  %v414_v11 = vld [vmem:[%s818_s0 + $0x28] sm:$0x2]   ;;  %v426_v16 = vld [vmem:[%s818_s0 + $0x23] sm:$0x2]  }
   0x5   :  { %v64_v5 = vsel %vm5_vm0, %v422_v4, %v421_v3  ;;  %v20_v13 = vsel %vm5_vm0, %v414_v11, %v413_v8  ;;  %v415_v18 = vld [vmem:[%s818_s0 + $0x12] sm:$0x1]   ;;  %v86_v21 = vsel %vm5_vm0, %v426_v16, %v425_v15  ;;  %vm43_vm4 = vcmask 64512   ;;  %v427_v26 = vld [vmem:[%s818_s0 + $0xd] sm:$0x1]   ;;  %s512_s19 = smov 112  }
   0x6   :  { %v66_v9 = vsel %vm65_vm1, %v64_v5, %v58_v2  ;;  %v22_v17 = vsel %vm21_vm2, %v20_v13, %v14_v10  ;;  %v416_v19 = vld [vmem:[%s818_s0 + $0x31] sm:$0x2]   ;;  %vm47_vm5 = vcmask 162816   ;;  %v88_v27 = vsel %vm69_vm3, %v86_v21, %v80_v20  ;;  %v428_v28 = vld [vmem:[%s818_s0 + $0x2c] sm:$0x2]   ;;  %s513_s20 = smov 108  }
   0x7   :  { %67 = vrot.lane.b32.xlu1 %v66_v9, %s510_s24  ;;  %23 = vrot.lane.b32.xlu0 %v22_v17, %s511_s6  ;;  %v417_v22 = vld [vmem:[%s818_s0 + $0x12] sm:$0x1]   ;;  %v36_v24 = vsel %vm5_vm0, %v416_v19, %v415_v18  ;;  %v429_v29 = vld [vmem:[%s818_s0 + $0xd] sm:$0x1]   ;;  %v101_v31 = vsel %vm5_vm0, %v428_v28, %v427_v26  ;;  %s514_s29 = smov 120   ;;  %vm25_vm6 = vcmask 195584  }
   0x8   :  { %v418_v23 = vld [vmem:[%s818_s0 + $0x31] sm:$0x2]   ;;  %v430_v30 = vld [vmem:[%s818_s0 + $0x2c] sm:$0x2]   ;;  %v431_v35 = vld [vmem:[%s818_s0 + $0x16] sm:$0x1]  }
   0x9   :  { %v42_v25 = vsel %vm5_vm0, %v418_v23, %v417_v22  ;;  %v107_v32 = vsel %vm5_vm0, %v430_v30, %v429_v29  ;;  %v432_v36 = vld [vmem:[%s818_s0 + $0x35] sm:$0x2]   ;;  %v437_v39 = vld [vmem:[%s818_s0 + $0x11] sm:$0x1]   ;;  %v435_v43 = vld [vmem:[%s818_s0 + $0x8] sm:$0x1]  }
   0xa   :  { %v44_v33 = vsel %vm43_vm4, %v42_v25, %v36_v24  ;;  %v109_v34 = vsel %vm47_vm5, %v107_v32, %v101_v31  ;;  %v433_v37 = vld [vmem:[%s818_s0 + $0x16] sm:$0x1]   ;;  %v438_v40 = vld [vmem:[%s818_s0 + $0x30] sm:$0x2]   ;;  %v123_v41 = vsel %vm5_vm0, %v432_v36, %v431_v35  ;;  %v436_v44 = vld [vmem:[%s818_s0 + $0x27] sm:$0x2]  }
   0xb   :  { %110 = vrot.lane.b32.xlu2 %v109_v34, %s513_s20  ;;  %v434_v38 = vld [vmem:[%s818_s0 + $0x35] sm:$0x2]   ;;  %v156_v45 = vsel %vm5_vm0, %v438_v40, %v437_v39  ;;  %v145_v47 = vsel %vm5_vm0, %v436_v44, %v435_v43  ;;  %s515_s9 = smov 92   ;;  %s516_s10 = smov 104   ;;  %v443_v48 = vld [vmem:[%s818_s0 + $0xc] sm:$0x1]  }
   0xc   :  { %v129_v42 = vsel %vm5_vm0, %v434_v38, %v433_v37  ;;  %s517_s13 = smov 96   ;;  %v444_v49 = vld [vmem:[%s818_s0 + $0x2b] sm:$0x2]   ;;  %v439_v50 = vld [vmem:[%s818_s0 + $0x1a] sm:$0x1]   ;;  %s518_s24 = smov 80  }
   0xd   :  { %v131_v46 = vsel %vm25_vm6, %v129_v42, %v123_v41  ;;  %v440_v51 = vld [vmem:[%s818_s0 + $0x39] sm:$0x2]   ;;  %v441_v52 = vld [vmem:[%s818_s0 + $0x3] sm:$0x1]   ;;  %v188_v54 = vsel %vm5_vm0, %v444_v49, %v443_v48  ;;  %s519_s25 = smov 88   ;;  %s520_s28 = smov 84  }
   0xe   :  { %v442_v53 = vld [vmem:[%s818_s0 + $0x22] sm:$0x2]   ;;  %v167_v55 = vsel %vm5_vm0, %v440_v51, %v439_v50  ;;  %v449_v57 = vld [vmem:[%s818_s0 + $0x10] sm:$0x1]   ;;  %v445_v59 = vld [vmem:[%s818_s0 + $0x15] sm:$0x1]  }
   0xf   :  { %89 = vrot.lane.b32.xlu1 %v88_v27, %s512_s19  ;;  %45 = vrot.lane.b32.xlu0 %v44_v33, %s514_s29  ;;  %v178_v56 = vsel %vm5_vm0, %v442_v53, %v441_v52  ;;  %v450_v58 = vld [vmem:[%s818_s0 + $0x2f] sm:$0x2]   ;;  %v446_v60 = vld [vmem:[%s818_s0 + $0x34] sm:$0x2]   ;;  %s522_s11 = smov 76   ;;  %s523_s14 = smov 68  }
  0x10   :  { %v447_v61 = vld [vmem:[%s818_s0 + $0x7] sm:$0x1]   ;;  %v221_v63 = vsel %vm5_vm0, %v450_v58, %v449_v57  ;;  %v199_v0 = vsel %vm5_vm0, %v446_v60, %v445_v59  ;;  %v455_v2 = vld [vmem:[%s818_s0 + $0xb] sm:$0x1]   ;;  %v451_v4 = vld [vmem:[%s818_s0 + $0x19] sm:$0x1]  }
  0x11   :  { %v448_v62 = vld [vmem:[%s818_s0 + $0x26] sm:$0x2]   ;;  %v456_v3 = vld [vmem:[%s818_s0 + $0x2a] sm:$0x2]   ;;  %v452_v5 = vld [vmem:[%s818_s0 + $0x38] sm:$0x2]  }
  0x12   :  { %v210_v1 = vsel %vm5_vm0, %v448_v62, %v447_v61  ;;  %v453_v6 = vld [vmem:[%s818_s0 + $0x2] sm:$0x1]   ;;  %v253_v8 = vsel %vm5_vm0, %v456_v3, %v455_v2  ;;  %v232_v9 = vsel %vm5_vm0, %v452_v5, %v451_v4  ;;  %s525_s26 = smov 60   ;;  %v461_v11 = vld [vmem:[%s818_s0 + $0xf] sm:$0x1]   ;;  %s526_s29 = smov 56  }
  0x13   :  { %132 = vrot.lane.b32.xlu2 %v131_v46, %s516_s10  ;;  %s521_s10 = smov 64   ;;  %v454_v7 = vld [vmem:[%s818_s0 + $0x21] sm:$0x2]   ;;  %v462_v12 = vld [vmem:[%s818_s0 + $0x2e] sm:$0x2]   ;;  %s528_s12 = smov 48  }
  0x14   :  { %v243_v10 = vsel %vm5_vm0, %v454_v7, %v453_v6  ;;  %v457_v13 = vld [vmem:[%s818_s0 + $0x14] sm:$0x1]   ;;  %v459_v15 = vld [vmem:[%s818_s0 + $0x6] sm:$0x1]   ;;  %v286_v17 = vsel %vm5_vm0, %v462_v12, %v461_v11  ;;  %v467_v20 = vld [vmem:[%s818_s0 + $0xa] sm:$0x1]  }
  0x15   :  { %v458_v14 = vld [vmem:[%s818_s0 + $0x33] sm:$0x2]   ;;  %v460_v16 = vld [vmem:[%s818_s0 + $0x25] sm:$0x2]   ;;  %s529_s15 = smov 40   ;;  %s531_s27 = smov 32  }
  0x16   :  { %v264_v18 = vsel %vm5_vm0, %v458_v14, %v457_v13  ;;  %v275_v19 = vsel %vm5_vm0, %v460_v16, %v459_v15  ;;  %v468_v21 = vld [vmem:[%s818_s0 + $0x29] sm:$0x2]   ;;  %v463_v22 = vld [vmem:[%s818_s0 + $0x18] sm:$0x1]   ;;  %v465_v24 = vld [vmem:[%s818_s0 + $0x1] sm:$0x1]  }
  0x17   :  { %157 = vrot.lane.b32.xlu1 %v156_v45, %s515_s9  ;;  %146 = vrot.lane.b32.xlu0 %v145_v47, %s517_s13  ;;  %v464_v23 = vld [vmem:[%s818_s0 + $0x37] sm:$0x2]   ;;  %v466_v25 = vld [vmem:[%s818_s0 + $0x20] sm:$0x2]   ;;  %v318_v26 = vsel %vm5_vm0, %v468_v21, %v467_v20  ;;  %s532_s30 = smov 28   ;;  %s534_s13 = smov 20  }
  0x18   :  { %v297_v27 = vsel %vm5_vm0, %v464_v23, %v463_v22  ;;  %v308_v28 = vsel %vm5_vm0, %v466_v25, %v465_v24  ;;  %v473_v29 = vld [vmem:[%s818_s0 + $0xe] sm:$0x1]   ;;  %v469_v31 = vld [vmem:[%s818_s0 + $0x13] sm:$0x1]   ;;  %v471_v33 = vld [vmem:[%s818_s0 + $0x5] sm:$0x1]  }
  0x19   :  { %v474_v30 = vld [vmem:[%s818_s0 + $0x2d] sm:$0x2]   ;;  %v470_v32 = vld [vmem:[%s818_s0 + $0x32] sm:$0x2]   ;;  %v472_v34 = vld [vmem:[%s818_s0 + $0x24] sm:$0x2]  }
  0x1a   :  { %v351_v35 = vsel %vm5_vm0, %v474_v30, %v473_v29  ;;  %v329_v36 = vsel %vm5_vm0, %v470_v32, %v469_v31  ;;  %v340_v37 = vsel %vm5_vm0, %v472_v34, %v471_v33  ;;  %v475_v38 = vld [vmem:[%s818_s0 + $0x17] sm:$0x1]   ;;  %s536_s19 = smov 4   ;;  %vm7_vm7 = vcmask 228352   ;;  %v2_v41 = vld [vmem:[%s818_s0] sm:$0x1]  }
  0x1b   :  { %168 = vrot.lane.b32.xlu2 %v167_v55, %s519_s25  ;;  %s524_s25 = smov 52   ;;  %v476_v39 = vld [vmem:[%s818_s0 + $0x36] sm:$0x2]   ;;  %v410_v42 = vld [vmem:[%s818_s0 + $0x1f] sm:$0x2]   ;;  %vm72_vm8 = vcmask 1048480  }
  0x1c   :  { %v362_v40 = vsel %vm5_vm0, %v476_v39, %v475_v38  ;;  %v6_v43 = vsel %vm5_vm0, %v410_v42, %v2_v41  ;;  %vm28_vm9 = vcmask 1048544   ;;  %vm115_vm10 = vcmask 1048416  }
  0x1d   :  { %8 = vst.msk [vmem:[#allocation0] sm:$0x3] %vm7_vm7, %v6_v43   ;;  %vm170_vm11 = vcmask 949952   ;;  %vm94_vm12 = vcmask 1048448   ;;  %vm50_vm13 = vcmask 1048512   ;;  %vm137_vm14 = vcmask 1048384  }
  0x1e   :  { %vm202_vm15 = vcmask 851552   ;;  %vm159_vm0 = vcmask 982752   ;;  %vm300_vm7 = vcmask 490752  }
  0x1f   :  { %189 = vrot.lane.b32.xlu1 %v188_v54, %s518_s24  ;;  %179 = vrot.lane.b32.xlu0 %v178_v56, %s520_s28 }
  0x23   :  { %200 = vrot.lane.b32.xlu2 %v199_v0, %s522_s11  ;;  %s527_s11 = smov 36  }
  0x27   :  { %222 = vrot.lane.b32.xlu1 %v221_v63, %s521_s10  ;;  %211 = vrot.lane.b32.xlu0 %v210_v1, %s523_s14  ;;  %s535_s14 = smov 12  }
  0x2b   :  { %233 = vrot.lane.b32.xlu2 %v232_v9, %s525_s26  ;;  %s530_s26 = smov 24  }
  0x2f   :  { %254 = vrot.lane.b32.xlu1 %v253_v8, %s524_s25  ;;  %244 = vrot.lane.b32.xlu0 %v243_v10, %s526_s29 }
  0x33   :  { %265 = vrot.lane.b32.xlu2 %v264_v18, %s528_s12  ;;  %s533_s12 = smov 8  }
  0x37   :  { %287 = vrot.lane.b32.xlu1 %v286_v17, %s527_s11  ;;  %276 = vrot.lane.b32.xlu0 %v275_v19, %s529_s15 }
  0x3b   :  { %298 = vrot.lane.b32.xlu2 %v297_v27, %s531_s27 }
  0x3f   :  { %319 = vrot.lane.b32.xlu1 %v318_v26, %s530_s26  ;;  %309 = vrot.lane.b32.xlu0 %v308_v28, %s532_s30 }
  0x43   :  { %330 = vrot.lane.b32.xlu2 %v329_v36, %s534_s13 }
  0x47   :  { %352 = vrot.lane.b32.xlu1 %v351_v35, %s533_s12  ;;  %341 = vrot.lane.b32.xlu0 %v340_v37, %s535_s14 }
  0x4b   :  { %363 = vrot.lane.b32.xlu2 %v362_v40, %s536_s19 }
  0x65   :  { %v111_v44 = vpop.permute.xlu2 %110  }
  0x6d   :  { %v133_v45 = vpop.permute.xlu2 %132  }
  0x75   :  { %v169_v47 = vpop.permute.xlu2 %168  }
  0x79   :  { %v68_v46 = vpop.permute.xlu1 %67   ;;  %v24_v48 = vpop.permute.xlu0 %23  }
  0x7a   :  { %71 = vst.msk [vmem:[#allocation0 + $0x30] sm:$0x3] %vm69_vm3, %v68_v46   ;;  %vm191_vm3 = vcmask 884352  }
  0x7b   :  { %74 = vst.msk [vmem:[#allocation0 + $0x28] sm:$0x3] %vm72_vm8, %v68_v46   ;;  %vm213_vm8 = vcmask 785952  }
  0x7c   :  { %27 = vst.msk [vmem:[#allocation0 + $0x10] sm:$0x3] %vm25_vm6, %v24_v48   ;;  %vm224_vm6 = vcmask 753152  }
  0x7d   :  { %30 = vst.msk [vmem:[#allocation0 + $0x8] sm:$0x3] %vm28_vm9, %v24_v48   ;;  %v201_v51 = vpop.permute.xlu2 %200   ;;  %vm256_vm9 = vcmask 654752  }
  0x7e   :  { %117 = vst.msk [vmem:[#allocation0 + $0x10] sm:$0x3] %vm115_vm10, %v111_v44   ;;  %vm332_vm10 = vcmask 392352  }
  0x7f   :  { %136 = vst.msk [vmem:[#allocation0 + $0x28] sm:$0x3] %vm21_vm2, %v133_v45   ;;  %vm148_vm2 = vcmask 1015552  }
  0x80   :  { %172 = vst.msk [vmem:[#allocation0 + $0x28] sm:$0x3] %vm170_vm11, %v169_v47   ;;  %vm246_vm11 = vcmask 687552  }
  0x81   :  { %v405_v49 = vld [vmem:[#allocation0 + $0x30] sm:$0x3]  ;;  %v90_v50 = vpop.permute.xlu1 %89   ;;  %v46_v52 = vpop.permute.xlu0 %45  }
  0x82   :  { %482 = vst [vmem:[%s819_s1 + $0xc] sm:$0x3] %v405_v49 }
  0x83   :  { %93 = vst.msk [vmem:[#allocation0 + $0x8] sm:$0x3] %vm65_vm1, %v90_v50   ;;  %vm235_vm1 = vcmask 720352  }
  0x84   :  { %95 = vst.msk [vmem:[#allocation0] sm:$0x3] %vm94_vm12, %v90_v50   ;;  %vm289_vm12 = vcmask 523552  }
  0x85   :  { %49 = vst.msk [vmem:[#allocation0 + $0x20] sm:$0x3] %vm47_vm5, %v46_v52   ;;  %v234_v54 = vpop.permute.xlu2 %233   ;;  %vm181_vm5 = vcmask 917152  }
  0x86   :  { %52 = vst.msk [vmem:[#allocation0 + $0x18] sm:$0x3] %vm50_vm13, %v46_v52   ;;  %vm278_vm13 = vcmask 556352  }
  0x87   :  { %114 = vst.msk [vmem:[#allocation0 + $0x18] sm:$0x3] %vm43_vm4, %v111_v44   ;;  %vm267_vm4 = vcmask 621952  }
  0x88   :  { %139 = vst.msk [vmem:[#allocation0 + $0x20] sm:$0x3] %vm137_vm14, %v133_v45   ;;  %vm365_vm14 = vcmask 261152  }
  0x89   :  { %v158_v53 = vpop.permute.xlu1 %157   ;;  %204 = vst.msk [vmem:[#allocation0 + $0x20] sm:$0x3] %vm202_vm15, %v201_v51   ;;  %v147_v55 = vpop.permute.xlu0 %146   ;;  %vm321_vm15 = vcmask 425152  }
  0x8a   :  { %161 = vst.msk [vmem:[#allocation0 + $0x18] sm:$0x3] %vm159_vm0, %v158_v53   ;;  %vm311_vm0 = vcmask 457952  }
  0x8b   :  { %237 = vst.msk [vmem:[#allocation0 + $0x28] sm:$0x3] %vm235_vm1, %v234_v54   ;;  %vm354_vm1 = vcmask 293952  }
  0x8c   :  { %150 = vst.msk [vmem:[#allocation0 + $0x8] sm:$0x3] %vm148_vm2, %v147_v55   ;;  %vm343_vm2 = vcmask 326752  }
  0x8d   :  { %v266_v57 = vpop.permute.xlu2 %265  }
  0x8e   :  { %269 = vst.msk [vmem:[#allocation0 + $0x20] sm:$0x3] %vm267_vm4, %v266_v57  }
  0x91   :  { %v190_v56 = vpop.permute.xlu1 %189   ;;  %v180_v58 = vpop.permute.xlu0 %179  }
  0x92   :  { %193 = vst.msk [vmem:[#allocation0 + $0x10] sm:$0x3] %vm191_vm3, %v190_v56  }
  0x93   :  { %182 = vst.msk [vmem:[#allocation0] sm:$0x3] %vm181_vm5, %v180_v58  }
  0x95   :  { %v299_v60 = vpop.permute.xlu2 %298  }
  0x96   :  { %302 = vst.msk [vmem:[#allocation0 + $0x28] sm:$0x3] %vm300_vm7, %v299_v60  }
  0x99   :  { %v223_v59 = vpop.permute.xlu1 %222   ;;  %v212_v61 = vpop.permute.xlu0 %211  }
  0x9a   :  { %226 = vst.msk [vmem:[#allocation0 + $0x18] sm:$0x3] %vm224_vm6, %v223_v59  }
  0x9b   :  { %215 = vst.msk [vmem:[#allocation0 + $0x8] sm:$0x3] %vm213_vm8, %v212_v61  }
  0x9d   :  { %v331_v63 = vpop.permute.xlu2 %330  }
  0x9e   :  { %334 = vst.msk [vmem:[#allocation0 + $0x20] sm:$0x3] %vm332_vm10, %v331_v63  }
  0xa1   :  { %v255_v62 = vpop.permute.xlu1 %254   ;;  %v245_v0 = vpop.permute.xlu0 %244  }
  0xa2   :  { %258 = vst.msk [vmem:[#allocation0 + $0x10] sm:$0x3] %vm256_vm9, %v255_v62  }
  0xa3   :  { %247 = vst.msk [vmem:[#allocation0] sm:$0x3] %vm246_vm11, %v245_v0  }
  0xa5   :  { %v364_v2 = vpop.permute.xlu2 %363   ;;  %v393_v3 = vld [vmem:[#allocation0 + $0x20] sm:$0x3] }
  0xa6   :  { %480 = vst [vmem:[%s819_s1 + $0x8] sm:$0x3] %v393_v3 }
  0xa7   :  { %367 = vst.msk [vmem:[#allocation0 + $0x28] sm:$0x3] %vm365_vm14, %v364_v2  }
  0xa9   :  { %v288_v1 = vpop.permute.xlu1 %287   ;;  %v277_v4 = vpop.permute.xlu0 %276  }
  0xaa   :  { %291 = vst.msk [vmem:[#allocation0 + $0x18] sm:$0x3] %vm289_vm12, %v288_v1  }
  0xab   :  { %280 = vst.msk [vmem:[#allocation0 + $0x8] sm:$0x3] %vm278_vm13, %v277_v4  }
  0xae   :  { %v399_v7 = vld [vmem:[#allocation0 + $0x28] sm:$0x3] }
  0xaf   :  { %481 = vst [vmem:[%s819_s1 + $0xa] sm:$0x3] %v399_v7 }
  0xb1   :  { %v320_v5 = vpop.permute.xlu1 %319   ;;  %v310_v6 = vpop.permute.xlu0 %309  }
  0xb2   :  { %323 = vst.msk [vmem:[#allocation0 + $0x10] sm:$0x3] %vm321_vm15, %v320_v5  }
  0xb3   :  { %312 = vst.msk [vmem:[#allocation0] sm:$0x3] %vm311_vm0, %v310_v6  }
  0xb9   :  { %v381_v8 = vld [vmem:[#allocation0 + $0x10] sm:$0x3]  ;;  %v353_v9 = vpop.permute.xlu1 %352   ;;  %v342_v11 = vpop.permute.xlu0 %341  }
  0xba   :  { %478 = vst [vmem:[%s819_s1 + $0x4] sm:$0x3] %v381_v8  ;;  %v370_v10 = vld [vmem:[#allocation0] sm:$0x3] }
  0xbb   :  { %356 = vst.msk [vmem:[#allocation0 + $0x18] sm:$0x3] %vm354_vm1, %v353_v9  }
  0xbc   :  { %373 = vst [vmem:[%s819_s1] sm:$0x3] %v370_v10 }
  0xbd   :  { %345 = vst.msk [vmem:[#allocation0 + $0x8] sm:$0x3] %vm343_vm2, %v342_v11  }
  0xc2   :  { %v387_v12 = vld [vmem:[#allocation0 + $0x18] sm:$0x3] }
  0xc3   :  { %479 = vst [vmem:[%s819_s1 + $0x6] sm:$0x3] %v387_v12 }
  0xc4   :  { %v375_v13 = vld [vmem:[#allocation0 + $0x8] sm:$0x3] }
  0xc5   :  { %477 = vst [vmem:[%s819_s1 + $0x2] sm:$0x3] %v375_v13 }

// kernel: mnist_generator_forward.1
= control target key start
LH: loop header
LB: loop body
LE: loop exit
PB: predicated region body
PF: predicated region fallthrough
CT: control target
= control target key end

     0   :  { %vm454_vm0 = vcmask 130048   ;;  %vm1169_vm1 = vcmask 1041408   ;;  %vm1165_vm2 = vcmask 80896   ;;  %vm1221_vm3 = vcmask 1043456   ;;  %s5153_s2 = inlined_call_operand.vmem [shape: f32[784,400], index: 2, kind: input, shape index: {}]   ;;  %s5154_s0 = inlined_call_operand.vmem [shape: f32[8,784], index: 0, kind: input, shape index: {}]   ;;  %s5155_s3 = inlined_call_operand.vmem [shape: f32[1,400], index: 3, kind: input, shape index: {}]   ;;  %s5156_s4 = inlined_call_operand.vmem [shape: f32[400,20], index: 4, kind: input, shape index: {}]   ;;  %s5157_s5 = inlined_call_operand.vmem [shape: f32[1,20], index: 5, kind: input, shape index: {}]   ;;  %s5158_s6 = inlined_call_operand.vmem [shape: f32[10,20], index: 6, kind: input, shape index: {}]   ;;  %s5159_s7 = inlined_call_operand.vmem [shape: f32[1,20], index: 7, kind: input, shape index: {}]   ;;  %s5160_s1 = inlined_call_operand.vmem [shape: f32[8,10], index: 1, kind: input, shape index: {}]   ;;  %s5161_s8 = inlined_call_operand.vmem [shape: f32[20,400], index: 8, kind: input, shape index: {}]   ;;  %s5162_s9 = inlined_call_operand.vmem [shape: f32[20,400], index: 9, kind: input, shape index: {}]   ;;  %s5163_s11 = inlined_call_operand.vmem [shape: f32[400,784], index: 11, kind: input, shape index: {}]   ;;  %s5164_s10 = inlined_call_operand.vmem [shape: f32[1,400], index: 10, kind: input, shape index: {}]   ;;  %s5165_s12 = inlined_call_operand.vmem [shape: f32[1,784], index: 12, kind: input, shape index: {}]   ;;  %s5166_s13 = inlined_call_operand.vmem [shape: f32[8,784], index: 13, kind: output, shape index: {}]  }
   0x1   :  { %v112_v0 = vld [vmem:[%s5153_s2 + $0x1e0] sm:$0xff]  ;;  %vm1217_vm4 = vcmask 162816  }
   0x2   :  { %v176_v1 = vld [vmem:[%s5153_s2 + $0x3e0] sm:$0xff]  ;;  %458 = vmatpush.msra.mxu0 %v112_v0 }
   0x3   :  { %v304_v2 = vld [vmem:[%s5153_s2 + $0x7e0] sm:$0xff]  ;;  %478 = vmatpush.msra.mxu1 %v176_v1 }
   0x4   :  { %v240_v3 = vld [vmem:[%s5153_s2 + $0x5e0] sm:$0xff]  ;;  %518 = vmatpush.msra.mxu3 %v304_v2 }
   0x5   :  { %v108_v4 = vld [vmem:[%s5153_s2 + $0x1c0] sm:$0xff]  ;;  %498 = vmatpush.msra.mxu2 %v240_v3  ;;  %v2701_v3 = vld [vmem:[%s5154_s0 + $0x10] sm:$0xff] }
   0x6   :  { %v172_v5 = vld [vmem:[%s5153_s2 + $0x3c0] sm:$0xff]  ;;  %459 = vmatpush.msra.mxu0 %v108_v4 }
   0x7   :  { %v300_v6 = vld [vmem:[%s5153_s2 + $0x7c0] sm:$0xff]  ;;  %479 = vmatpush.msra.mxu1 %v172_v5 }
   0x8   :  { %v236_v7 = vld [vmem:[%s5153_s2 + $0x5c0] sm:$0xff]  ;;  %519 = vmatpush.msra.mxu3 %v300_v6 }
   0x9   :  { %v104_v8 = vld [vmem:[%s5153_s2 + $0x1a0] sm:$0xff]  ;;  %499 = vmatpush.msra.mxu2 %v236_v7 }
   0xa   :  { %v168_v9 = vld [vmem:[%s5153_s2 + $0x3a0] sm:$0xff]  ;;  %460 = vmatpush.msra.mxu0 %v104_v8  ;;  %v2721_v8 = vld [vmem:[%s5154_s0 + $0x18] sm:$0xff] }
   0xb   :  { %v296_v10 = vld [vmem:[%s5153_s2 + $0x7a0] sm:$0xff]  ;;  %480 = vmatpush.msra.mxu1 %v168_v9 }
   0xc   :  { %v232_v11 = vld [vmem:[%s5153_s2 + $0x5a0] sm:$0xff]  ;;  %520 = vmatpush.msra.mxu3 %v296_v10  ;;  %v113_v10 = vld [vmem:[%s5153_s2 + $0x1e8] sm:$0xff] }
   0xd   :  { %v100_v12 = vld [vmem:[%s5153_s2 + $0x180] sm:$0xff]  ;;  %500 = vmatpush.msra.mxu2 %v232_v11 }
   0xe   :  { %v164_v13 = vld [vmem:[%s5153_s2 + $0x380] sm:$0xff]  ;;  %461 = vmatpush.msra.mxu0 %v100_v12  ;;  %v2736_v12 = vld [vmem:[%s5154_s0 + $0x8] sm:$0xff] }
   0xf   :  { %v292_v14 = vld [vmem:[%s5153_s2 + $0x780] sm:$0xff]  ;;  %481 = vmatpush.msra.mxu1 %v164_v13  ;;  %v177_v13 = vld [vmem:[%s5153_s2 + $0x3e8] sm:$0xff] }
  0x10   :  { %v228_v15 = vld [vmem:[%s5153_s2 + $0x580] sm:$0xff]  ;;  %521 = vmatpush.msra.mxu3 %v292_v14  ;;  %v109_v14 = vld [vmem:[%s5153_s2 + $0x1c8] sm:$0xff] }
  0x11   :  { %v96_v16 = vld [vmem:[%s5153_s2 + $0x160] sm:$0xff]  ;;  %501 = vmatpush.msra.mxu2 %v228_v15 }
  0x12   :  { %v160_v17 = vld [vmem:[%s5153_s2 + $0x360] sm:$0xff]  ;;  %462 = vmatpush.msra.mxu0 %v96_v16 }
  0x13   :  { %v288_v18 = vld [vmem:[%s5153_s2 + $0x760] sm:$0xff]  ;;  %482 = vmatpush.msra.mxu1 %v160_v17  ;;  %v173_v17 = vld [vmem:[%s5153_s2 + $0x3c8] sm:$0xff] }
  0x14   :  { %v224_v19 = vld [vmem:[%s5153_s2 + $0x560] sm:$0xff]  ;;  %522 = vmatpush.msra.mxu3 %v288_v18  ;;  %v105_v18 = vld [vmem:[%s5153_s2 + $0x1a8] sm:$0xff] }
  0x15   :  { %v92_v20 = vld [vmem:[%s5153_s2 + $0x140] sm:$0xff]  ;;  %502 = vmatpush.msra.mxu2 %v224_v19 }
  0x16   :  { %v156_v21 = vld [vmem:[%s5153_s2 + $0x340] sm:$0xff]  ;;  %463 = vmatpush.msra.mxu0 %v92_v20 }
  0x17   :  { %v284_v22 = vld [vmem:[%s5153_s2 + $0x740] sm:$0xff]  ;;  %483 = vmatpush.msra.mxu1 %v156_v21  ;;  %v169_v21 = vld [vmem:[%s5153_s2 + $0x3a8] sm:$0xff] }
  0x18   :  { %v220_v23 = vld [vmem:[%s5153_s2 + $0x540] sm:$0xff]  ;;  %523 = vmatpush.msra.mxu3 %v284_v22  ;;  %v101_v22 = vld [vmem:[%s5153_s2 + $0x188] sm:$0xff] }
  0x19   :  { %v88_v24 = vld [vmem:[%s5153_s2 + $0x120] sm:$0xff]  ;;  %503 = vmatpush.msra.mxu2 %v220_v23 }
  0x1a   :  { %v152_v25 = vld [vmem:[%s5153_s2 + $0x320] sm:$0xff]  ;;  %464 = vmatpush.msra.mxu0 %v88_v24 }
  0x1b   :  { %v280_v26 = vld [vmem:[%s5153_s2 + $0x720] sm:$0xff]  ;;  %484 = vmatpush.msra.mxu1 %v152_v25  ;;  %v165_v25 = vld [vmem:[%s5153_s2 + $0x388] sm:$0xff] }
  0x1c   :  { %v216_v27 = vld [vmem:[%s5153_s2 + $0x520] sm:$0xff]  ;;  %524 = vmatpush.msra.mxu3 %v280_v26  ;;  %v97_v26 = vld [vmem:[%s5153_s2 + $0x168] sm:$0xff] }
  0x1d   :  { %v84_v28 = vld [vmem:[%s5153_s2 + $0x100] sm:$0xff]  ;;  %504 = vmatpush.msra.mxu2 %v216_v27 }
  0x1e   :  { %v148_v29 = vld [vmem:[%s5153_s2 + $0x300] sm:$0xff]  ;;  %465 = vmatpush.msra.mxu0 %v84_v28 }
  0x1f   :  { %v276_v30 = vld [vmem:[%s5153_s2 + $0x700] sm:$0xff]  ;;  %485 = vmatpush.msra.mxu1 %v148_v29  ;;  %v161_v29 = vld [vmem:[%s5153_s2 + $0x368] sm:$0xff] }
  0x20   :  { %v212_v31 = vld [vmem:[%s5153_s2 + $0x500] sm:$0xff]  ;;  %525 = vmatpush.msra.mxu3 %v276_v30  ;;  %v93_v30 = vld [vmem:[%s5153_s2 + $0x148] sm:$0xff] }
  0x21   :  { %v80_v32 = vld [vmem:[%s5153_s2 + $0xe0] sm:$0xff]  ;;  %505 = vmatpush.msra.mxu2 %v212_v31 }
  0x22   :  { %v144_v33 = vld [vmem:[%s5153_s2 + $0x2e0] sm:$0xff]  ;;  %466 = vmatpush.msra.mxu0 %v80_v32 }
  0x23   :  { %v272_v34 = vld [vmem:[%s5153_s2 + $0x6e0] sm:$0xff]  ;;  %486 = vmatpush.msra.mxu1 %v144_v33  ;;  %v157_v33 = vld [vmem:[%s5153_s2 + $0x348] sm:$0xff] }
  0x24   :  { %v208_v35 = vld [vmem:[%s5153_s2 + $0x4e0] sm:$0xff]  ;;  %526 = vmatpush.msra.mxu3 %v272_v34  ;;  %v89_v34 = vld [vmem:[%s5153_s2 + $0x128] sm:$0xff] }
  0x25   :  { %v76_v36 = vld [vmem:[%s5153_s2 + $0xc0] sm:$0xff]  ;;  %506 = vmatpush.msra.mxu2 %v208_v35 }
  0x26   :  { %v140_v37 = vld [vmem:[%s5153_s2 + $0x2c0] sm:$0xff]  ;;  %467 = vmatpush.msra.mxu0 %v76_v36 }
  0x27   :  { %v268_v38 = vld [vmem:[%s5153_s2 + $0x6c0] sm:$0xff]  ;;  %487 = vmatpush.msra.mxu1 %v140_v37  ;;  %v153_v37 = vld [vmem:[%s5153_s2 + $0x328] sm:$0xff] }
  0x28   :  { %v204_v39 = vld [vmem:[%s5153_s2 + $0x4c0] sm:$0xff]  ;;  %527 = vmatpush.msra.mxu3 %v268_v38  ;;  %v85_v38 = vld [vmem:[%s5153_s2 + $0x108] sm:$0xff] }
  0x29   :  { %v72_v40 = vld [vmem:[%s5153_s2 + $0xa0] sm:$0xff]  ;;  %507 = vmatpush.msra.mxu2 %v204_v39 }
  0x2a   :  { %v136_v41 = vld [vmem:[%s5153_s2 + $0x2a0] sm:$0xff]  ;;  %468 = vmatpush.msra.mxu0 %v72_v40 }
  0x2b   :  { %v264_v42 = vld [vmem:[%s5153_s2 + $0x6a0] sm:$0xff]  ;;  %488 = vmatpush.msra.mxu1 %v136_v41  ;;  %v149_v41 = vld [vmem:[%s5153_s2 + $0x308] sm:$0xff] }
  0x2c   :  { %v200_v43 = vld [vmem:[%s5153_s2 + $0x4a0] sm:$0xff]  ;;  %528 = vmatpush.msra.mxu3 %v264_v42  ;;  %v81_v42 = vld [vmem:[%s5153_s2 + $0xe8] sm:$0xff] }
  0x2d   :  { %v68_v44 = vld [vmem:[%s5153_s2 + $0x80] sm:$0xff]  ;;  %508 = vmatpush.msra.mxu2 %v200_v43 }
  0x2e   :  { %v132_v45 = vld [vmem:[%s5153_s2 + $0x280] sm:$0xff]  ;;  %469 = vmatpush.msra.mxu0 %v68_v44 }
  0x2f   :  { %v260_v46 = vld [vmem:[%s5153_s2 + $0x680] sm:$0xff]  ;;  %489 = vmatpush.msra.mxu1 %v132_v45  ;;  %v145_v45 = vld [vmem:[%s5153_s2 + $0x2e8] sm:$0xff] }
  0x30   :  { %v196_v47 = vld [vmem:[%s5153_s2 + $0x480] sm:$0xff]  ;;  %529 = vmatpush.msra.mxu3 %v260_v46  ;;  %v77_v46 = vld [vmem:[%s5153_s2 + $0xc8] sm:$0xff] }
  0x31   :  { %v64_v48 = vld [vmem:[%s5153_s2 + $0x60] sm:$0xff]  ;;  %509 = vmatpush.msra.mxu2 %v196_v47 }
  0x32   :  { %v128_v49 = vld [vmem:[%s5153_s2 + $0x260] sm:$0xff]  ;;  %470 = vmatpush.msra.mxu0 %v64_v48 }
  0x33   :  { %v256_v50 = vld [vmem:[%s5153_s2 + $0x660] sm:$0xff]  ;;  %490 = vmatpush.msra.mxu1 %v128_v49  ;;  %v141_v49 = vld [vmem:[%s5153_s2 + $0x2c8] sm:$0xff] }
  0x34   :  { %v192_v51 = vld [vmem:[%s5153_s2 + $0x460] sm:$0xff]  ;;  %530 = vmatpush.msra.mxu3 %v256_v50  ;;  %v73_v50 = vld [vmem:[%s5153_s2 + $0xa8] sm:$0xff] }
  0x35   :  { %v60_v52 = vld [vmem:[%s5153_s2 + $0x40] sm:$0xff]  ;;  %510 = vmatpush.msra.mxu2 %v192_v51 }
  0x36   :  { %v124_v53 = vld [vmem:[%s5153_s2 + $0x240] sm:$0xff]  ;;  %471 = vmatpush.msra.mxu0 %v60_v52 }
  0x37   :  { %v252_v54 = vld [vmem:[%s5153_s2 + $0x640] sm:$0xff]  ;;  %491 = vmatpush.msra.mxu1 %v124_v53  ;;  %v137_v53 = vld [vmem:[%s5153_s2 + $0x2a8] sm:$0xff] }
  0x38   :  { %v188_v55 = vld [vmem:[%s5153_s2 + $0x440] sm:$0xff]  ;;  %531 = vmatpush.msra.mxu3 %v252_v54  ;;  %v69_v54 = vld [vmem:[%s5153_s2 + $0x88] sm:$0xff] }
  0x39   :  { %v56_v56 = vld [vmem:[%s5153_s2 + $0x20] sm:$0xff]  ;;  %511 = vmatpush.msra.mxu2 %v188_v55 }
  0x3a   :  { %v120_v57 = vld [vmem:[%s5153_s2 + $0x220] sm:$0xff]  ;;  %472 = vmatpush.msra.mxu0 %v56_v56 }
  0x3b   :  { %v248_v58 = vld [vmem:[%s5153_s2 + $0x620] sm:$0xff]  ;;  %492 = vmatpush.msra.mxu1 %v120_v57  ;;  %v133_v57 = vld [vmem:[%s5153_s2 + $0x288] sm:$0xff] }
  0x3c   :  { %v184_v59 = vld [vmem:[%s5153_s2 + $0x420] sm:$0xff]  ;;  %532 = vmatpush.msra.mxu3 %v248_v58  ;;  %v65_v58 = vld [vmem:[%s5153_s2 + $0x68] sm:$0xff] }
  0x3d   :  { %v52_v60 = vld [vmem:[%s5153_s2] sm:$0xff]  ;;  %512 = vmatpush.msra.mxu2 %v184_v59 }
  0x3e   :  { %v116_v61 = vld [vmem:[%s5153_s2 + $0x200] sm:$0xff]  ;;  %473 = vmatpush.msra.mxu0 %v52_v60 }
  0x3f   :  { %v244_v62 = vld [vmem:[%s5153_s2 + $0x600] sm:$0xff]  ;;  %493 = vmatpush.msra.mxu1 %v116_v61  ;;  %v2887_v61 = vld [vmem:[%s5154_s0 + $0x30] sm:$0xff] }
  0x40   :  { %v180_v63 = vld [vmem:[%s5153_s2 + $0x400] sm:$0xff]  ;;  %533 = vmatpush.msra.mxu3 %v244_v62  ;;  %494 = vmatmul.f32.vlgmr.msra.gmra.mxu1 %v2736_v12  ;;  %v61_v62 = vld [vmem:[%s5153_s2 + $0x48] sm:$0xff] }
  0x41   :  { %v368_v0 = vld [vmem:[%s5153_s2 + $0x9e0] sm:$0xff]  ;;  %513 = vmatpush.msra.mxu2 %v180_v63  ;;  %534 = vmatmul.f32.vlgmr.msra.gmra.mxu3 %v2721_v8  ;;  %v129_v63 = vld [vmem:[%s5153_s2 + $0x268] sm:$0xff] }
  0x42   :  { %v432_v1 = vld [vmem:[%s5153_s2 + $0xbe0] sm:$0xff]  ;;  %538 = vmatpush.msrb.mxu0 %v368_v0  ;;  %514 = vmatmul.f32.vlgmr.msra.gmra.mxu2 %v2701_v3 }
  0x43   :  { %v440_v2 = vld [vmem:[%s5153_s2 + $0xc20] sm:$0xff]  ;;  %558 = vmatpush.msrb.mxu1 %v432_v1  ;;  %618 = vmatpush.msrb.mxu2 %v177_v13  ;;  %v301_v13 = vld [vmem:[%s5153_s2 + $0x7c8] sm:$0xff] }
  0x44   :  { %v364_v4 = vld [vmem:[%s5153_s2 + $0x9c0] sm:$0xff]  ;;  %592 = vmatpush.msrb.mxu3 %v440_v2 }
  0x45   :  { %v428_v5 = vld [vmem:[%s5153_s2 + $0xbc0] sm:$0xff]  ;;  %539 = vmatpush.msrb.mxu0 %v364_v4  ;;  %619 = vmatpush.msrb.mxu2 %v173_v17  ;;  %v57_v4 = vld [vmem:[%s5153_s2 + $0x28] sm:$0xff] }
  0x46   :  { %v436_v6 = vld [vmem:[%s5153_s2 + $0xc00] sm:$0xff]  ;;  %559 = vmatpush.msrb.mxu1 %v428_v5  ;;  %v125_v5 = vld [vmem:[%s5153_s2 + $0x248] sm:$0xff] }
  0x47   :  { %v2715_v7 = vld [vmem:[%s5154_s0] sm:$0xff]  ;;  %593 = vmatpush.msrb.mxu3 %v436_v6  ;;  %620 = vmatpush.msrb.mxu2 %v169_v21  ;;  %v305_v6 = vld [vmem:[%s5153_s2 + $0x7e8] sm:$0xff] }
  0x48   :  { %v360_v9 = vld [vmem:[%s5153_s2 + $0x9a0] sm:$0xff]  ;;  %474 = vmatmul.f32.vlgmr.msra.gmra.mxu0 %v2715_v7  ;;  %v297_v17 = vld [vmem:[%s5153_s2 + $0x7a8] sm:$0xff] }
  0x49   :  { %v424_v11 = vld [vmem:[%s5153_s2 + $0xba0] sm:$0xff]  ;;  %540 = vmatpush.msrb.mxu0 %v360_v9  ;;  %598 = vmatpush.msra.mxu3 %v113_v10  ;;  %v2920_v9 = vld [vmem:[%s5154_s0 + $0x28] sm:$0xff] }
  0x4a   :  { %v356_v15 = vld [vmem:[%s5153_s2 + $0x980] sm:$0xff]  ;;  %560 = vmatpush.msrb.mxu1 %v424_v11  ;;  %621 = vmatpush.msrb.mxu2 %v165_v25  ;;  %v53_v10 = vld [vmem:[%s5153_s2 + $0x8] sm:$0xff] }
  0x4b   :  { %v420_v16 = vld [vmem:[%s5153_s2 + $0xb80] sm:$0xff]  ;;  %599 = vmatpush.msra.mxu3 %v109_v14  ;;  %541 = vmatpush.msrb.mxu0 %v356_v15  ;;  %v121_v11 = vld [vmem:[%s5153_s2 + $0x228] sm:$0xff] }
  0x4c   :  { %v352_v19 = vld [vmem:[%s5153_s2 + $0x960] sm:$0xff]  ;;  %561 = vmatpush.msrb.mxu1 %v420_v16  ;;  %622 = vmatpush.msrb.mxu2 %v161_v29  ;;  %v369_v14 = vld [vmem:[%s5153_s2 + $0x9e8] sm:$0xff] }
  0x4d   :  { %v416_v20 = vld [vmem:[%s5153_s2 + $0xb60] sm:$0xff]  ;;  %600 = vmatpush.msra.mxu3 %v105_v18  ;;  %542 = vmatpush.msrb.mxu0 %v352_v19  ;;  %v241_v15 = vld [vmem:[%s5153_s2 + $0x5e8] sm:$0xff] }
  0x4e   :  { %v348_v23 = vld [vmem:[%s5153_s2 + $0x940] sm:$0xff]  ;;  %562 = vmatpush.msrb.mxu1 %v416_v20  ;;  %623 = vmatpush.msrb.mxu2 %v157_v33  ;;  %v117_v16 = vld [vmem:[%s5153_s2 + $0x208] sm:$0xff] }
  0x4f   :  { %v412_v24 = vld [vmem:[%s5153_s2 + $0xb40] sm:$0xff]  ;;  %601 = vmatpush.msra.mxu3 %v101_v22  ;;  %543 = vmatpush.msrb.mxu0 %v348_v23  ;;  %v365_v18 = vld [vmem:[%s5153_s2 + $0x9c8] sm:$0xff] }
  0x50   :  { %v344_v27 = vld [vmem:[%s5153_s2 + $0x920] sm:$0xff]  ;;  %563 = vmatpush.msrb.mxu1 %v412_v24  ;;  %624 = vmatpush.msrb.mxu2 %v153_v37  ;;  %v433_v19 = vld [vmem:[%s5153_s2 + $0xbe8] sm:$0xff] }
  0x51   :  { %v408_v28 = vld [vmem:[%s5153_s2 + $0xb20] sm:$0xff]  ;;  %602 = vmatpush.msra.mxu3 %v97_v26  ;;  %544 = vmatpush.msrb.mxu0 %v344_v27  ;;  %v293_v20 = vld [vmem:[%s5153_s2 + $0x788] sm:$0xff] }
  0x52   :  { %v340_v31 = vld [vmem:[%s5153_s2 + $0x900] sm:$0xff]  ;;  %564 = vmatpush.msrb.mxu1 %v408_v28  ;;  %625 = vmatpush.msrb.mxu2 %v149_v41  ;;  %v237_v21 = vld [vmem:[%s5153_s2 + $0x5c8] sm:$0xff] }
  0x53   :  { %v404_v32 = vld [vmem:[%s5153_s2 + $0xb00] sm:$0xff]  ;;  %603 = vmatpush.msra.mxu3 %v93_v30  ;;  %545 = vmatpush.msrb.mxu0 %v340_v31  ;;  %v361_v22 = vld [vmem:[%s5153_s2 + $0x9a8] sm:$0xff] }
  0x54   :  { %v336_v35 = vld [vmem:[%s5153_s2 + $0x8e0] sm:$0xff]  ;;  %565 = vmatpush.msrb.mxu1 %v404_v32  ;;  %626 = vmatpush.msrb.mxu2 %v145_v45  ;;  %v429_v23 = vld [vmem:[%s5153_s2 + $0xbc8] sm:$0xff] }
  0x55   :  { %v400_v36 = vld [vmem:[%s5153_s2 + $0xae0] sm:$0xff]  ;;  %604 = vmatpush.msra.mxu3 %v89_v34  ;;  %546 = vmatpush.msrb.mxu0 %v336_v35  ;;  %v289_v24 = vld [vmem:[%s5153_s2 + $0x768] sm:$0xff] }
  0x56   :  { %v332_v39 = vld [vmem:[%s5153_s2 + $0x8c0] sm:$0xff]  ;;  %566 = vmatpush.msrb.mxu1 %v400_v36  ;;  %627 = vmatpush.msrb.mxu2 %v141_v49  ;;  %v233_v25 = vld [vmem:[%s5153_s2 + $0x5a8] sm:$0xff] }
  0x57   :  { %v396_v40 = vld [vmem:[%s5153_s2 + $0xac0] sm:$0xff]  ;;  %605 = vmatpush.msra.mxu3 %v85_v38  ;;  %547 = vmatpush.msrb.mxu0 %v332_v39  ;;  %v357_v26 = vld [vmem:[%s5153_s2 + $0x988] sm:$0xff] }
  0x58   :  { %v328_v43 = vld [vmem:[%s5153_s2 + $0x8a0] sm:$0xff]  ;;  %567 = vmatpush.msrb.mxu1 %v396_v40  ;;  %628 = vmatpush.msrb.mxu2 %v137_v53  ;;  %v425_v27 = vld [vmem:[%s5153_s2 + $0xba8] sm:$0xff] }
  0x59   :  { %v392_v44 = vld [vmem:[%s5153_s2 + $0xaa0] sm:$0xff]  ;;  %606 = vmatpush.msra.mxu3 %v81_v42  ;;  %548 = vmatpush.msrb.mxu0 %v328_v43  ;;  %v285_v28 = vld [vmem:[%s5153_s2 + $0x748] sm:$0xff] }
  0x5a   :  { %v324_v47 = vld [vmem:[%s5153_s2 + $0x880] sm:$0xff]  ;;  %568 = vmatpush.msrb.mxu1 %v392_v44  ;;  %629 = vmatpush.msrb.mxu2 %v133_v57  ;;  %v229_v29 = vld [vmem:[%s5153_s2 + $0x588] sm:$0xff] }
  0x5b   :  { %v388_v48 = vld [vmem:[%s5153_s2 + $0xa80] sm:$0xff]  ;;  %607 = vmatpush.msra.mxu3 %v77_v46  ;;  %549 = vmatpush.msrb.mxu0 %v324_v47  ;;  %v353_v30 = vld [vmem:[%s5153_s2 + $0x968] sm:$0xff] }
  0x5c   :  { %v320_v51 = vld [vmem:[%s5153_s2 + $0x860] sm:$0xff]  ;;  %569 = vmatpush.msrb.mxu1 %v388_v48  ;;  %2374 = vmatmul.msk.f32.vlgmr.msrb.gmra.mxu3 %vm454_vm0, %v2887_v61  ;;  %v421_v31 = vld [vmem:[%s5153_s2 + $0xb88] sm:$0xff] }
  0x5d   :  { %v384_v52 = vld [vmem:[%s5153_s2 + $0xa60] sm:$0xff]  ;;  %608 = vmatpush.msra.mxu3 %v73_v50  ;;  %550 = vmatpush.msrb.mxu0 %v320_v51  ;;  %v281_v32 = vld [vmem:[%s5153_s2 + $0x728] sm:$0xff] }
  0x5e   :  { %v316_v55 = vld [vmem:[%s5153_s2 + $0x840] sm:$0xff]  ;;  %570 = vmatpush.msrb.mxu1 %v384_v52  ;;  %630 = vmatpush.msrb.mxu2 %v129_v63  ;;  %v225_v33 = vld [vmem:[%s5153_s2 + $0x568] sm:$0xff] }
  0x5f   :  { %v380_v56 = vld [vmem:[%s5153_s2 + $0xa40] sm:$0xff]  ;;  %609 = vmatpush.msra.mxu3 %v69_v54  ;;  %551 = vmatpush.msrb.mxu0 %v316_v55  ;;  %v349_v34 = vld [vmem:[%s5153_s2 + $0x948] sm:$0xff] }
  0x60   :  { %v312_v59 = vld [vmem:[%s5153_s2 + $0x820] sm:$0xff]  ;;  %571 = vmatpush.msrb.mxu1 %v380_v56  ;;  %631 = vmatpush.msrb.mxu2 %v125_v5  ;;  %v417_v35 = vld [vmem:[%s5153_s2 + $0xb68] sm:$0xff] }
  0x61   :  { %v376_v60 = vld [vmem:[%s5153_s2 + $0xa20] sm:$0xff]  ;;  %610 = vmatpush.msra.mxu3 %v65_v58  ;;  %552 = vmatpush.msrb.mxu0 %v312_v59  ;;  %v277_v36 = vld [vmem:[%s5153_s2 + $0x708] sm:$0xff] }
  0x62   :  { %v308_v0 = vld [vmem:[%s5153_s2 + $0x800] sm:$0xff]  ;;  %572 = vmatpush.msrb.mxu1 %v376_v60  ;;  %632 = vmatpush.msrb.mxu2 %v121_v11  ;;  %v221_v37 = vld [vmem:[%s5153_s2 + $0x548] sm:$0xff] }
  0x63   :  { %v372_v1 = vld [vmem:[%s5153_s2 + $0xa00] sm:$0xff]  ;;  %611 = vmatpush.msra.mxu3 %v61_v62  ;;  %553 = vmatpush.msrb.mxu0 %v308_v0  ;;  %v345_v38 = vld [vmem:[%s5153_s2 + $0x928] sm:$0xff] }
  0x64   :  { %v2906_v2 = vld [vmem:[%s5154_s0 + $0x20] sm:$0xff]  ;;  %573 = vmatpush.msrb.mxu1 %v372_v1  ;;  %633 = vmatpush.msrb.mxu2 %v117_v16  ;;  %v413_v39 = vld [vmem:[%s5153_s2 + $0xb48] sm:$0xff] }
  0x65   :  { %554 = vmatmul.f32.vlgmr.msrb.gmra.mxu0 %v2906_v2  ;;  %612 = vmatpush.msra.mxu3 %v57_v4  ;;  %v273_v40 = vld [vmem:[%s5153_s2 + $0x6e8] sm:$0xff] }
  0x66   :  { %658 = vmatpush.msra.mxu1 %v305_v6  ;;  %638 = vmatpush.msra.mxu0 %v241_v15  ;;  %v217_v41 = vld [vmem:[%s5153_s2 + $0x528] sm:$0xff]  ;;  %v114_v15 = vld [vmem:[%s5153_s2 + $0x1f0] sm:$0xff] }
  0x67   :  { %574 = vmatmul.f32.vlgmr.msrb.gmra.mxu1 %v2920_v9  ;;  %613 = vmatpush.msra.mxu3 %v53_v10  ;;  %v341_v42 = vld [vmem:[%s5153_s2 + $0x908] sm:$0xff] }
  0x68   :  { %659 = vmatpush.msra.mxu1 %v301_v13  ;;  %698 = vmatpush.msra.mxu2 %v433_v19  ;;  %v409_v43 = vld [vmem:[%s5153_s2 + $0xb28] sm:$0xff]  ;;  %v110_v19 = vld [vmem:[%s5153_s2 + $0x1d0] sm:$0xff] }
  0x69   :  { %678 = vmatpush.msrb.mxu3 %v369_v14  ;;  %639 = vmatpush.msra.mxu0 %v237_v21  ;;  %v269_v44 = vld [vmem:[%s5153_s2 + $0x6c8] sm:$0xff] }
  0x6a   :  { %660 = vmatpush.msra.mxu1 %v297_v17  ;;  %699 = vmatpush.msra.mxu2 %v429_v23  ;;  %v213_v45 = vld [vmem:[%s5153_s2 + $0x508] sm:$0xff]  ;;  %v106_v23 = vld [vmem:[%s5153_s2 + $0x1b0] sm:$0xff] }
  0x6b   :  { %679 = vmatpush.msrb.mxu3 %v365_v18  ;;  %640 = vmatpush.msra.mxu0 %v233_v25  ;;  %v337_v46 = vld [vmem:[%s5153_s2 + $0x8e8] sm:$0xff]  ;;  %v306_v25 = vld [vmem:[%s5153_s2 + $0x7f0] sm:$0xff] }
  0x6c   :  { %661 = vmatpush.msra.mxu1 %v293_v20  ;;  %700 = vmatpush.msra.mxu2 %v425_v27  ;;  %v405_v47 = vld [vmem:[%s5153_s2 + $0xb08] sm:$0xff]  ;;  %v178_v20 = vld [vmem:[%s5153_s2 + $0x3f0] sm:$0xff] }
  0x6d   :  { %680 = vmatpush.msrb.mxu3 %v361_v22  ;;  %641 = vmatpush.msra.mxu0 %v229_v29  ;;  %v265_v48 = vld [vmem:[%s5153_s2 + $0x6a8] sm:$0xff]  ;;  %v302_v29 = vld [vmem:[%s5153_s2 + $0x7d0] sm:$0xff] }
  0x6e   :  { %662 = vmatpush.msra.mxu1 %v289_v24  ;;  %701 = vmatpush.msra.mxu2 %v421_v31  ;;  %v209_v49 = vld [vmem:[%s5153_s2 + $0x4e8] sm:$0xff]  ;;  %v174_v24 = vld [vmem:[%s5153_s2 + $0x3d0] sm:$0xff] }
  0x6f   :  { %681 = vmatpush.msrb.mxu3 %v357_v26  ;;  %642 = vmatpush.msra.mxu0 %v225_v33  ;;  %v333_v50 = vld [vmem:[%s5153_s2 + $0x8c8] sm:$0xff]  ;;  %v102_v26 = vld [vmem:[%s5153_s2 + $0x190] sm:$0xff] }
  0x70   :  { %663 = vmatpush.msra.mxu1 %v285_v28  ;;  %702 = vmatpush.msra.mxu2 %v417_v35  ;;  %v401_v51 = vld [vmem:[%s5153_s2 + $0xae8] sm:$0xff]  ;;  %v170_v28 = vld [vmem:[%s5153_s2 + $0x3b0] sm:$0xff] }
  0x71   :  { %682 = vmatpush.msrb.mxu3 %v353_v30  ;;  %643 = vmatpush.msra.mxu0 %v221_v37  ;;  %v261_v52 = vld [vmem:[%s5153_s2 + $0x688] sm:$0xff]  ;;  %v98_v30 = vld [vmem:[%s5153_s2 + $0x170] sm:$0xff] }
  0x72   :  { %664 = vmatpush.msra.mxu1 %v281_v32  ;;  %703 = vmatpush.msra.mxu2 %v413_v39  ;;  %v205_v53 = vld [vmem:[%s5153_s2 + $0x4c8] sm:$0xff]  ;;  %v166_v32 = vld [vmem:[%s5153_s2 + $0x390] sm:$0xff] }
  0x73   :  { %683 = vmatpush.msrb.mxu3 %v349_v34  ;;  %644 = vmatpush.msra.mxu0 %v217_v41  ;;  %v329_v54 = vld [vmem:[%s5153_s2 + $0x8a8] sm:$0xff]  ;;  %v298_v33 = vld [vmem:[%s5153_s2 + $0x7b0] sm:$0xff] }
  0x74   :  { %665 = vmatpush.msra.mxu1 %v277_v36  ;;  %704 = vmatpush.msra.mxu2 %v409_v43  ;;  %v397_v55 = vld [vmem:[%s5153_s2 + $0xac8] sm:$0xff]  ;;  %v94_v34 = vld [vmem:[%s5153_s2 + $0x150] sm:$0xff] }
  0x75   :  { %684 = vmatpush.msrb.mxu3 %v345_v38  ;;  %645 = vmatpush.msra.mxu0 %v213_v45  ;;  %v257_v56 = vld [vmem:[%s5153_s2 + $0x668] sm:$0xff]  ;;  %v242_v35 = vld [vmem:[%s5153_s2 + $0x5f0] sm:$0xff] }
  0x76   :  { %666 = vmatpush.msra.mxu1 %v273_v40  ;;  %705 = vmatpush.msra.mxu2 %v405_v47  ;;  %v201_v57 = vld [vmem:[%s5153_s2 + $0x4a8] sm:$0xff]  ;;  %v162_v36 = vld [vmem:[%s5153_s2 + $0x370] sm:$0xff] }
  0x77   :  { %685 = vmatpush.msrb.mxu3 %v341_v42  ;;  %646 = vmatpush.msra.mxu0 %v209_v49  ;;  %v325_v58 = vld [vmem:[%s5153_s2 + $0x888] sm:$0xff]  ;;  %v294_v37 = vld [vmem:[%s5153_s2 + $0x790] sm:$0xff] }
  0x78   :  { %667 = vmatpush.msra.mxu1 %v269_v44  ;;  %706 = vmatpush.msra.mxu2 %v401_v51  ;;  %v393_v59 = vld [vmem:[%s5153_s2 + $0xaa8] sm:$0xff]  ;;  %v90_v38 = vld [vmem:[%s5153_s2 + $0x130] sm:$0xff] }
  0x79   :  { %686 = vmatpush.msrb.mxu3 %v337_v46  ;;  %647 = vmatpush.msra.mxu0 %v205_v53  ;;  %v253_v60 = vld [vmem:[%s5153_s2 + $0x648] sm:$0xff]  ;;  %v238_v39 = vld [vmem:[%s5153_s2 + $0x5d0] sm:$0xff] }
  0x7a   :  { %668 = vmatpush.msra.mxu1 %v265_v48  ;;  %707 = vmatpush.msra.mxu2 %v397_v55  ;;  %v197_v62 = vld [vmem:[%s5153_s2 + $0x488] sm:$0xff]  ;;  %v158_v40 = vld [vmem:[%s5153_s2 + $0x350] sm:$0xff] }
  0x7b   :  { %687 = vmatpush.msrb.mxu3 %v333_v50  ;;  %648 = vmatpush.msra.mxu0 %v201_v57  ;;  %v321_v63 = vld [vmem:[%s5153_s2 + $0x868] sm:$0xff]  ;;  %v290_v41 = vld [vmem:[%s5153_s2 + $0x770] sm:$0xff] }
  0x7c   :  { %669 = vmatpush.msra.mxu1 %v261_v52  ;;  %708 = vmatpush.msra.mxu2 %v393_v59  ;;  %v389_v0 = vld [vmem:[%s5153_s2 + $0xa88] sm:$0xff]  ;;  %v86_v42 = vld [vmem:[%s5153_s2 + $0x110] sm:$0xff] }
  0x7d   :  { %688 = vmatpush.msrb.mxu3 %v329_v54  ;;  %v249_v1 = vld [vmem:[%s5153_s2 + $0x628] sm:$0xff]  ;;  %649 = vmatpush.msra.mxu0 %v197_v62  ;;  %v234_v43 = vld [vmem:[%s5153_s2 + $0x5b0] sm:$0xff] }
  0x7e   :  { %670 = vmatpush.msra.mxu1 %v257_v56  ;;  %614 = vmatmul.f32.vlgmr.msra.gmra.mxu3 %v2715_v7  ;;  %v193_v4 = vld [vmem:[%s5153_s2 + $0x468] sm:$0xff]  ;;  %v154_v44 = vld [vmem:[%s5153_s2 + $0x330] sm:$0xff] }
  0x7f   :  { %689 = vmatpush.msrb.mxu3 %v325_v58  ;;  %v317_v5 = vld [vmem:[%s5153_s2 + $0x848] sm:$0xff]  ;;  %709 = vmatpush.msra.mxu2 %v389_v0  ;;  %v286_v45 = vld [vmem:[%s5153_s2 + $0x750] sm:$0xff] }
  0x80   :  { %671 = vmatpush.msra.mxu1 %v253_v60  ;;  %v385_v6 = vld [vmem:[%s5153_s2 + $0xa68] sm:$0xff]  ;;  %634 = vmatmul.f32.vlgmr.msrb.gmra.mxu2 %v2736_v12  ;;  %v82_v46 = vld [vmem:[%s5153_s2 + $0xf0] sm:$0xff] }
  0x81   :  { %690 = vmatpush.msrb.mxu3 %v321_v63  ;;  %v245_v10 = vld [vmem:[%s5153_s2 + $0x608] sm:$0xff]  ;;  %650 = vmatpush.msra.mxu0 %v193_v4  ;;  %v230_v47 = vld [vmem:[%s5153_s2 + $0x590] sm:$0xff] }
  0x82   :  { %672 = vmatpush.msra.mxu1 %v249_v1  ;;  %v189_v11 = vld [vmem:[%s5153_s2 + $0x448] sm:$0xff]  ;;  %710 = vmatpush.msra.mxu2 %v385_v6  ;;  %v150_v48 = vld [vmem:[%s5153_s2 + $0x310] sm:$0xff] }
  0x83   :  { %v313_v13 = vld [vmem:[%s5153_s2 + $0x828] sm:$0xff]  ;;  %691 = vmatpush.msrb.mxu3 %v317_v5  ;;  %651 = vmatpush.msra.mxu0 %v189_v11  ;;  %v282_v49 = vld [vmem:[%s5153_s2 + $0x730] sm:$0xff] }
  0x84   :  { %v381_v14 = vld [vmem:[%s5153_s2 + $0xa48] sm:$0xff]  ;;  %673 = vmatpush.msra.mxu1 %v245_v10  ;;  %v78_v50 = vld [vmem:[%s5153_s2 + $0xd0] sm:$0xff] }
  0x85   :  { %v185_v16 = vld [vmem:[%s5153_s2 + $0x428] sm:$0xff]  ;;  %692 = vmatpush.msrb.mxu3 %v313_v13  ;;  %711 = vmatpush.msra.mxu2 %v381_v14  ;;  %v226_v51 = vld [vmem:[%s5153_s2 + $0x570] sm:$0xff] }
  0x86   :  { %v309_v17 = vld [vmem:[%s5153_s2 + $0x808] sm:$0xff]  ;;  %738 = vmatpush.msrb.mxu1 %v114_v15  ;;  %652 = vmatpush.msra.mxu0 %v185_v16  ;;  %v146_v52 = vld [vmem:[%s5153_s2 + $0x2f0] sm:$0xff] }
  0x87   :  { %v377_v18 = vld [vmem:[%s5153_s2 + $0xa28] sm:$0xff]  ;;  %693 = vmatpush.msrb.mxu3 %v309_v17  ;;  %674 = vmatmul.f32.vlgmr.msra.gmra.mxu1 %v2721_v8  ;;  %v278_v53 = vld [vmem:[%s5153_s2 + $0x710] sm:$0xff] }
  0x88   :  { %v181_v21 = vld [vmem:[%s5153_s2 + $0x408] sm:$0xff]  ;;  %712 = vmatpush.msra.mxu2 %v377_v18  ;;  %739 = vmatpush.msrb.mxu1 %v110_v19  ;;  %v74_v54 = vld [vmem:[%s5153_s2 + $0xb0] sm:$0xff] }
  0x89   :  { %v373_v22 = vld [vmem:[%s5153_s2 + $0xa08] sm:$0xff]  ;;  %694 = vmatmul.f32.vlgmr.msrb.gmra.mxu3 %v2906_v2  ;;  %653 = vmatpush.msra.mxu0 %v181_v21  ;;  %v222_v55 = vld [vmem:[%s5153_s2 + $0x550] sm:$0xff] }
  0x8a   :  { %758 = vmatpush.msra.mxu3 %v178_v20  ;;  %713 = vmatpush.msra.mxu2 %v373_v22  ;;  %v441_v27 = vld [vmem:[%s5153_s2 + $0xc28] sm:$0xff]  ;;  %v142_v56 = vld [vmem:[%s5153_s2 + $0x2d0] sm:$0xff] }
  0x8b   :  { %740 = vmatpush.msrb.mxu1 %v106_v23  ;;  %654 = vmatmul.f32.vlgmr.msra.gmra.mxu0 %v2701_v3  ;;  %v437_v31 = vld [vmem:[%s5153_s2 + $0xc08] sm:$0xff]  ;;  %v274_v57 = vld [vmem:[%s5153_s2 + $0x6f0] sm:$0xff] }
  0x8c   :  { %714 = vmatmul.f32.vlgmr.msra.gmra.mxu2 %v2920_v9  ;;  %759 = vmatpush.msra.mxu3 %v174_v24  ;;  %v70_v58 = vld [vmem:[%s5153_s2 + $0x90] sm:$0xff] }
  0x8d   :  { %798 = vmatpush.msrb.mxu2 %v306_v25  ;;  %741 = vmatpush.msrb.mxu1 %v102_v26  ;;  %v218_v59 = vld [vmem:[%s5153_s2 + $0x530] sm:$0xff] }
  0x8e   :  { %732 = vmatpush.msrb.mxu0 %v441_v27  ;;  %760 = vmatpush.msra.mxu3 %v170_v28  ;;  %v138_v60 = vld [vmem:[%s5153_s2 + $0x2b0] sm:$0xff] }
  0x8f   :  { %799 = vmatpush.msrb.mxu2 %v302_v29  ;;  %742 = vmatpush.msrb.mxu1 %v98_v30  ;;  %v270_v62 = vld [vmem:[%s5153_s2 + $0x6d0] sm:$0xff] }
  0x90   :  { %733 = vmatpush.msrb.mxu0 %v437_v31  ;;  %761 = vmatpush.msra.mxu3 %v166_v32  ;;  %v66_v63 = vld [vmem:[%s5153_s2 + $0x70] sm:$0xff]  ;;  %v115_v32 = vld [vmem:[%s5153_s2 + $0x1f8] sm:$0xff] }
  0x91   :  { %800 = vmatpush.msrb.mxu2 %v298_v33  ;;  %743 = vmatpush.msrb.mxu1 %v94_v34  ;;  %v214_v0 = vld [vmem:[%s5153_s2 + $0x510] sm:$0xff] }
  0x92   :  { %778 = vmatpush.msra.mxu0 %v242_v35  ;;  %762 = vmatpush.msra.mxu3 %v162_v36  ;;  %v134_v1 = vld [vmem:[%s5153_s2 + $0x290] sm:$0xff]  ;;  %v111_v36 = vld [vmem:[%s5153_s2 + $0x1d8] sm:$0xff] }
  0x93   :  { %801 = vmatpush.msrb.mxu2 %v294_v37  ;;  %744 = vmatpush.msrb.mxu1 %v90_v38  ;;  %v266_v4 = vld [vmem:[%s5153_s2 + $0x6b0] sm:$0xff] }
  0x94   :  { %779 = vmatpush.msra.mxu0 %v238_v39  ;;  %763 = vmatpush.msra.mxu3 %v158_v40  ;;  %v62_v5 = vld [vmem:[%s5153_s2 + $0x50] sm:$0xff]  ;;  %v107_v39 = vld [vmem:[%s5153_s2 + $0x1b8] sm:$0xff] }
  0x95   :  { %2375 = vmatmul.msk.f32.vlgmr.msrb.gmra.mxu0 %vm454_vm0, %v2887_v61  ;;  %802 = vmatpush.msrb.mxu2 %v290_v41  ;;  %v210_v6 = vld [vmem:[%s5153_s2 + $0x4f0] sm:$0xff] }
  0x96   :  { %745 = vmatpush.msrb.mxu1 %v86_v42  ;;  %780 = vmatpush.msra.mxu0 %v234_v43  ;;  %v130_v10 = vld [vmem:[%s5153_s2 + $0x270] sm:$0xff]  ;;  %v103_v43 = vld [vmem:[%s5153_s2 + $0x198] sm:$0xff] }
  0x97   :  { %764 = vmatpush.msra.mxu3 %v154_v44  ;;  %803 = vmatpush.msrb.mxu2 %v286_v45  ;;  %v262_v11 = vld [vmem:[%s5153_s2 + $0x690] sm:$0xff] }
  0x98   :  { %746 = vmatpush.msrb.mxu1 %v82_v46  ;;  %781 = vmatpush.msra.mxu0 %v230_v47  ;;  %v58_v13 = vld [vmem:[%s5153_s2 + $0x30] sm:$0xff]  ;;  %v179_v46 = vld [vmem:[%s5153_s2 + $0x3f8] sm:$0xff] }
  0x99   :  { %765 = vmatpush.msra.mxu3 %v150_v48  ;;  %804 = vmatpush.msrb.mxu2 %v282_v49  ;;  %v206_v14 = vld [vmem:[%s5153_s2 + $0x4d0] sm:$0xff]  ;;  %v95_v49 = vld [vmem:[%s5153_s2 + $0x158] sm:$0xff] }
  0x9a   :  { %747 = vmatpush.msrb.mxu1 %v78_v50  ;;  %782 = vmatpush.msra.mxu0 %v226_v51  ;;  %v126_v15 = vld [vmem:[%s5153_s2 + $0x250] sm:$0xff]  ;;  %v175_v50 = vld [vmem:[%s5153_s2 + $0x3d8] sm:$0xff] }
  0x9b   :  { %766 = vmatpush.msra.mxu3 %v146_v52  ;;  %805 = vmatpush.msrb.mxu2 %v278_v53  ;;  %v258_v16 = vld [vmem:[%s5153_s2 + $0x670] sm:$0xff]  ;;  %v91_v53 = vld [vmem:[%s5153_s2 + $0x138] sm:$0xff] }
  0x9c   :  { %748 = vmatpush.msrb.mxu1 %v74_v54  ;;  %783 = vmatpush.msra.mxu0 %v222_v55  ;;  %v54_v17 = vld [vmem:[%s5153_s2 + $0x10] sm:$0xff] }
  0x9d   :  { %767 = vmatpush.msra.mxu3 %v142_v56  ;;  %806 = vmatpush.msrb.mxu2 %v274_v57  ;;  %v202_v18 = vld [vmem:[%s5153_s2 + $0x4b0] sm:$0xff]  ;;  %v87_v56 = vld [vmem:[%s5153_s2 + $0x118] sm:$0xff] }
  0x9e   :  { %749 = vmatpush.msrb.mxu1 %v70_v58  ;;  %784 = vmatpush.msra.mxu0 %v218_v59  ;;  %v122_v19 = vld [vmem:[%s5153_s2 + $0x230] sm:$0xff]  ;;  %v167_v57 = vld [vmem:[%s5153_s2 + $0x398] sm:$0xff] }
  0x9f   :  { %768 = vmatpush.msra.mxu3 %v138_v60  ;;  %807 = vmatpush.msrb.mxu2 %v270_v62  ;;  %v254_v20 = vld [vmem:[%s5153_s2 + $0x650] sm:$0xff]  ;;  %v83_v60 = vld [vmem:[%s5153_s2 + $0xf8] sm:$0xff] }
  0xa0   :  { %750 = vmatpush.msrb.mxu1 %v66_v63  ;;  %785 = vmatpush.msra.mxu0 %v214_v0  ;;  %v370_v21 = vld [vmem:[%s5153_s2 + $0x9f0] sm:$0xff]  ;;  %v163_v62 = vld [vmem:[%s5153_s2 + $0x378] sm:$0xff] }
  0xa1   :  { %769 = vmatpush.msra.mxu3 %v134_v1  ;;  %808 = vmatpush.msrb.mxu2 %v266_v4  ;;  %v198_v22 = vld [vmem:[%s5153_s2 + $0x490] sm:$0xff]  ;;  %v79_v1 = vld [vmem:[%s5153_s2 + $0xd8] sm:$0xff] }
  0xa2   :  { %751 = vmatpush.msrb.mxu1 %v62_v5  ;;  %786 = vmatpush.msra.mxu0 %v210_v6  ;;  %v118_v23 = vld [vmem:[%s5153_s2 + $0x210] sm:$0xff]  ;;  %v159_v4 = vld [vmem:[%s5153_s2 + $0x358] sm:$0xff] }
  0xa3   :  { %770 = vmatpush.msra.mxu3 %v130_v10  ;;  %809 = vmatpush.msrb.mxu2 %v262_v11  ;;  %v250_v24 = vld [vmem:[%s5153_s2 + $0x630] sm:$0xff]  ;;  %v75_v10 = vld [vmem:[%s5153_s2 + $0xb8] sm:$0xff] }
  0xa4   :  { %752 = vmatpush.msrb.mxu1 %v58_v13  ;;  %787 = vmatpush.msra.mxu0 %v206_v14  ;;  %v366_v25 = vld [vmem:[%s5153_s2 + $0x9d0] sm:$0xff]  ;;  %v155_v11 = vld [vmem:[%s5153_s2 + $0x338] sm:$0xff] }
  0xa5   :  { %771 = vmatpush.msra.mxu3 %v126_v15  ;;  %810 = vmatpush.msrb.mxu2 %v258_v16  ;;  %v194_v26 = vld [vmem:[%s5153_s2 + $0x470] sm:$0xff]  ;;  %v71_v15 = vld [vmem:[%s5153_s2 + $0x98] sm:$0xff] }
  0xa6   :  { %753 = vmatpush.msrb.mxu1 %v54_v17  ;;  %788 = vmatpush.msra.mxu0 %v202_v18  ;;  %v434_v27 = vld [vmem:[%s5153_s2 + $0xbf0] sm:$0xff]  ;;  %v151_v16 = vld [vmem:[%s5153_s2 + $0x318] sm:$0xff] }
  0xa7   :  { %772 = vmatpush.msra.mxu3 %v122_v19  ;;  %811 = vmatpush.msrb.mxu2 %v254_v20  ;;  %v246_v28 = vld [vmem:[%s5153_s2 + $0x610] sm:$0xff]  ;;  %v67_v19 = vld [vmem:[%s5153_s2 + $0x78] sm:$0xff] }
  0xa8   :  { %818 = vmatpush.msra.mxu1 %v370_v21  ;;  %789 = vmatpush.msra.mxu0 %v198_v22  ;;  %v362_v29 = vld [vmem:[%s5153_s2 + $0x9b0] sm:$0xff]  ;;  %v147_v20 = vld [vmem:[%s5153_s2 + $0x2f8] sm:$0xff] }
  0xa9   :  { %773 = vmatpush.msra.mxu3 %v118_v23  ;;  %812 = vmatpush.msrb.mxu2 %v250_v24  ;;  %v190_v30 = vld [vmem:[%s5153_s2 + $0x450] sm:$0xff]  ;;  %v63_v23 = vld [vmem:[%s5153_s2 + $0x58] sm:$0xff] }
  0xaa   :  { %819 = vmatpush.msra.mxu1 %v366_v25  ;;  %790 = vmatpush.msra.mxu0 %v194_v26  ;;  %v430_v31 = vld [vmem:[%s5153_s2 + $0xbd0] sm:$0xff]  ;;  %v143_v24 = vld [vmem:[%s5153_s2 + $0x2d8] sm:$0xff] }
  0xab   :  { %838 = vmatpush.msrb.mxu3 %v434_v27  ;;  %813 = vmatpush.msrb.mxu2 %v246_v28  ;;  %v358_v33 = vld [vmem:[%s5153_s2 + $0x990] sm:$0xff]  ;;  %v243_v26 = vld [vmem:[%s5153_s2 + $0x5f8] sm:$0xff] }
  0xac   :  { %820 = vmatpush.msra.mxu1 %v362_v29  ;;  %774 = vmatmul.f32.vlgmr.msra.gmra.mxu3 %v2736_v12  ;;  %v186_v34 = vld [vmem:[%s5153_s2 + $0x430] sm:$0xff]  ;;  %v59_v27 = vld [vmem:[%s5153_s2 + $0x38] sm:$0xff] }
  0xad   :  { %v426_v35 = vld [vmem:[%s5153_s2 + $0xbb0] sm:$0xff]  ;;  %791 = vmatpush.msra.mxu0 %v190_v30  ;;  %839 = vmatpush.msrb.mxu3 %v430_v31  ;;  %v139_v28 = vld [vmem:[%s5153_s2 + $0x2b8] sm:$0xff] }
  0xae   :  { %v354_v37 = vld [vmem:[%s5153_s2 + $0x970] sm:$0xff]  ;;  %878 = vmatpush.msra.mxu2 %v115_v32  ;;  %821 = vmatpush.msra.mxu1 %v358_v33  ;;  %v239_v29 = vld [vmem:[%s5153_s2 + $0x5d8] sm:$0xff] }
  0xaf   :  { %v182_v12 = vld [vmem:[%s5153_s2 + $0x410] sm:$0xff]  ;;  %792 = vmatpush.msra.mxu0 %v186_v34  ;;  %840 = vmatpush.msrb.mxu3 %v426_v35  ;;  %v55_v30 = vld [vmem:[%s5153_s2 + $0x18] sm:$0xff] }
  0xb0   :  { %v422_v38 = vld [vmem:[%s5153_s2 + $0xb90] sm:$0xff]  ;;  %879 = vmatpush.msra.mxu2 %v111_v36  ;;  %822 = vmatpush.msra.mxu1 %v354_v37  ;;  %v135_v31 = vld [vmem:[%s5153_s2 + $0x298] sm:$0xff] }
  0xb1   :  { %v350_v40 = vld [vmem:[%s5153_s2 + $0x950] sm:$0xff]  ;;  %754 = vmatmul.f32.vlgmr.msrb.gmra.mxu1 %v2715_v7  ;;  %793 = vmatpush.msra.mxu0 %v182_v12  ;;  %v371_v32 = vld [vmem:[%s5153_s2 + $0x9f8] sm:$0xff] }
  0xb2   :  { %v442_v41 = vld [vmem:[%s5153_s2 + $0xc30] sm:$0xff]  ;;  %814 = vmatmul.f32.vlgmr.msrb.gmra.mxu2 %v2721_v8  ;;  %841 = vmatpush.msrb.mxu3 %v422_v38  ;;  %v99_v8 = vld [vmem:[%s5153_s2 + $0x178] sm:$0xff] }
  0xb3   :  { %v418_v42 = vld [vmem:[%s5153_s2 + $0xb70] sm:$0xff]  ;;  %880 = vmatpush.msra.mxu2 %v107_v39  ;;  %823 = vmatpush.msra.mxu1 %v350_v40  ;;  %v303_v33 = vld [vmem:[%s5153_s2 + $0x7d8] sm:$0xff] }
  0xb4   :  { %v346_v7 = vld [vmem:[%s5153_s2 + $0x930] sm:$0xff]  ;;  %872 = vmatpush.msrb.mxu0 %v442_v41  ;;  %842 = vmatpush.msrb.mxu3 %v418_v42  ;;  %v131_v34 = vld [vmem:[%s5153_s2 + $0x278] sm:$0xff] }
  0xb5   :  { %v438_v44 = vld [vmem:[%s5153_s2 + $0xc10] sm:$0xff]  ;;  %881 = vmatpush.msra.mxu2 %v103_v43  ;;  %824 = vmatpush.msra.mxu1 %v346_v7  ;;  %v367_v35 = vld [vmem:[%s5153_s2 + $0x9d8] sm:$0xff] }
  0xb6   :  { %v414_v45 = vld [vmem:[%s5153_s2 + $0xb50] sm:$0xff]  ;;  %873 = vmatpush.msrb.mxu0 %v438_v44  ;;  %v235_v36 = vld [vmem:[%s5153_s2 + $0x5b8] sm:$0xff] }
  0xb7   :  { %v342_v47 = vld [vmem:[%s5153_s2 + $0x910] sm:$0xff]  ;;  %843 = vmatpush.msrb.mxu3 %v414_v45  ;;  %794 = vmatmul.f32.vlgmr.msra.gmra.mxu0 %v2701_v3  ;;  %v171_v3 = vld [vmem:[%s5153_s2 + $0x3b8] sm:$0xff] }
  0xb8   :  { %v410_v48 = vld [vmem:[%s5153_s2 + $0xb30] sm:$0xff]  ;;  %882 = vmatpush.msra.mxu2 %v99_v8  ;;  %898 = vmatpush.msra.mxu0 %v179_v46  ;;  %v127_v37 = vld [vmem:[%s5153_s2 + $0x258] sm:$0xff] }
  0xb9   :  { %v338_v51 = vld [vmem:[%s5153_s2 + $0x8f0] sm:$0xff]  ;;  %825 = vmatpush.msra.mxu1 %v342_v47  ;;  %844 = vmatpush.msrb.mxu3 %v410_v48  ;;  %v363_v12 = vld [vmem:[%s5153_s2 + $0x9b8] sm:$0xff] }
  0xba   :  { %v406_v52 = vld [vmem:[%s5153_s2 + $0xb10] sm:$0xff]  ;;  %883 = vmatpush.msra.mxu2 %v95_v49  ;;  %899 = vmatpush.msra.mxu0 %v175_v50  ;;  %v295_v38 = vld [vmem:[%s5153_s2 + $0x798] sm:$0xff] }
  0xbb   :  { %v334_v54 = vld [vmem:[%s5153_s2 + $0x8d0] sm:$0xff]  ;;  %826 = vmatpush.msra.mxu1 %v338_v51  ;;  %845 = vmatpush.msrb.mxu3 %v406_v52  ;;  %v231_v39 = vld [vmem:[%s5153_s2 + $0x598] sm:$0xff] }
  0xbc   :  { %v402_v55 = vld [vmem:[%s5153_s2 + $0xaf0] sm:$0xff]  ;;  %884 = vmatpush.msra.mxu2 %v91_v53  ;;  %900 = vmatpush.msra.mxu0 %v171_v3  ;;  %v123_v40 = vld [vmem:[%s5153_s2 + $0x238] sm:$0xff] }
  0xbd   :  { %v330_v58 = vld [vmem:[%s5153_s2 + $0x8b0] sm:$0xff]  ;;  %827 = vmatpush.msra.mxu1 %v334_v54  ;;  %846 = vmatpush.msrb.mxu3 %v402_v55  ;;  %v291_v41 = vld [vmem:[%s5153_s2 + $0x778] sm:$0xff] }
  0xbe   :  { %v398_v59 = vld [vmem:[%s5153_s2 + $0xad0] sm:$0xff]  ;;  %885 = vmatpush.msra.mxu2 %v87_v56  ;;  %901 = vmatpush.msra.mxu0 %v167_v57  ;;  %v227_v42 = vld [vmem:[%s5153_s2 + $0x578] sm:$0xff] }
  0xbf   :  { %v326_v63 = vld [vmem:[%s5153_s2 + $0x890] sm:$0xff]  ;;  %828 = vmatpush.msra.mxu1 %v330_v58  ;;  %847 = vmatpush.msrb.mxu3 %v398_v59  ;;  %v119_v43 = vld [vmem:[%s5153_s2 + $0x218] sm:$0xff] }
  0xc0   :  { %v394_v0 = vld [vmem:[%s5153_s2 + $0xab0] sm:$0xff]  ;;  %886 = vmatpush.msra.mxu2 %v83_v60  ;;  %902 = vmatpush.msra.mxu0 %v163_v62  ;;  %v355_v7 = vld [vmem:[%s5153_s2 + $0x978] sm:$0xff] }
  0xc1   :  { %v322_v5 = vld [vmem:[%s5153_s2 + $0x870] sm:$0xff]  ;;  %829 = vmatpush.msra.mxu1 %v326_v63  ;;  %848 = vmatpush.msrb.mxu3 %v394_v0  ;;  %v287_v44 = vld [vmem:[%s5153_s2 + $0x758] sm:$0xff] }
  0xc2   :  { %v390_v6 = vld [vmem:[%s5153_s2 + $0xa90] sm:$0xff]  ;;  %887 = vmatpush.msra.mxu2 %v79_v1  ;;  %903 = vmatpush.msra.mxu0 %v159_v4  ;;  %v435_v45 = vld [vmem:[%s5153_s2 + $0xbf8] sm:$0xff] }
  0xc3   :  { %v318_v13 = vld [vmem:[%s5153_s2 + $0x850] sm:$0xff]  ;;  %830 = vmatpush.msra.mxu1 %v322_v5  ;;  %849 = vmatpush.msrb.mxu3 %v390_v6  ;;  %v351_v8 = vld [vmem:[%s5153_s2 + $0x958] sm:$0xff] }
  0xc4   :  { %v386_v14 = vld [vmem:[%s5153_s2 + $0xa70] sm:$0xff]  ;;  %888 = vmatpush.msra.mxu2 %v75_v10  ;;  %904 = vmatpush.msra.mxu0 %v155_v11  ;;  %v223_v46 = vld [vmem:[%s5153_s2 + $0x558] sm:$0xff] }
  0xc5   :  { %v314_v17 = vld [vmem:[%s5153_s2 + $0x830] sm:$0xff]  ;;  %831 = vmatpush.msra.mxu1 %v318_v13  ;;  %850 = vmatpush.msrb.mxu3 %v386_v14  ;;  %v283_v47 = vld [vmem:[%s5153_s2 + $0x738] sm:$0xff] }
  0xc6   :  { %v382_v18 = vld [vmem:[%s5153_s2 + $0xa50] sm:$0xff]  ;;  %889 = vmatpush.msra.mxu2 %v71_v15  ;;  %905 = vmatpush.msra.mxu0 %v151_v16  ;;  %v431_v48 = vld [vmem:[%s5153_s2 + $0xbd8] sm:$0xff] }
  0xc7   :  { %v310_v21 = vld [vmem:[%s5153_s2 + $0x810] sm:$0xff]  ;;  %832 = vmatpush.msra.mxu1 %v314_v17  ;;  %851 = vmatpush.msrb.mxu3 %v382_v18  ;;  %v347_v49 = vld [vmem:[%s5153_s2 + $0x938] sm:$0xff] }
  0xc8   :  { %v378_v22 = vld [vmem:[%s5153_s2 + $0xa30] sm:$0xff]  ;;  %890 = vmatpush.msra.mxu2 %v67_v19  ;;  %906 = vmatpush.msra.mxu0 %v147_v20  ;;  %v219_v50 = vld [vmem:[%s5153_s2 + $0x538] sm:$0xff]  ;;  %v2420_v20 = vld [vmem:[%s5154_s0] sm:$0xff] }
  0xc9   :  { %833 = vmatpush.msra.mxu1 %v310_v21  ;;  %v374_v25 = vld [vmem:[%s5153_s2 + $0xa10] sm:$0xff]  ;;  %852 = vmatpush.msrb.mxu3 %v378_v22  ;;  %v279_v51 = vld [vmem:[%s5153_s2 + $0x718] sm:$0xff] }
  0xca   :  { %834 = vmatmul.f32.vlgmr.msra.gmra.mxu1 %v2906_v2  ;;  %891 = vmatpush.msra.mxu2 %v63_v23  ;;  %v307_v2 = vld [vmem:[%s5153_s2 + $0x7f8] sm:$0xff] }
  0xcb   :  { %907 = vmatpush.msra.mxu0 %v143_v24  ;;  %853 = vmatpush.msrb.mxu3 %v374_v25  ;;  %v427_v52 = vld [vmem:[%s5153_s2 + $0xbb8] sm:$0xff] }
  0xcc   :  { %918 = vmatpush.msrb.mxu1 %v243_v26  ;;  %892 = vmatpush.msra.mxu2 %v59_v27  ;;  %v343_v53 = vld [vmem:[%s5153_s2 + $0x918] sm:$0xff]  ;;  %v3708_v27 = vld [vmem:[%s5155_s3] sm:$0xf] }
  0xcd   :  { %908 = vmatpush.msra.mxu0 %v139_v28  ;;  %854 = vmatmul.f32.vlgmr.msrb.gmra.mxu3 %v2920_v9  ;;  %v299_v9 = vld [vmem:[%s5153_s2 + $0x7b8] sm:$0xff] }
  0xce   :  { %919 = vmatpush.msrb.mxu1 %v239_v29  ;;  %938 = vmatpush.msra.mxu3 %v307_v2  ;;  %v215_v3 = vld [vmem:[%s5153_s2 + $0x518] sm:$0xff] }
  0xcf   :  { %893 = vmatpush.msra.mxu2 %v55_v30  ;;  %909 = vmatpush.msra.mxu0 %v135_v31  ;;  %v275_v54 = vld [vmem:[%s5153_s2 + $0x6f8] sm:$0xff]  ;;  %v446_v31 = vperm.slane %v3708_v27, 0 }
  0xd0   :  { %939 = vmatpush.msra.mxu3 %v303_v33  ;;  %2376 = vmatmul.msk.f32.vlgmr.msrb.gmra.mxu0 %vm454_vm0, %v2887_v61  ;;  %v359_v61 = vld [vmem:[%s5153_s2 + $0x998] sm:$0xff]  ;;  %v1036_v33 = vld [vmem:[%s5156_s4 + $0x70] sm:$0xff] }
  0xd1   :  { %958 = vmatpush.msrb.mxu2 %v371_v32  ;;  %910 = vmatpush.msra.mxu0 %v131_v34  ;;  %v423_v55 = vld [vmem:[%s5153_s2 + $0xb98] sm:$0xff]  ;;  %v475_v34 = vpop.f32.mrf.mxu0 }
  0xd2   :  { %940 = vmatpush.msra.mxu3 %v299_v9  ;;  %920 = vmatpush.msrb.mxu1 %v235_v36  ;;  %v339_v56 = vld [vmem:[%s5153_s2 + $0x8f8] sm:$0xff]  ;;  %v2422_v36 = vld [vmem:[%s5154_s0 + $0x20] sm:$0xff] }
  0xd3   :  { %959 = vmatpush.msrb.mxu2 %v367_v35  ;;  %911 = vmatpush.msra.mxu0 %v127_v37  ;;  %v211_v57 = vld [vmem:[%s5153_s2 + $0x4f8] sm:$0xff]  ;;  %v1035_v37 = vld [vmem:[%s5156_s4 + $0x68] sm:$0xff] }
  0xd4   :  { %941 = vmatpush.msra.mxu3 %v295_v38  ;;  %921 = vmatpush.msrb.mxu1 %v231_v39  ;;  %v271_v58 = vld [vmem:[%s5153_s2 + $0x6d8] sm:$0xff] }
  0xd5   :  { %960 = vmatpush.msrb.mxu2 %v363_v12  ;;  %912 = vmatpush.msra.mxu0 %v123_v40  ;;  %v419_v59 = vld [vmem:[%s5153_s2 + $0xb78] sm:$0xff]  ;;  %v2423_v12 = vld [vmem:[%s5154_s0 + $0x8] sm:$0xff]  ;;  %v476_v40 = vadd.f32 %v475_v34, %v446_v31 }
  0xd6   :  { %942 = vmatpush.msra.mxu3 %v291_v41  ;;  %922 = vmatpush.msrb.mxu1 %v227_v42  ;;  %v335_v60 = vld [vmem:[%s5153_s2 + $0x8d8] sm:$0xff]  ;;  %v495_v41 = vpop.f32.mrf.mxu1  ;;  %v535_v42 = vpop.f32.mrf.mxu3 }
  0xd7   :  { %961 = vmatpush.msrb.mxu2 %v359_v61  ;;  %913 = vmatpush.msra.mxu0 %v119_v43  ;;  %v207_v62 = vld [vmem:[%s5153_s2 + $0x4d8] sm:$0xff]  ;;  %v1034_v61 = vld [vmem:[%s5156_s4 + $0x60] sm:$0xff]  ;;  %v2424_v43 = vld [vmem:[%s5154_s0 + $0x10] sm:$0xff] }
  0xd8   :  { %943 = vmatpush.msra.mxu3 %v287_v44  ;;  %923 = vmatpush.msrb.mxu1 %v223_v46  ;;  %v267_v63 = vld [vmem:[%s5153_s2 + $0x6b8] sm:$0xff] }
  0xd9   :  { %962 = vmatpush.msrb.mxu2 %v355_v7  ;;  %978 = vmatpush.msrb.mxu0 %v435_v45  ;;  %v415_v0 = vld [vmem:[%s5153_s2 + $0xb58] sm:$0xff] }
  0xda   :  { %944 = vmatpush.msra.mxu3 %v283_v47  ;;  %924 = vmatpush.msrb.mxu1 %v219_v50  ;;  %v331_v1 = vld [vmem:[%s5153_s2 + $0x8b8] sm:$0xff]  ;;  %v496_v47 = vadd.f32 %v495_v41, %v476_v40  ;;  %v1052_v50 = vld [vmem:[%s5156_s4 + $0xf0] sm:$0xff] }
  0xdb   :  { %963 = vmatpush.msrb.mxu2 %v351_v8  ;;  %979 = vmatpush.msrb.mxu0 %v431_v48  ;;  %v203_v4 = vld [vmem:[%s5153_s2 + $0x4b8] sm:$0xff]  ;;  %v1032_v48 = vld [vmem:[%s5156_s4 + $0x50] sm:$0xff] }
  0xdc   :  { %945 = vmatpush.msra.mxu3 %v279_v51  ;;  %925 = vmatpush.msrb.mxu1 %v215_v3  ;;  %v263_v5 = vld [vmem:[%s5153_s2 + $0x698] sm:$0xff]  ;;  %v1031_v51 = vld [vmem:[%s5156_s4 + $0x48] sm:$0xff] }
  0xdd   :  { %964 = vmatpush.msrb.mxu2 %v347_v49  ;;  %980 = vmatpush.msrb.mxu0 %v427_v52  ;;  %v411_v6 = vld [vmem:[%s5153_s2 + $0xb38] sm:$0xff]  ;;  %v515_v49 = vpop.f32.mrf.mxu2  ;;  %v2425_v52 = vld [vmem:[%s5154_s0 + $0x28] sm:$0xff] }
  0xde   :  { %946 = vmatpush.msra.mxu3 %v275_v54  ;;  %926 = vmatpush.msrb.mxu1 %v211_v57  ;;  %v327_v10 = vld [vmem:[%s5153_s2 + $0x898] sm:$0xff]  ;;  %v516_v3 = vadd.f32 %v515_v49, %v496_v47  ;;  %v1030_v54 = vld [vmem:[%s5156_s4 + $0x40] sm:$0xff]  ;;  %v1059_v49 = vld [vmem:[%s5156_s4 + $0x128] sm:$0xff] }
  0xdf   :  { %965 = vmatpush.msrb.mxu2 %v343_v53  ;;  %981 = vmatpush.msrb.mxu0 %v423_v55  ;;  %v199_v11 = vld [vmem:[%s5153_s2 + $0x498] sm:$0xff]  ;;  %v1051_v53 = vld [vmem:[%s5156_s4 + $0xe8] sm:$0xff]  ;;  %v595_v55 = vpop.f32.mrf.mxu3  ;;  %v1050_v57 = vld [vmem:[%s5156_s4 + $0xe0] sm:$0xff] }
  0xe0   :  { %947 = vmatpush.msra.mxu3 %v271_v58  ;;  %927 = vmatpush.msrb.mxu1 %v207_v62  ;;  %v259_v13 = vld [vmem:[%s5153_s2 + $0x678] sm:$0xff]  ;;  %v536_v62 = vadd.f32 %v535_v42, %v516_v3  ;;  %v1068_v42 = vld [vmem:[%s5156_s4 + $0x170] sm:$0xff]  ;;  %v1054_v3 = vld [vmem:[%s5156_s4 + $0x100] sm:$0xff] }
  0xe1   :  { %966 = vmatpush.msrb.mxu2 %v339_v56  ;;  %982 = vmatpush.msrb.mxu0 %v419_v59  ;;  %v407_v14 = vld [vmem:[%s5153_s2 + $0xb18] sm:$0xff]  ;;  %v2426_v56 = vld [vmem:[%s5154_s0 + $0x30] sm:$0xff] }
  0xe2   :  { %948 = vmatpush.msra.mxu3 %v267_v63  ;;  %928 = vmatpush.msrb.mxu1 %v203_v4  ;;  %v195_v15 = vld [vmem:[%s5153_s2 + $0x478] sm:$0xff]  ;;  %v555_v59 = vpop.f32.mrf.mxu0  ;;  %v1028_v63 = vld [vmem:[%s5156_s4 + $0x30] sm:$0xff]  ;;  %v1027_v4 = vld [vmem:[%s5156_s4 + $0x28] sm:$0xff] }
  0xe3   :  { %967 = vmatpush.msrb.mxu2 %v335_v60  ;;  %983 = vmatpush.msrb.mxu0 %v415_v0  ;;  %v255_v16 = vld [vmem:[%s5153_s2 + $0x658] sm:$0xff]  ;;  %v1048_v0 = vld [vmem:[%s5156_s4 + $0xd0] sm:$0xff] }
  0xe4   :  { %949 = vmatpush.msra.mxu3 %v263_v5  ;;  %929 = vmatpush.msrb.mxu1 %v199_v11  ;;  %v323_v17 = vld [vmem:[%s5153_s2 + $0x878] sm:$0xff]  ;;  %v447_v5 = vperm.slane %v3708_v27, 1  ;;  %v1026_v11 = vld [vmem:[%s5156_s4 + $0x20] sm:$0xff] }
  0xe5   :  { %968 = vmatpush.msrb.mxu2 %v331_v1  ;;  %984 = vmatpush.msrb.mxu0 %v411_v6  ;;  %v403_v18 = vld [vmem:[%s5153_s2 + $0xaf8] sm:$0xff]  ;;  %v556_v1 = vadd.f32 %v555_v59, %v536_v62  ;;  %v575_v6 = vpop.f32.mrf.mxu1 }
  0xe6   :  { %950 = vmatpush.msra.mxu3 %v259_v13  ;;  %v191_v19 = vld [vmem:[%s5153_s2 + $0x458] sm:$0xff]  ;;  %894 = vmatmul.f32.vlgmr.msra.gmra.mxu2 %v2420_v20 }
  0xe7   :  { %969 = vmatpush.msrb.mxu2 %v327_v10  ;;  %985 = vmatpush.msrb.mxu0 %v407_v14  ;;  %v251_v21 = vld [vmem:[%s5153_s2 + $0x638] sm:$0xff]  ;;  %v1047_v10 = vld [vmem:[%s5156_s4 + $0xc8] sm:$0xff]  ;;  %v1046_v14 = vld [vmem:[%s5156_s4 + $0xc0] sm:$0xff] }
  0xe8   :  { %930 = vmatpush.msrb.mxu1 %v195_v15  ;;  %v319_v22 = vld [vmem:[%s5153_s2 + $0x858] sm:$0xff]  ;;  %951 = vmatpush.msra.mxu3 %v255_v16  ;;  %v576_v15 = vadd.f32 %v575_v6, %v556_v1 }
  0xe9   :  { %970 = vmatpush.msrb.mxu2 %v323_v17  ;;  %v399_v23 = vld [vmem:[%s5153_s2 + $0xad8] sm:$0xff]  ;;  %986 = vmatpush.msrb.mxu0 %v403_v18 }
  0xea   :  { %v187_v24 = vld [vmem:[%s5153_s2 + $0x438] sm:$0xff]  ;;  %931 = vmatpush.msrb.mxu1 %v191_v19  ;;  %952 = vmatpush.msra.mxu3 %v251_v21  ;;  %v1024_v19 = vld [vmem:[%s5156_s4 + $0x10] sm:$0xff] }
  0xeb   :  { %v247_v25 = vld [vmem:[%s5153_s2 + $0x618] sm:$0xff]  ;;  %971 = vmatpush.msrb.mxu2 %v319_v22  ;;  %987 = vmatpush.msrb.mxu0 %v399_v23  ;;  %v1044_v22 = vld [vmem:[%s5156_s4 + $0xb0] sm:$0xff]  ;;  %v596_v23 = vadd.f32 %v595_v55, %v576_v15  ;;  %v1160_v15 = vld [vmem:[%s5158_s6 + $0x8] sm:$0x3] }
  0xec   :  { %v315_v26 = vld [vmem:[%s5153_s2 + $0x838] sm:$0xff]  ;;  %932 = vmatpush.msrb.mxu1 %v187_v24  ;;  %953 = vmatpush.msra.mxu3 %v247_v25  ;;  %v1023_v24 = vld [vmem:[%s5156_s4 + $0x8] sm:$0xff] }
  0xed   :  { %v395_v28 = vld [vmem:[%s5153_s2 + $0xab8] sm:$0xff]  ;;  %972 = vmatpush.msrb.mxu2 %v315_v26  ;;  %914 = vmatmul.f32.vlgmr.msra.gmra.mxu0 %v2423_v12  ;;  %v1043_v26 = vld [vmem:[%s5156_s4 + $0xa8] sm:$0xff] }
  0xee   :  { %v1037_v29 = vld [vmem:[%s5156_s4 + $0x78] sm:$0xff]  ;;  %988 = vmatpush.msrb.mxu0 %v395_v28  ;;  %v1022_v28 = vld [vmem:[%s5156_s4] sm:$0xff]  ;;  %v1039_v12 = vld [vmem:[%s5156_s4 + $0x88] sm:$0xff] }
  0xef   :  { %v311_v2 = vld [vmem:[%s5153_s2 + $0x818] sm:$0xff]  ;;  %1079 = vmatpush.msrb.mxu3 %v1037_v29 }
  0xf0   :  { %v391_v30 = vld [vmem:[%s5153_s2 + $0xa98] sm:$0xff]  ;;  %973 = vmatpush.msrb.mxu2 %v311_v2  ;;  %v1042_v2 = vld [vmem:[%s5156_s4 + $0xa0] sm:$0xff] }
  0xf1   :  { %v2421_v32 = vld [vmem:[%s5154_s0 + $0x18] sm:$0xff]  ;;  %989 = vmatpush.msrb.mxu0 %v391_v30  ;;  %974 = vmatmul.f32.vlgmr.msrb.gmra.mxu2 %v2422_v36  ;;  %v1018_v30 = vmax.f32 %v596_v23, 0.0  ;;  %v1040_v36 = vld [vmem:[%s5156_s4 + $0x90] sm:$0xff] }
  0xf2   :  { %954 = vmatmul.f32.vlgmr.msra.gmra.mxu3 %v2421_v32  ;;  %v183_v35 = vld [vmem:[%s5153_s2 + $0x418] sm:$0xff] }
  0xf3   :  { %v387_v9 = vld [vmem:[%s5153_s2 + $0xa78] sm:$0xff]  ;;  %1080 = vmatpush.msrb.mxu3 %v1036_v33  ;;  %933 = vmatpush.msrb.mxu1 %v183_v35 }
  0xf4   :  { %v383_v38 = vld [vmem:[%s5153_s2 + $0xa58] sm:$0xff]  ;;  %990 = vmatpush.msrb.mxu0 %v387_v9  ;;  %934 = vmatmul.f32.vlgmr.msrb.gmra.mxu1 %v2424_v43  ;;  %v1067_v43 = vld [vmem:[%s5156_s4 + $0x168] sm:$0xff] }
  0xf5   :  { %v443_v39 = vld [vmem:[%s5153_s2 + $0xc38] sm:$0xff]  ;;  %1081 = vmatpush.msrb.mxu3 %v1035_v37 }
  0xf6   :  { %v379_v7 = vld [vmem:[%s5153_s2 + $0xa38] sm:$0xff]  ;;  %991 = vmatpush.msrb.mxu0 %v383_v38  ;;  %1012 = vmatpush.msra.mxu1 %v443_v39  ;;  %v1038_v39 = vld [vmem:[%s5156_s4 + $0x80] sm:$0xff] }
  0xf7   :  { %v439_v44 = vld [vmem:[%s5153_s2 + $0xc18] sm:$0xff]  ;;  %1082 = vmatpush.msrb.mxu3 %v1034_v61 }
  0xf8   :  { %v1033_v45 = vld [vmem:[%s5156_s4 + $0x58] sm:$0xff]  ;;  %992 = vmatpush.msrb.mxu0 %v379_v7  ;;  %1013 = vmatpush.msra.mxu1 %v439_v44  ;;  %v1066_v7 = vld [vmem:[%s5156_s4 + $0x160] sm:$0xff] }
  0xf9   :  { %v1053_v8 = vld [vmem:[%s5156_s4 + $0xf8] sm:$0xff]  ;;  %1083 = vmatpush.msrb.mxu3 %v1033_v45  ;;  %v1064_v45 = vld [vmem:[%s5156_s4 + $0x150] sm:$0xff] }
  0xfa   :  { %v375_v46 = vld [vmem:[%s5153_s2 + $0xa18] sm:$0xff]  ;;  %1099 = vmatpush.msrb.mxu1 %v1053_v8  ;;  %v1063_v8 = vld [vmem:[%s5156_s4 + $0x148] sm:$0xff] }
  0xfb   :  { %993 = vmatpush.msrb.mxu0 %v375_v46  ;;  %1084 = vmatpush.msrb.mxu3 %v1032_v48  ;;  %v1029_v58 = vld [vmem:[%s5156_s4 + $0x38] sm:$0xff]  ;;  %v1062_v46 = vld [vmem:[%s5156_s4 + $0x140] sm:$0xff]  ;;  %v1060_v48 = vld [vmem:[%s5156_s4 + $0x130] sm:$0xff] }
  0xfc   :  { %994 = vmatmul.f32.vlgmr.msrb.gmra.mxu0 %v2425_v52  ;;  %1100 = vmatpush.msrb.mxu1 %v1052_v50  ;;  %v1049_v60 = vld [vmem:[%s5156_s4 + $0xd8] sm:$0xff]  ;;  %v1058_v50 = vld [vmem:[%s5156_s4 + $0x120] sm:$0xff]  ;;  %v1056_v52 = vld [vmem:[%s5156_s4 + $0x110] sm:$0xff] }
  0xfd   :  { %2377 = vmatmul.msk.f32.vlgmr.msra.gmra.mxu1 %vm454_vm0, %v2426_v56  ;;  %1085 = vmatpush.msrb.mxu3 %v1031_v51  ;;  %v1025_v16 = vld [vmem:[%s5156_s4 + $0x18] sm:$0xff] }
  0xfe   :  { %1101 = vmatpush.msrb.mxu1 %v1051_v53  ;;  %v1045_v18 = vld [vmem:[%s5156_s4 + $0xb8] sm:$0xff]  ;;  %v1055_v53 = vld [vmem:[%s5156_s4 + $0x108] sm:$0xff] }
  0xff   :  { %1086 = vmatpush.msrb.mxu3 %v1030_v54  ;;  %v1041_v34 = vld [vmem:[%s5156_s4 + $0x98] sm:$0xff]  ;;  %v448_v54 = vperm.slane %v3708_v27, 2 }
 0x100   :  { %1102 = vmatpush.msrb.mxu1 %v1050_v57  ;;  %v1069_v41 = vld [vmem:[%s5156_s4 + $0x178] sm:$0xff] }
 0x101   :  { %1087 = vmatpush.msrb.mxu3 %v1029_v58  ;;  %v615_v13 = vpop.f32.mrf.mxu3  ;;  %1119 = vmatpush.msra.mxu2 %v1069_v41  ;;  %v1065_v44 = vld [vmem:[%s5156_s4 + $0x158] sm:$0xff] }
 0x102   :  { %1103 = vmatpush.msrb.mxu1 %v1049_v60  ;;  %v616_v17 = vadd.f32 %v615_v13, %v447_v5  ;;  %v1061_v47 = vld [vmem:[%s5156_s4 + $0x138] sm:$0xff]  ;;  %v1071_v13 = vld [vmem:[%s5156_s4 + $0x188] sm:$0xff] }
 0x103   :  { %1088 = vmatpush.msrb.mxu3 %v1028_v63  ;;  %v635_v20 = vpop.f32.mrf.mxu2  ;;  %1120 = vmatpush.msra.mxu2 %v1068_v42  ;;  %v1057_v51 = vld [vmem:[%s5156_s4 + $0x118] sm:$0xff]  ;;  %v1215_v42 = vld [vmem:[%s5162_s9 + $0x50] sm:$0xf] }
 0x104   :  { %1104 = vmatpush.msrb.mxu1 %v1048_v0  ;;  %v636_v21 = vadd.f32 %v635_v20, %v616_v17  ;;  %v675_v31 = vpop.f32.mrf.mxu1  ;;  %1153 = vmatpush.msra.mxu0 %v1071_v13  ;;  %v449_v17 = vperm.slane %v3708_v27, 3  ;;  %v51_v27 = vld [vmem:[%s5160_s1] sm:$0xff]  ;;  %v1208_v41 = vld [vmem:[%s5162_s9 + $0x18] sm:$0xff]  ;;  %v1644_v13 = vld [vmem:[%s5163_s11 + $0x6c8] sm:$0xff] }
 0x105   :  { %1089 = vmatpush.msrb.mxu3 %v1027_v4  ;;  %1121 = vmatpush.msra.mxu2 %v1067_v43  ;;  %v1202_v43 = vld [vmem:[%s5161_s8 + $0x48] sm:$0xf] }
 0x106   :  { %1105 = vmatpush.msrb.mxu1 %v1047_v10 }
 0x107   :  { %1090 = vmatpush.msrb.mxu3 %v1026_v11  ;;  %1122 = vmatpush.msra.mxu2 %v1066_v7  ;;  %v1204_v7 = vld [vmem:[%s5161_s8 + $0x58] sm:$0xf] }
 0x108   :  { %1106 = vmatpush.msrb.mxu1 %v1046_v14  ;;  %v655_v25 = vpop.f32.mrf.mxu0  ;;  %v1070_v14 = vld [vmem:[%s5156_s4 + $0x180] sm:$0xff] }
 0x109   :  { %1091 = vmatpush.msrb.mxu3 %v1025_v16  ;;  %v656_v29 = vadd.f32 %v655_v25, %v636_v21  ;;  %1123 = vmatpush.msra.mxu2 %v1065_v44  ;;  %v1159_v16 = vld [vmem:[%s5158_s6] sm:$0xff]  ;;  %v1211_v44 = vld [vmem:[%s5162_s9 + $0x30] sm:$0xff] }
 0x10a   :  { %1107 = vmatpush.msrb.mxu1 %v1045_v18  ;;  %1154 = vmatpush.msra.mxu0 %v1070_v14  ;;  %v1199_v14 = vld [vmem:[%s5161_s8 + $0x30] sm:$0xff] }
 0x10b   :  { %1092 = vmatpush.msrb.mxu3 %v1024_v19  ;;  %v676_v33 = vadd.f32 %v675_v31, %v656_v29  ;;  %1124 = vmatpush.msra.mxu2 %v1064_v45  ;;  %v1198_v45 = vld [vmem:[%s5161_s8 + $0x28] sm:$0xff] }
 0x10c   :  { %1108 = vmatpush.msrb.mxu1 %v1044_v22  ;;  %v695_v32 = vpop.f32.mrf.mxu3  ;;  %2379 = vmatpush.msk.msrb.mxu0 %vm1169_vm1, %v1160_v15  ;;  %v1770_v15 = vld [vmem:[%s5163_s11 + $0xab8] sm:$0xff] }
 0x10d   :  { %1093 = vmatpush.msrb.mxu3 %v1023_v24  ;;  %v696_v35 = vadd.f32 %v695_v32, %v676_v33  ;;  %1125 = vmatpush.msra.mxu2 %v1063_v8  ;;  %v1201_v33 = vld [vmem:[%s5161_s8 + $0x40] sm:$0xf]  ;;  %v1200_v8 = vld [vmem:[%s5161_s8 + $0x38] sm:$0xff] }
 0x10e   :  { %1109 = vmatpush.msrb.mxu1 %v1043_v26  ;;  %1188 = vmatpush.msrb.mxu0 %v1159_v16  ;;  %v1469_v16 = vld [vmem:[%s5163_s11 + $0x150] sm:$0xff] }
 0x10f   :  { %1094 = vmatpush.msrb.mxu3 %v1022_v28  ;;  %v715_v9 = vpop.f32.mrf.mxu2  ;;  %1126 = vmatpush.msra.mxu2 %v1062_v46  ;;  %v1207_v46 = vld [vmem:[%s5162_s9 + $0x10] sm:$0xff] }
 0x110   :  { %1095 = vmatmul.f32.vlgmr.msrb.gmra.mxu3 %v1018_v30  ;;  %1110 = vmatpush.msrb.mxu1 %v1042_v2  ;;  %v716_v37 = vadd.f32 %v715_v9, %v696_v35  ;;  %v1193_v35 = vld [vmem:[%s5161_s8] sm:$0xff] }
 0x111   :  { %1127 = vmatpush.msra.mxu2 %v1061_v47  ;;  %v1213_v9 = vld [vmem:[%s5162_s9 + $0x40] sm:$0xf]  ;;  %v1194_v47 = vld [vmem:[%s5161_s8 + $0x8] sm:$0xff] }
 0x112   :  { %1111 = vmatpush.msrb.mxu1 %v1041_v34  ;;  %v735_v38 = vpop.f32.mrf.mxu0  ;;  %v1197_v34 = vld [vmem:[%s5161_s8 + $0x20] sm:$0xff] }
 0x113   :  { %v736_v40 = vadd.f32 %v735_v38, %v716_v37  ;;  %1128 = vmatpush.msra.mxu2 %v1060_v48  ;;  %v1216_v37 = vld [vmem:[%s5162_s9 + $0x58] sm:$0xf]  ;;  %v1210_v38 = vld [vmem:[%s5162_s9 + $0x28] sm:$0xff] }
 0x114   :  { %1112 = vmatpush.msrb.mxu1 %v1040_v36  ;;  %v1214_v36 = vld [vmem:[%s5162_s9 + $0x48] sm:$0xf]  ;;  %v1196_v48 = vld [vmem:[%s5161_s8 + $0x18] sm:$0xff] }
 0x115   :  { %v1019_v61 = vmax.f32 %v736_v40, 0.0  ;;  %1129 = vmatpush.msra.mxu2 %v1059_v49  ;;  %2383 = vmatpush.msk.msra.mxu3 %vm1221_vm3, %v1214_v36  ;;  %v1205_v40 = vld [vmem:[%s5162_s9] sm:$0xff]  ;;  %v1645_v36 = vld [vmem:[%s5163_s11 + $0x6d0] sm:$0xff] }
 0x116   :  { %1113 = vmatpush.msrb.mxu1 %v1039_v12  ;;  %v1209_v12 = vld [vmem:[%s5162_s9 + $0x20] sm:$0xff] }
 0x117   :  { %1130 = vmatpush.msra.mxu2 %v1058_v50  ;;  %1268 = vmatpush.msra.mxu3 %v1210_v38  ;;  %v2404_v49 = vld [vmem:[%s5157_s5] ss:$0 sm:$0xff] }
 0x118   :  { %1114 = vmatpush.msrb.mxu1 %v1038_v39  ;;  %v1212_v39 = vld [vmem:[%s5162_s9 + $0x38] sm:$0xff]  ;;  %v1735_v38 = vld [vmem:[%s5163_s11 + $0x9a0] sm:$0xff] }
 0x119   :  { %1115 = vmatmul.f32.vlgmr.msrb.gmra.mxu1 %v1019_v61  ;;  %1131 = vmatpush.msra.mxu2 %v1057_v51  ;;  %v1206_v61 = vld [vmem:[%s5162_s9 + $0x8] sm:$0xff] }
 0x11a   :  { %2387 = vmatpush.msk.msra.mxu1 %vm1221_vm3, %v1216_v37  ;;  %1269 = vmatpush.msra.mxu3 %v1206_v61  ;;  %v1595_v37 = vld [vmem:[%s5163_s11 + $0x540] sm:$0xff]  ;;  %v1498_v61 = vld [vmem:[%s5163_s11 + $0x238] sm:$0xff] }
 0x11b   :  { %1132 = vmatpush.msra.mxu2 %v1056_v52 }
 0x11c   :  { %1308 = vmatpush.msra.mxu1 %v1212_v39  ;;  %2391 = vmatpush.msk.msrb.mxu3 %vm1221_vm3, %v1202_v43  ;;  %v1638_v39 = vld [vmem:[%s5163_s11 + $0x698] sm:$0xff]  ;;  %v1581_v43 = vld [vmem:[%s5163_s11 + $0x4d0] sm:$0xff] }
 0x11d   :  { %1133 = vmatpush.msra.mxu2 %v1055_v53  ;;  %v1532_v53 = vld [vmem:[%s5163_s11 + $0x348] sm:$0xff] }
 0x11e   :  { %1309 = vmatpush.msra.mxu1 %v1208_v41  ;;  %1363 = vmatpush.msrb.mxu3 %v1198_v45  ;;  %v1728_v41 = vld [vmem:[%s5163_s11 + $0x968] sm:$0xff]  ;;  %v1574_v45 = vld [vmem:[%s5163_s11 + $0x498] sm:$0xff] }
 0x11f   :  { %1134 = vmatpush.msra.mxu2 %v1054_v3  ;;  %v1525_v3 = vld [vmem:[%s5163_s11 + $0x310] sm:$0xff] }
 0x120   :  { %2395 = vmatpush.msk.msrb.mxu1 %vm1221_vm3, %v1204_v7  ;;  %1364 = vmatpush.msrb.mxu3 %v1194_v47  ;;  %v1491_v7 = vld [vmem:[%s5163_s11 + $0x200] sm:$0xff]  ;;  %v1610_v47 = vld [vmem:[%s5163_s11 + $0x5b8] sm:$0xff] }
 0x121   :  { %2389 = vmatpush.msk.msrb.mxu2 %vm1221_vm3, %v1201_v33  ;;  %v1742_v33 = vld [vmem:[%s5163_s11 + $0x9d8] sm:$0xff] }
 0x122   :  { %1403 = vmatpush.msrb.mxu1 %v1200_v8  ;;  %v1617_v8 = vld [vmem:[%s5163_s11 + $0x5f0] sm:$0xff] }
 0x123   :  { %1343 = vmatpush.msrb.mxu2 %v1197_v34  ;;  %v1602_v34 = vld [vmem:[%s5163_s11 + $0x578] sm:$0xff] }
 0x124   :  { %1404 = vmatpush.msrb.mxu1 %v1196_v48  ;;  %v1560_v48 = vld [vmem:[%s5163_s11 + $0x428] sm:$0xff] }
 0x125   :  { %1344 = vmatpush.msrb.mxu2 %v1193_v35  ;;  %v1427_v35 = vld [vmem:[%s5163_s11] sm:$0xff] }
 0x12e   :  { %v755_v55 = vpop.f32.mrf.mxu1 }
 0x12f   :  { %v756_v56 = vadd.f32 %v755_v55, %v448_v54  ;;  %v775_v57 = vpop.f32.mrf.mxu3 }
 0x131   :  { %v776_v58 = vadd.f32 %v775_v57, %v756_v56  ;;  %v1518_v56 = vld [vmem:[%s5163_s11 + $0x2d8] sm:$0xff] }
 0x134   :  { %v795_v59 = vpop.f32.mrf.mxu0 }
 0x135   :  { %v796_v60 = vadd.f32 %v795_v59, %v776_v58  ;;  %v815_v62 = vpop.f32.mrf.mxu2  ;;  %v1511_v58 = vld [vmem:[%s5163_s11 + $0x2a0] sm:$0xff] }
 0x137   :  { %v816_v0 = vadd.f32 %v815_v62, %v796_v60  ;;  %v1504_v62 = vld [vmem:[%s5163_s11 + $0x268] sm:$0xff] }
 0x147   :  { %v835_v63 = vpop.f32.mrf.mxu1 }
 0x148   :  { %v836_v1 = vadd.f32 %v835_v63, %v816_v0  ;;  %v1497_v63 = vld [vmem:[%s5163_s11 + $0x230] sm:$0xff]  ;;  %v2405_v0 = vld [vmem:[%s5159_s7] ss:$0 sm:$0xff] }
 0x14d   :  { %v875_v5 = vpop.f32.mrf.mxu0 }
 0x150   :  { %v855_v4 = vpop.f32.mrf.mxu3 }
 0x151   :  { %v856_v6 = vadd.f32 %v855_v4, %v836_v1  ;;  %v1490_v1 = vld [vmem:[%s5163_s11 + $0x1f8] sm:$0xff]  ;;  %v1483_v4 = vld [vmem:[%s5163_s11 + $0x1c0] sm:$0xff] }
 0x153   :  { %v876_v10 = vadd.f32 %v875_v5, %v856_v6 }
 0x155   :  { %v1020_v11 = vmax.f32 %v876_v10, 0.0  ;;  %v1203_v10 = vld [vmem:[%s5161_s8 + $0x50] sm:$0xf] }
 0x157   :  { %1135 = vmatmul.f32.vlgmr.msra.gmra.mxu2 %v1020_v11  ;;  %v1476_v11 = vld [vmem:[%s5163_s11 + $0x188] sm:$0xff] }
 0x158   :  { %1796 = vmatpush.msra.mxu2 %v1532_v53  ;;  %v1589_v53 = vld [vmem:[%s5163_s11 + $0x510] sm:$0xff] }
 0x15a   :  { %1797 = vmatpush.msra.mxu2 %v1525_v3  ;;  %v1539_v3 = vld [vmem:[%s5163_s11 + $0x380] sm:$0xff] }
 0x15c   :  { %1798 = vmatpush.msra.mxu2 %v1518_v56  ;;  %v1750_v56 = vld [vmem:[%s5163_s11 + $0xa18] sm:$0xff] }
 0x15e   :  { %1799 = vmatpush.msra.mxu2 %v1511_v58  ;;  %v1484_v58 = vld [vmem:[%s5163_s11 + $0x1c8] sm:$0xff] }
 0x160   :  { %1800 = vmatpush.msra.mxu2 %v1504_v62  ;;  %v1743_v62 = vld [vmem:[%s5163_s11 + $0x9e0] sm:$0xff] }
 0x162   :  { %1801 = vmatpush.msra.mxu2 %v1497_v63  ;;  %v1477_v63 = vld [vmem:[%s5163_s11 + $0x190] sm:$0xff] }
 0x164   :  { %1802 = vmatpush.msra.mxu2 %v1490_v1  ;;  %v1714_v1 = vld [vmem:[%s5163_s11 + $0x8f8] sm:$0xff] }
 0x166   :  { %1803 = vmatpush.msra.mxu2 %v1483_v4  ;;  %v1736_v4 = vld [vmem:[%s5163_s11 + $0x9a8] sm:$0xff] }
 0x168   :  { %1804 = vmatpush.msra.mxu2 %v1476_v11  ;;  %v1729_v11 = vld [vmem:[%s5163_s11 + $0x970] sm:$0xff] }
 0x169   :  { %v895_v18 = vpop.f32.mrf.mxu2 }
 0x16a   :  { %v896_v19 = vadd.f32 %v895_v18, %v449_v17  ;;  %v915_v20 = vpop.f32.mrf.mxu0  ;;  %v1637_v17 = vld [vmem:[%s5163_s11 + $0x690] sm:$0xff]  ;;  %1805 = vmatpush.msra.mxu2 %v1469_v16  ;;  %v1722_v16 = vld [vmem:[%s5163_s11 + $0x938] sm:$0xff] }
 0x16b   :  { %v1195_v18 = vld [vmem:[%s5161_s8 + $0x10] sm:$0xff] }
 0x16c   :  { %v916_v21 = vadd.f32 %v915_v20, %v896_v19  ;;  %v1763_v19 = vld [vmem:[%s5163_s11 + $0xa80] sm:$0xff]  ;;  %v1462_v20 = vld [vmem:[%s5163_s11 + $0x118] sm:$0xff] }
 0x16d   :  { %1806 = vmatpush.msra.mxu2 %v1462_v20  ;;  %v1715_v20 = vld [vmem:[%s5163_s11 + $0x900] sm:$0xff] }
 0x171   :  { %v935_v22 = vpop.f32.mrf.mxu1 }
 0x172   :  { %v936_v23 = vadd.f32 %v935_v22, %v916_v21  ;;  %v1630_v21 = vld [vmem:[%s5163_s11 + $0x658] sm:$0xff]  ;;  %v1455_v22 = vld [vmem:[%s5163_s11 + $0xe0] sm:$0xff] }
 0x173   :  { %1807 = vmatpush.msra.mxu2 %v1455_v22  ;;  %v1686_v22 = vld [vmem:[%s5163_s11 + $0x818] sm:$0xff] }
 0x174   :  { %v975_v26 = vpop.f32.mrf.mxu2 }
 0x175   :  { %v955_v24 = vpop.f32.mrf.mxu3 }
 0x176   :  { %v956_v25 = vadd.f32 %v955_v24, %v936_v23  ;;  %v1623_v23 = vld [vmem:[%s5163_s11 + $0x620] sm:$0xff]  ;;  %v1533_v24 = vld [vmem:[%s5163_s11 + $0x350] sm:$0xff] }
 0x178   :  { %v976_v28 = vadd.f32 %v975_v26, %v956_v25  ;;  %v1448_v25 = vld [vmem:[%s5163_s11 + $0xa8] sm:$0xff] }
 0x179   :  { %v995_v29 = vpop.f32.mrf.mxu0  ;;  %v1756_v26 = vld [vmem:[%s5163_s11 + $0xa48] sm:$0xff]  ;;  %1808 = vmatpush.msra.mxu2 %v1448_v25  ;;  %v1679_v25 = vld [vmem:[%s5163_s11 + $0x7e0] sm:$0xff] }
 0x17a   :  { %v996_v2 = vadd.f32 %v995_v29, %v976_v28  ;;  %v1015_v30 = vpop.f32.mrf.mxu1  ;;  %v1616_v28 = vld [vmem:[%s5163_s11 + $0x5e8] sm:$0xff]  ;;  %v1526_v29 = vld [vmem:[%s5163_s11 + $0x318] sm:$0xff] }
 0x17c   :  { %v1016_v31 = vadd.f32 %v1015_v30, %v996_v2  ;;  %v1441_v2 = vld [vmem:[%s5163_s11 + $0x70] sm:$0xff] }
 0x17d   :  { %v1749_v30 = vld [vmem:[%s5163_s11 + $0xa10] sm:$0xff]  ;;  %1809 = vmatpush.msra.mxu2 %v1441_v2  ;;  %v1694_v2 = vld [vmem:[%s5163_s11 + $0x858] sm:$0xff] }
 0x17e   :  { %v1021_v32 = vmax.f32 %v1016_v31, 0.0  ;;  %v1609_v31 = vld [vmem:[%s5163_s11 + $0x5b0] sm:$0xff] }
 0x180   :  { %2378 = vmatmul.msk.f32.vlgmr.msra.gmra.mxu0 %vm454_vm0, %v1021_v32  ;;  %v1519_v32 = vld [vmem:[%s5163_s11 + $0x2e0] sm:$0xff] }
 0x181   :  { %2381 = vmatpush.msk.msra.mxu0 %vm1221_vm3, %v1213_v9  ;;  %v1512_v9 = vld [vmem:[%s5163_s11 + $0x2a8] sm:$0xff] }
 0x183   :  { %1248 = vmatpush.msra.mxu0 %v1209_v12  ;;  %v1505_v12 = vld [vmem:[%s5163_s11 + $0x270] sm:$0xff] }
 0x185   :  { %1249 = vmatpush.msra.mxu0 %v1205_v40  ;;  %v1588_v40 = vld [vmem:[%s5163_s11 + $0x508] sm:$0xff] }
 0x188   :  { %2380 = vmatmul.msk.f32.vlgmr.msrb.gmra.mxu0 %vm1165_vm2, %v51_v27  ;;  %v1434_v27 = vld [vmem:[%s5163_s11 + $0x38] sm:$0xff] }
 0x189   :  { %2385 = vmatpush.msk.msrb.mxu0 %vm1221_vm3, %v1215_v42  ;;  %1810 = vmatpush.msra.mxu2 %v1434_v27  ;;  %v1631_v42 = vld [vmem:[%s5163_s11 + $0x660] sm:$0xff]  ;;  %v1658_v27 = vld [vmem:[%s5163_s11 + $0x738] sm:$0xff] }
 0x18b   :  { %1288 = vmatpush.msrb.mxu0 %v1211_v44  ;;  %1811 = vmatpush.msra.mxu2 %v1427_v35  ;;  %v1624_v44 = vld [vmem:[%s5163_s11 + $0x628] sm:$0xff]  ;;  %v1673_v35 = vld [vmem:[%s5163_s11 + $0x7b0] sm:$0xff] }
 0x18d   :  { %1289 = vmatpush.msrb.mxu0 %v1207_v46  ;;  %v1567_v46 = vld [vmem:[%s5163_s11 + $0x460] sm:$0xff] }
 0x193   :  { %v1096_v50 = vpop.f32.mrf.mxu3 }
 0x194   :  { %v1097_v52 = vadd.f32 %v2404_v49, %v1096_v50  ;;  %v1603_v49 = vld [vmem:[%s5163_s11 + $0x580] sm:$0xff]  ;;  %v1553_v50 = vld [vmem:[%s5163_s11 + $0x3f0] sm:$0xff] }
 0x196   :  { %v1116_v51 = vpop.f32.mrf.mxu1 }
 0x197   :  { %v1117_v55 = vadd.f32 %v1116_v51, %v1097_v52  ;;  %v1596_v51 = vld [vmem:[%s5163_s11 + $0x548] sm:$0xff]  ;;  %v1546_v52 = vld [vmem:[%s5163_s11 + $0x3b8] sm:$0xff] }
 0x1da   :  { %v1136_v54 = vpop.f32.mrf.mxu2 }
 0x1db   :  { %v1137_v57 = vadd.f32 %v1136_v54, %v1117_v55  ;;  %v1757_v54 = vld [vmem:[%s5163_s11 + $0xa50] sm:$0xff]  ;;  %v1582_v55 = vld [vmem:[%s5163_s11 + $0x4d8] sm:$0xff] }
 0x1fd   :  { %v1156_v59 = vpop.f32.mrf.mxu0 }
 0x1fe   :  { %v4008_v60 = vadd.f32 %v1156_v59, %v1137_v57  ;;  %v1575_v57 = vld [vmem:[%s5163_s11 + $0x4a0] sm:$0xff]  ;;  %v1568_v59 = vld [vmem:[%s5163_s11 + $0x468] sm:$0xff] }
 0x200   :  { %2390 = vmatmul.msk.f32.vlgmr.msrb.gmra.mxu2 %vm1217_vm4, %v4008_v60 }
 0x201   :  { %1896 = vmatpush.msrb.mxu2 %v1645_v36  ;;  %v1666_v36 = vld [vmem:[%s5163_s11 + $0x778] sm:$0xff] }
 0x203   :  { %1897 = vmatpush.msrb.mxu2 %v1638_v39  ;;  %v1409_v39 = vld [vmem:[%s5164_s10] sm:$0xf] }
 0x205   :  { %v1190_v5 = vpop.f32.mrf.mxu0  ;;  %1898 = vmatpush.msrb.mxu2 %v1631_v42 }
 0x206   :  { %v1191_v6 = vadd.f32 %v2405_v0, %v1190_v5  ;;  %v1561_v0 = vld [vmem:[%s5163_s11 + $0x430] sm:$0xff]  ;;  %v1470_v5 = vld [vmem:[%s5163_s11 + $0x158] sm:$0xff] }
 0x207   :  { %1899 = vmatpush.msrb.mxu2 %v1624_v44 }
 0x208   :  { %2382 = vmatmul.msk.f32.vlgmr.msra.gmra.mxu0 %vm1217_vm4, %v1191_v6  ;;  %2384 = vmatmul.msk.f32.vlgmr.msra.gmra.mxu3 %vm1217_vm4, %v1191_v6 }
 0x209   :  { %2388 = vmatmul.msk.f32.vlgmr.msra.gmra.mxu1 %vm1217_vm4, %v1191_v6  ;;  %2393 = vmatpush.msk.msra.mxu0 %vm1221_vm3, %v1203_v10  ;;  %v1707_v10 = vld [vmem:[%s5163_s11 + $0x8c0] sm:$0xff] }
 0x20a   :  { %1816 = vmatpush.msra.mxu3 %v1644_v13  ;;  %1870 = vmatpush.msra.mxu1 %v1770_v15  ;;  %v1463_v13 = vld [vmem:[%s5163_s11 + $0x120] sm:$0xff]  ;;  %v1700_v15 = vld [vmem:[%s5163_s11 + $0x888] sm:$0xff] }
 0x20b   :  { %1383 = vmatpush.msra.mxu0 %v1199_v14  ;;  %1900 = vmatpush.msrb.mxu2 %v1617_v8  ;;  %v1547_v14 = vld [vmem:[%s5163_s11 + $0x3c0] sm:$0xff] }
 0x20c   :  { %1817 = vmatpush.msra.mxu3 %v1637_v17  ;;  %1871 = vmatpush.msra.mxu1 %v1763_v19  ;;  %v1456_v17 = vld [vmem:[%s5163_s11 + $0xe8] sm:$0xff]  ;;  %v1693_v19 = vld [vmem:[%s5163_s11 + $0x850] sm:$0xff] }
 0x20d   :  { %1384 = vmatpush.msra.mxu0 %v1195_v18  ;;  %1901 = vmatpush.msrb.mxu2 %v1610_v47  ;;  %v1540_v18 = vld [vmem:[%s5163_s11 + $0x388] sm:$0xff] }
 0x20e   :  { %1818 = vmatpush.msra.mxu3 %v1630_v21  ;;  %v1449_v21 = vld [vmem:[%s5163_s11 + $0xb0] sm:$0xff] }
 0x20f   :  { %1902 = vmatpush.msrb.mxu2 %v1603_v49 }
 0x210   :  { %2386 = vmatmul.msk.f32.vlgmr.msrb.gmra.mxu0 %vm1217_vm4, %v1191_v6  ;;  %2392 = vmatmul.msk.f32.vlgmr.msrb.gmra.mxu3 %vm1217_vm4, %v4008_v60  ;;  %v1554_v6 = vld [vmem:[%s5163_s11 + $0x3f8] sm:$0xff] }
 0x211   :  { %2396 = vmatmul.msk.f32.vlgmr.msrb.gmra.mxu1 %vm1217_vm4, %v4008_v60  ;;  %1819 = vmatpush.msra.mxu3 %v1623_v23  ;;  %v1708_v23 = vld [vmem:[%s5163_s11 + $0x8c8] sm:$0xff] }
 0x212   :  { %1876 = vmatpush.msrb.mxu1 %v1533_v24  ;;  %1836 = vmatpush.msrb.mxu0 %v1756_v26  ;;  %v1442_v24 = vld [vmem:[%s5163_s11 + $0x78] sm:$0xff]  ;;  %v1701_v26 = vld [vmem:[%s5163_s11 + $0x890] sm:$0xff] }
 0x213   :  { %1820 = vmatpush.msra.mxu3 %v1616_v28  ;;  %1903 = vmatpush.msrb.mxu2 %v1596_v51  ;;  %v1435_v28 = vld [vmem:[%s5163_s11 + $0x40] sm:$0xff] }
 0x214   :  { %1877 = vmatpush.msrb.mxu1 %v1526_v29  ;;  %1837 = vmatpush.msrb.mxu0 %v1749_v30  ;;  %v1672_v29 = vld [vmem:[%s5163_s11 + $0x7a8] sm:$0xff] }
 0x215   :  { %1821 = vmatpush.msra.mxu3 %v1609_v31  ;;  %1904 = vmatpush.msrb.mxu2 %v1589_v53  ;;  %v1428_v30 = vld [vmem:[%s5163_s11 + $0x8] sm:$0xff]  ;;  %v1665_v31 = vld [vmem:[%s5163_s11 + $0x770] sm:$0xff] }
 0x216   :  { %1878 = vmatpush.msrb.mxu1 %v1519_v32  ;;  %1838 = vmatpush.msrb.mxu0 %v1742_v33  ;;  %v1687_v32 = vld [vmem:[%s5163_s11 + $0x820] sm:$0xff]  ;;  %v1680_v33 = vld [vmem:[%s5163_s11 + $0x7e8] sm:$0xff] }
 0x217   :  { %1822 = vmatpush.msra.mxu3 %v1602_v34  ;;  %1905 = vmatpush.msrb.mxu2 %v1582_v55  ;;  %v1651_v34 = vld [vmem:[%s5163_s11 + $0x700] sm:$0xff] }
 0x218   :  { %2394 = vmatmul.msk.f32.vlgmr.msra.gmra.mxu0 %vm1217_vm4, %v4008_v60  ;;  %1879 = vmatpush.msrb.mxu1 %v1512_v9  ;;  %v1721_v60 = vld [vmem:[%s5163_s11 + $0x930] sm:$0xff]  ;;  %v1771_v9 = vld [vmem:[%s5163_s11 + $0xac0] sm:$0xff] }
 0x219   :  { %1823 = vmatpush.msra.mxu3 %v1595_v37  ;;  %1839 = vmatpush.msrb.mxu0 %v1735_v38  ;;  %v1764_v37 = vld [vmem:[%s5163_s11 + $0xa88] sm:$0xff] }
 0x21a   :  { %1880 = vmatpush.msrb.mxu1 %v1505_v12  ;;  %1906 = vmatpush.msrb.mxu2 %v1575_v57  ;;  %v1659_v12 = vld [vmem:[%s5163_s11 + $0x740] sm:$0xff]  ;;  %v1652_v38 = vld [vmem:[%s5163_s11 + $0x708] sm:$0xff]  ;;  %v1646_v57 = vld [vmem:[%s5163_s11 + $0x6d8] sm:$0xff] }
 0x21b   :  { %1824 = vmatpush.msra.mxu3 %v1588_v40  ;;  %1840 = vmatpush.msrb.mxu0 %v1728_v41  ;;  %v1411_v40 = vperm.slane %v1409_v39, 0 }
 0x21c   :  { %1881 = vmatpush.msrb.mxu1 %v1498_v61  ;;  %1907 = vmatpush.msrb.mxu2 %v1568_v59  ;;  %v1413_v59 = vperm.slane %v1409_v39, 2 }
 0x21d   :  { %1825 = vmatpush.msra.mxu3 %v1581_v43  ;;  %1841 = vmatpush.msrb.mxu0 %v1721_v60  ;;  %v1723_v60 = vld [vmem:[%s5163_s11 + $0x940] sm:$0xff] }
 0x21e   :  { %1882 = vmatpush.msrb.mxu1 %v1491_v7  ;;  %1908 = vmatpush.msrb.mxu2 %v1561_v0 }
 0x21f   :  { %1826 = vmatpush.msra.mxu3 %v1574_v45  ;;  %1842 = vmatpush.msrb.mxu0 %v1714_v1  ;;  %v1758_v45 = vld [vmem:[%s5163_s11 + $0xa58] sm:$0xff] }
 0x220   :  { %1883 = vmatpush.msrb.mxu1 %v1484_v58  ;;  %1909 = vmatpush.msrb.mxu2 %v1554_v6 }
 0x221   :  { %1827 = vmatpush.msra.mxu3 %v1567_v46  ;;  %1843 = vmatpush.msrb.mxu0 %v1707_v10  ;;  %v1751_v46 = vld [vmem:[%s5163_s11 + $0xa20] sm:$0xff] }
 0x222   :  { %1884 = vmatpush.msrb.mxu1 %v1477_v63  ;;  %1910 = vmatpush.msrb.mxu2 %v1547_v14  ;;  %v1639_v63 = vld [vmem:[%s5163_s11 + $0x6a0] sm:$0xff]  ;;  %v1709_v14 = vld [vmem:[%s5163_s11 + $0x8d0] sm:$0xff] }
 0x223   :  { %1828 = vmatpush.msra.mxu3 %v1560_v48  ;;  %1844 = vmatpush.msrb.mxu0 %v1700_v15  ;;  %v1414_v48 = vperm.slane %v1409_v39, 3 }
 0x224   :  { %1885 = vmatpush.msrb.mxu1 %v1470_v5  ;;  %1911 = vmatpush.msrb.mxu2 %v1540_v18  ;;  %v1632_v5 = vld [vmem:[%s5163_s11 + $0x668] sm:$0xff]  ;;  %v1702_v18 = vld [vmem:[%s5163_s11 + $0x898] sm:$0xff] }
 0x225   :  { %1829 = vmatpush.msra.mxu3 %v1553_v50  ;;  %1845 = vmatpush.msrb.mxu0 %v1693_v19  ;;  %v1744_v50 = vld [vmem:[%s5163_s11 + $0x9e8] sm:$0xff]  ;;  %v1765_v19 = vld [vmem:[%s5163_s11 + $0xa90] sm:$0xff] }
 0x226   :  { %1886 = vmatpush.msrb.mxu1 %v1463_v13  ;;  %v1625_v13 = vld [vmem:[%s5163_s11 + $0x630] sm:$0xff] }
 0x227   :  { %1830 = vmatpush.msra.mxu3 %v1546_v52  ;;  %1846 = vmatpush.msrb.mxu0 %v1686_v22  ;;  %v1737_v52 = vld [vmem:[%s5163_s11 + $0x9b0] sm:$0xff]  ;;  %v1695_v22 = vld [vmem:[%s5163_s11 + $0x860] sm:$0xff] }
 0x228   :  { %1887 = vmatpush.msrb.mxu1 %v1456_v17  ;;  %v1618_v17 = vld [vmem:[%s5163_s11 + $0x5f8] sm:$0xff] }
 0x229   :  { %1831 = vmatpush.msra.mxu3 %v1539_v3  ;;  %1847 = vmatpush.msrb.mxu0 %v1679_v25  ;;  %v1412_v3 = vperm.slane %v1409_v39, 1  ;;  %v1688_v25 = vld [vmem:[%s5163_s11 + $0x828] sm:$0xff]  ;;  %v1569_v39 = vld [vmem:[%s5163_s11 + $0x470] sm:$0xff] }
 0x22a   :  { %1888 = vmatpush.msrb.mxu1 %v1449_v21  ;;  %v1611_v21 = vld [vmem:[%s5163_s11 + $0x5c0] sm:$0xff] }
 0x22b   :  { %1916 = vmatpush.msrb.mxu3 %v1757_v54  ;;  %1848 = vmatpush.msrb.mxu0 %v1672_v29  ;;  %v1730_v54 = vld [vmem:[%s5163_s11 + $0x978] sm:$0xff]  ;;  %v1681_v29 = vld [vmem:[%s5163_s11 + $0x7f0] sm:$0xff] }
 0x22c   :  { %1889 = vmatpush.msrb.mxu1 %v1442_v24  ;;  %v1604_v24 = vld [vmem:[%s5163_s11 + $0x588] sm:$0xff] }
 0x22d   :  { %1917 = vmatpush.msrb.mxu3 %v1750_v56  ;;  %1849 = vmatpush.msrb.mxu0 %v1665_v31  ;;  %v1506_v31 = vld [vmem:[%s5163_s11 + $0x278] sm:$0xff] }
 0x22e   :  { %1890 = vmatpush.msrb.mxu1 %v1435_v28  ;;  %v1597_v28 = vld [vmem:[%s5163_s11 + $0x550] sm:$0xff] }
 0x22f   :  { %1918 = vmatpush.msrb.mxu3 %v1743_v62  ;;  %1850 = vmatpush.msrb.mxu0 %v1658_v27  ;;  %v1528_v27 = vld [vmem:[%s5163_s11 + $0x328] sm:$0xff] }
 0x230   :  { %1891 = vmatpush.msrb.mxu1 %v1428_v30  ;;  %v1590_v30 = vld [vmem:[%s5163_s11 + $0x518] sm:$0xff] }
 0x231   :  { %1919 = vmatpush.msrb.mxu3 %v1736_v4  ;;  %1851 = vmatpush.msrb.mxu0 %v1651_v34  ;;  %v1716_v4 = vld [vmem:[%s5163_s11 + $0x908] sm:$0xff]  ;;  %v1499_v34 = vld [vmem:[%s5163_s11 + $0x240] sm:$0xff] }
 0x233   :  { %1920 = vmatpush.msrb.mxu3 %v1729_v11  ;;  %1950 = vmatpush.msra.mxu0 %v1771_v9  ;;  %v1772_v11 = vld [vmem:[%s5163_s11 + $0xac8] sm:$0xff]  ;;  %v1521_v9 = vld [vmem:[%s5163_s11 + $0x2f0] sm:$0xff] }
 0x235   :  { %1921 = vmatpush.msrb.mxu3 %v1722_v16  ;;  %1951 = vmatpush.msra.mxu0 %v1764_v37  ;;  %v1534_v16 = vld [vmem:[%s5163_s11 + $0x358] sm:$0xff]  ;;  %v1492_v37 = vld [vmem:[%s5163_s11 + $0x208] sm:$0xff] }
 0x237   :  { %1922 = vmatpush.msrb.mxu3 %v1715_v20  ;;  %v1527_v20 = vld [vmem:[%s5163_s11 + $0x320] sm:$0xff] }
 0x239   :  { %1923 = vmatpush.msrb.mxu3 %v1708_v23  ;;  %v1520_v23 = vld [vmem:[%s5163_s11 + $0x2e8] sm:$0xff] }
 0x23b   :  { %1924 = vmatpush.msrb.mxu3 %v1701_v26  ;;  %v1513_v26 = vld [vmem:[%s5163_s11 + $0x2b0] sm:$0xff] }
 0x23d   :  { %1925 = vmatpush.msrb.mxu3 %v1694_v2  ;;  %v1535_v2 = vld [vmem:[%s5163_s11 + $0x360] sm:$0xff] }
 0x23f   :  { %1926 = vmatpush.msrb.mxu3 %v1687_v32  ;;  %v1674_v32 = vld [vmem:[%s5163_s11 + $0x7b8] sm:$0xff] }
 0x241   :  { %1927 = vmatpush.msrb.mxu3 %v1680_v33  ;;  %v1583_v33 = vld [vmem:[%s5163_s11 + $0x4e0] sm:$0xff] }
 0x243   :  { %1928 = vmatpush.msrb.mxu3 %v1673_v35  ;;  %v1667_v35 = vld [vmem:[%s5163_s11 + $0x780] sm:$0xff] }
 0x245   :  { %1929 = vmatpush.msrb.mxu3 %v1666_v36  ;;  %v1576_v36 = vld [vmem:[%s5163_s11 + $0x4a8] sm:$0xff] }
 0x247   :  { %1930 = vmatpush.msrb.mxu3 %v1659_v12  ;;  %v1660_v12 = vld [vmem:[%s5163_s11 + $0x748] sm:$0xff] }
 0x249   :  { %1931 = vmatpush.msrb.mxu3 %v1652_v38  ;;  %v1514_v38 = vld [vmem:[%s5163_s11 + $0x2b8] sm:$0xff] }
 0x283   :  { %v1346_v61 = vpop.f32.mrf.mxu2 }
 0x285   :  { %v1251_v41 = vpop.f32.mrf.mxu0 }
 0x286   :  { %v1347_v42 = vadd.f32 %v1346_v61, %v1251_v41  ;;  %v1311_v43 = vpop.f32.mrf.mxu1  ;;  %v1653_v61 = vld [vmem:[%s5163_s11 + $0x710] sm:$0xff]  ;;  %v1507_v41 = vld [vmem:[%s5163_s11 + $0x280] sm:$0xff] }
 0x288   :  { %v1419_v7 = vadd.f32 %v1411_v40, %v1347_v42  ;;  %v1485_v40 = vld [vmem:[%s5163_s11 + $0x1d0] sm:$0xff] }
 0x289   :  { %v1773_v42 = vld [vmem:[%s5163_s11 + $0xad0] sm:$0xff] }
 0x28a   :  { %v4326_v44 = vmax.f32 %v1419_v7, 0.0  ;;  %v1562_v7 = vld [vmem:[%s5163_s11 + $0x438] sm:$0xff] }
 0x28b   :  { %v1271_v8 = vpop.f32.mrf.mxu3 }
 0x28c   :  { %1812 = vmatmul.f32.vlgmr.msra.gmra.mxu2 %v4326_v44 }
 0x28d   :  { %1996 = vmatpush.msra.mxu2 %v1758_v45  ;;  %v1291_v47 = vpop.f32.mrf.mxu0  ;;  %v1500_v45 = vld [vmem:[%s5163_s11 + $0x248] sm:$0xff] }
 0x28e   :  { %v1406_v49 = vpop.f32.mrf.mxu1 }
 0x28f   :  { %v1407_v51 = vadd.f32 %v1406_v49, %v1311_v43  ;;  %1997 = vmatpush.msra.mxu2 %v1751_v46  ;;  %v1478_v43 = vld [vmem:[%s5163_s11 + $0x198] sm:$0xff]  ;;  %v1471_v46 = vld [vmem:[%s5163_s11 + $0x160] sm:$0xff]  ;;  %v1536_v49 = vld [vmem:[%s5163_s11 + $0x368] sm:$0xff] }
 0x291   :  { %v1422_v53 = vadd.f32 %v1414_v48, %v1407_v51  ;;  %1998 = vmatpush.msra.mxu2 %v1744_v50  ;;  %v1493_v48 = vld [vmem:[%s5163_s11 + $0x210] sm:$0xff]  ;;  %v1464_v50 = vld [vmem:[%s5163_s11 + $0x128] sm:$0xff] }
 0x292   :  { %v1548_v51 = vld [vmem:[%s5163_s11 + $0x3c8] sm:$0xff] }
 0x293   :  { %v4344_v55 = vmax.f32 %v1422_v53, 0.0  ;;  %1999 = vmatpush.msra.mxu2 %v1737_v52  ;;  %v1366_v56 = vpop.f32.mrf.mxu3  ;;  %v1486_v52 = vld [vmem:[%s5163_s11 + $0x1d8] sm:$0xff]  ;;  %v1529_v53 = vld [vmem:[%s5163_s11 + $0x330] sm:$0xff] }
 0x294   :  { %v1367_v58 = vadd.f32 %v1366_v56, %v1271_v8  ;;  %v1766_v8 = vld [vmem:[%s5163_s11 + $0xa98] sm:$0xff]  ;;  %v1479_v56 = vld [vmem:[%s5163_s11 + $0x1a0] sm:$0xff] }
 0x295   :  { %2397 = vmatmul.msk.f32.vlgmr.msra.gmra.mxu1 %vm454_vm0, %v4344_v55  ;;  %2000 = vmatpush.msra.mxu2 %v1730_v54  ;;  %v1386_v62 = vpop.f32.mrf.mxu0  ;;  %v1541_v54 = vld [vmem:[%s5163_s11 + $0x390] sm:$0xff] }
 0x296   :  { %v1420_v0 = vadd.f32 %v1412_v3, %v1367_v58  ;;  %1976 = vmatpush.msra.mxu1 %v1646_v57  ;;  %v1387_v1 = vadd.f32 %v1386_v62, %v1291_v47  ;;  %v1555_v47 = vld [vmem:[%s5163_s11 + $0x400] sm:$0xff]  ;;  %v1457_v3 = vld [vmem:[%s5163_s11 + $0xf0] sm:$0xff]  ;;  %v1522_v57 = vld [vmem:[%s5163_s11 + $0x2f8] sm:$0xff] }
 0x297   :  { %2001 = vmatpush.msra.mxu2 %v1723_v60  ;;  %v1759_v58 = vld [vmem:[%s5163_s11 + $0xa60] sm:$0xff]  ;;  %v1472_v60 = vld [vmem:[%s5163_s11 + $0x168] sm:$0xff] }
 0x298   :  { %v4363_v6 = vmax.f32 %v1420_v0, 0.0  ;;  %v1421_v10 = vadd.f32 %v1413_v59, %v1387_v1  ;;  %1977 = vmatpush.msra.mxu1 %v1639_v63  ;;  %v1450_v59 = vld [vmem:[%s5163_s11 + $0xb8] sm:$0xff]  ;;  %v1515_v62 = vld [vmem:[%s5163_s11 + $0x2c0] sm:$0xff]  ;;  %v1752_v63 = vld [vmem:[%s5163_s11 + $0xa28] sm:$0xff] }
 0x299   :  { %2002 = vmatpush.msra.mxu2 %v1716_v4  ;;  %v1443_v0 = vld [vmem:[%s5163_s11 + $0x80] sm:$0xff]  ;;  %v1465_v1 = vld [vmem:[%s5163_s11 + $0x130] sm:$0xff]  ;;  %v1508_v4 = vld [vmem:[%s5163_s11 + $0x288] sm:$0xff] }
 0x29a   :  { %v4374_v15 = vmax.f32 %v1421_v10, 0.0  ;;  %1978 = vmatpush.msra.mxu1 %v1632_v5  ;;  %1832 = vmatmul.f32.vlgmr.msra.gmra.mxu3 %v4363_v6  ;;  %v1745_v5 = vld [vmem:[%s5163_s11 + $0x9f0] sm:$0xff]  ;;  %v1436_v10 = vld [vmem:[%s5163_s11 + $0x48] sm:$0xff] }
 0x29b   :  { %1912 = vmatmul.f32.vlgmr.msrb.gmra.mxu2 %v4363_v6  ;;  %2030 = vmatpush.msra.mxu3 %v1772_v11  ;;  %v1458_v11 = vld [vmem:[%s5163_s11 + $0xf8] sm:$0xff] }
 0x29c   :  { %1979 = vmatpush.msra.mxu1 %v1625_v13  ;;  %2003 = vmatpush.msra.mxu2 %v1709_v14  ;;  %v1501_v13 = vld [vmem:[%s5163_s11 + $0x250] sm:$0xff]  ;;  %v1738_v14 = vld [vmem:[%s5163_s11 + $0x9b8] sm:$0xff] }
 0x29d   :  { %1852 = vmatmul.f32.vlgmr.msrb.gmra.mxu0 %v4374_v15  ;;  %1892 = vmatmul.f32.vlgmr.msrb.gmra.mxu1 %v4326_v44 }
 0x29e   :  { %1956 = vmatpush.msrb.mxu0 %v1534_v16  ;;  %1980 = vmatpush.msra.mxu1 %v1618_v17  ;;  %v1429_v16 = vld [vmem:[%s5163_s11 + $0x10] sm:$0xff]  ;;  %v1451_v17 = vld [vmem:[%s5163_s11 + $0xc0] sm:$0xff] }
 0x29f   :  { %2004 = vmatpush.msra.mxu2 %v1702_v18  ;;  %2031 = vmatpush.msra.mxu3 %v1765_v19  ;;  %v1494_v18 = vld [vmem:[%s5163_s11 + $0x218] sm:$0xff]  ;;  %v1731_v19 = vld [vmem:[%s5163_s11 + $0x980] sm:$0xff] }
 0x2a0   :  { %1957 = vmatpush.msrb.mxu0 %v1527_v20  ;;  %1981 = vmatpush.msra.mxu1 %v1611_v21  ;;  %v1647_v20 = vld [vmem:[%s5163_s11 + $0x6e0] sm:$0xff]  ;;  %v1444_v21 = vld [vmem:[%s5163_s11 + $0x88] sm:$0xff] }
 0x2a1   :  { %2005 = vmatpush.msra.mxu2 %v1695_v22  ;;  %v1487_v22 = vld [vmem:[%s5163_s11 + $0x1e0] sm:$0xff] }
 0x2a2   :  { %1958 = vmatpush.msrb.mxu0 %v1520_v23  ;;  %1982 = vmatpush.msra.mxu1 %v1604_v24  ;;  %v1724_v23 = vld [vmem:[%s5163_s11 + $0x948] sm:$0xff] }
 0x2a3   :  { %2006 = vmatpush.msra.mxu2 %v1688_v25  ;;  %1932 = vmatmul.f32.vlgmr.msrb.gmra.mxu3 %v4374_v15  ;;  %v1640_v24 = vld [vmem:[%s5163_s11 + $0x6a8] sm:$0xff]  ;;  %v1437_v25 = vld [vmem:[%s5163_s11 + $0x50] sm:$0xff] }
 0x2a4   :  { %1959 = vmatpush.msrb.mxu0 %v1513_v26  ;;  %1983 = vmatpush.msra.mxu1 %v1597_v28  ;;  %v1480_v26 = vld [vmem:[%s5163_s11 + $0x1a8] sm:$0xff]  ;;  %v1717_v28 = vld [vmem:[%s5163_s11 + $0x910] sm:$0xff] }
 0x2a5   :  { %2007 = vmatpush.msra.mxu2 %v1681_v29  ;;  %2036 = vmatpush.msrb.mxu3 %v1535_v2  ;;  %v1633_v29 = vld [vmem:[%s5163_s11 + $0x670] sm:$0xff]  ;;  %v1430_v2 = vld [vmem:[%s5163_s11 + $0x18] sm:$0xff] }
 0x2a6   :  { %2398 = vmatmul.msk.f32.vlgmr.msra.gmra.mxu0 %vm454_vm0, %v4344_v55  ;;  %1984 = vmatpush.msra.mxu1 %v1590_v30  ;;  %v1473_v30 = vld [vmem:[%s5163_s11 + $0x170] sm:$0xff] }
 0x2a7   :  { %1960 = vmatpush.msrb.mxu0 %v1506_v31  ;;  %2008 = vmatpush.msra.mxu2 %v1674_v32  ;;  %v1626_v31 = vld [vmem:[%s5163_s11 + $0x638] sm:$0xff] }
 0x2a8   :  { %2037 = vmatpush.msrb.mxu3 %v1528_v27  ;;  %1985 = vmatpush.msra.mxu1 %v1583_v33  ;;  %v1710_v32 = vld [vmem:[%s5163_s11 + $0x8d8] sm:$0xff]  ;;  %v1648_v27 = vld [vmem:[%s5163_s11 + $0x6e8] sm:$0xff] }
 0x2a9   :  { %1961 = vmatpush.msrb.mxu0 %v1499_v34  ;;  %2009 = vmatpush.msra.mxu2 %v1667_v35  ;;  %v1466_v33 = vld [vmem:[%s5163_s11 + $0x138] sm:$0xff]  ;;  %v1619_v34 = vld [vmem:[%s5163_s11 + $0x600] sm:$0xff] }
 0x2aa   :  { %2038 = vmatpush.msrb.mxu3 %v1521_v9  ;;  %1986 = vmatpush.msra.mxu1 %v1576_v36  ;;  %v1703_v35 = vld [vmem:[%s5163_s11 + $0x8a0] sm:$0xff]  ;;  %v1641_v9 = vld [vmem:[%s5163_s11 + $0x6b0] sm:$0xff] }
 0x2ab   :  { %1962 = vmatpush.msrb.mxu0 %v1492_v37  ;;  %2010 = vmatpush.msra.mxu2 %v1660_v12  ;;  %v1459_v36 = vld [vmem:[%s5163_s11 + $0x100] sm:$0xff]  ;;  %v1612_v37 = vld [vmem:[%s5163_s11 + $0x5c8] sm:$0xff] }
 0x2ac   :  { %2039 = vmatpush.msrb.mxu3 %v1514_v38  ;;  %1987 = vmatpush.msra.mxu1 %v1569_v39  ;;  %v1696_v12 = vld [vmem:[%s5163_s11 + $0x868] sm:$0xff]  ;;  %v1634_v38 = vld [vmem:[%s5163_s11 + $0x678] sm:$0xff] }
 0x2ad   :  { %1963 = vmatpush.msrb.mxu0 %v1485_v40  ;;  %2011 = vmatpush.msra.mxu2 %v1653_v61  ;;  %v1452_v39 = vld [vmem:[%s5163_s11 + $0xc8] sm:$0xff]  ;;  %v1605_v40 = vld [vmem:[%s5163_s11 + $0x590] sm:$0xff] }
 0x2ae   :  { %2399 = vmatmul.msk.f32.vlgmr.msra.gmra.mxu3 %vm454_vm0, %v4344_v55  ;;  %2012 = vmatmul.f32.vlgmr.msra.gmra.mxu2 %v4374_v15  ;;  %v1689_v61 = vld [vmem:[%s5163_s11 + $0x830] sm:$0xff] }
 0x2af   :  { %2040 = vmatpush.msrb.mxu3 %v1507_v41  ;;  %2110 = vmatpush.msrb.mxu2 %v1773_v42  ;;  %v1627_v41 = vld [vmem:[%s5163_s11 + $0x640] sm:$0xff]  ;;  %v1445_v42 = vld [vmem:[%s5163_s11 + $0x90] sm:$0xff] }
 0x2b0   :  { %1964 = vmatpush.msrb.mxu0 %v1478_v43  ;;  %1988 = vmatpush.msra.mxu1 %v1562_v7  ;;  %v1598_v43 = vld [vmem:[%s5163_s11 + $0x558] sm:$0xff] }
 0x2b1   :  { %2041 = vmatpush.msrb.mxu3 %v1500_v45  ;;  %2111 = vmatpush.msrb.mxu2 %v1766_v8  ;;  %v1682_v7 = vld [vmem:[%s5163_s11 + $0x7f8] sm:$0xff]  ;;  %v1620_v45 = vld [vmem:[%s5163_s11 + $0x608] sm:$0xff] }
 0x2b2   :  { %1965 = vmatpush.msrb.mxu0 %v1471_v46  ;;  %1989 = vmatpush.msra.mxu1 %v1555_v47  ;;  %v1438_v8 = vld [vmem:[%s5163_s11 + $0x58] sm:$0xff]  ;;  %v1591_v46 = vld [vmem:[%s5163_s11 + $0x520] sm:$0xff] }
 0x2b3   :  { %2042 = vmatpush.msrb.mxu3 %v1493_v48  ;;  %2116 = vmatpush.msra.mxu2 %v1536_v49  ;;  %v1675_v47 = vld [vmem:[%s5163_s11 + $0x7c0] sm:$0xff]  ;;  %v1613_v48 = vld [vmem:[%s5163_s11 + $0x5d0] sm:$0xff] }
 0x2b4   :  { %1966 = vmatpush.msrb.mxu0 %v1464_v50  ;;  %1990 = vmatpush.msra.mxu1 %v1548_v51  ;;  %v1431_v49 = vld [vmem:[%s5163_s11 + $0x20] sm:$0xff]  ;;  %v1584_v50 = vld [vmem:[%s5163_s11 + $0x4e8] sm:$0xff] }
 0x2b5   :  { %2043 = vmatpush.msrb.mxu3 %v1486_v52  ;;  %2117 = vmatpush.msra.mxu2 %v1529_v53  ;;  %v1668_v51 = vld [vmem:[%s5163_s11 + $0x788] sm:$0xff]  ;;  %v1606_v52 = vld [vmem:[%s5163_s11 + $0x598] sm:$0xff]  ;;  %v1649_v53 = vld [vmem:[%s5163_s11 + $0x6f0] sm:$0xff] }
 0x2b6   :  { %1967 = vmatpush.msrb.mxu0 %v1457_v3  ;;  %1991 = vmatpush.msra.mxu1 %v1541_v54  ;;  %v1577_v3 = vld [vmem:[%s5163_s11 + $0x4b0] sm:$0xff] }
 0x2b7   :  { %2044 = vmatpush.msrb.mxu3 %v1479_v56  ;;  %2118 = vmatpush.msra.mxu2 %v1522_v57  ;;  %v1661_v54 = vld [vmem:[%s5163_s11 + $0x750] sm:$0xff]  ;;  %v1599_v56 = vld [vmem:[%s5163_s11 + $0x560] sm:$0xff]  ;;  %v1642_v57 = vld [vmem:[%s5163_s11 + $0x6b8] sm:$0xff] }
 0x2b8   :  { %1992 = vmatmul.f32.vlgmr.msra.gmra.mxu1 %v4363_v6  ;;  %2400 = vmatmul.msk.f32.vlgmr.msrb.gmra.mxu2 %vm454_vm0, %v4344_v55 }
 0x2b9   :  { %2076 = vmatpush.msrb.mxu1 %v1759_v58  ;;  %1968 = vmatpush.msrb.mxu0 %v1450_v59  ;;  %v1570_v58 = vld [vmem:[%s5163_s11 + $0x478] sm:$0xff] }
 0x2ba   :  { %2045 = vmatpush.msrb.mxu3 %v1472_v60  ;;  %2119 = vmatpush.msra.mxu2 %v1515_v62  ;;  %v1654_v59 = vld [vmem:[%s5163_s11 + $0x718] sm:$0xff]  ;;  %v1592_v60 = vld [vmem:[%s5163_s11 + $0x528] sm:$0xff]  ;;  %v1635_v62 = vld [vmem:[%s5163_s11 + $0x680] sm:$0xff] }
 0x2bb   :  { %2077 = vmatpush.msrb.mxu1 %v1752_v63  ;;  %1969 = vmatpush.msrb.mxu0 %v1443_v0  ;;  %v1774_v63 = vld [vmem:[%s5163_s11 + $0xad8] sm:$0xff]  ;;  %v1563_v0 = vld [vmem:[%s5163_s11 + $0x440] sm:$0xff] }
 0x2bc   :  { %2046 = vmatpush.msrb.mxu3 %v1465_v1  ;;  %2120 = vmatpush.msra.mxu2 %v1508_v4  ;;  %v1585_v1 = vld [vmem:[%s5163_s11 + $0x4f0] sm:$0xff]  ;;  %v1628_v4 = vld [vmem:[%s5163_s11 + $0x648] sm:$0xff] }
 0x2bd   :  { %2078 = vmatpush.msrb.mxu1 %v1745_v5  ;;  %1970 = vmatpush.msrb.mxu0 %v1436_v10  ;;  %v1767_v5 = vld [vmem:[%s5163_s11 + $0xaa0] sm:$0xff]  ;;  %v1556_v10 = vld [vmem:[%s5163_s11 + $0x408] sm:$0xff] }
 0x2be   :  { %2047 = vmatpush.msrb.mxu3 %v1458_v11  ;;  %2121 = vmatpush.msra.mxu2 %v1501_v13  ;;  %v1578_v11 = vld [vmem:[%s5163_s11 + $0x4b8] sm:$0xff]  ;;  %v1537_v13 = vld [vmem:[%s5163_s11 + $0x370] sm:$0xff] }
 0x2bf   :  { %2079 = vmatpush.msrb.mxu1 %v1738_v14  ;;  %1971 = vmatpush.msrb.mxu0 %v1429_v16  ;;  %v1621_v14 = vld [vmem:[%s5163_s11 + $0x610] sm:$0xff] }
 0x2c0   :  { %2048 = vmatpush.msrb.mxu3 %v1451_v17  ;;  %2122 = vmatpush.msra.mxu2 %v1494_v18  ;;  %v1549_v16 = vld [vmem:[%s5163_s11 + $0x3d0] sm:$0xff]  ;;  %v1571_v17 = vld [vmem:[%s5163_s11 + $0x480] sm:$0xff]  ;;  %v1530_v18 = vld [vmem:[%s5163_s11 + $0x338] sm:$0xff] }
 0x2c1   :  { %1972 = vmatmul.f32.vlgmr.msrb.gmra.mxu0 %v4326_v44  ;;  %2080 = vmatpush.msrb.mxu1 %v1731_v19  ;;  %v1614_v19 = vld [vmem:[%s5163_s11 + $0x5d8] sm:$0xff] }
 0x2c2   :  { %2056 = vmatpush.msra.mxu0 %v1647_v20  ;;  %2049 = vmatpush.msrb.mxu3 %v1444_v21  ;;  %v1542_v20 = vld [vmem:[%s5163_s11 + $0x398] sm:$0xff]  ;;  %v1564_v21 = vld [vmem:[%s5163_s11 + $0x448] sm:$0xff] }
 0x2c3   :  { %2123 = vmatpush.msra.mxu2 %v1487_v22  ;;  %2081 = vmatpush.msrb.mxu1 %v1724_v23  ;;  %v1523_v22 = vld [vmem:[%s5163_s11 + $0x300] sm:$0xff] }
 0x2c4   :  { %2057 = vmatpush.msra.mxu0 %v1640_v24  ;;  %2050 = vmatpush.msrb.mxu3 %v1437_v25  ;;  %v1607_v23 = vld [vmem:[%s5163_s11 + $0x5a0] sm:$0xff]  ;;  %v1760_v24 = vld [vmem:[%s5163_s11 + $0xa68] sm:$0xff]  ;;  %v1557_v25 = vld [vmem:[%s5163_s11 + $0x410] sm:$0xff] }
 0x2c5   :  { %2124 = vmatpush.msra.mxu2 %v1480_v26  ;;  %2082 = vmatpush.msrb.mxu1 %v1717_v28  ;;  %v1516_v26 = vld [vmem:[%s5163_s11 + $0x2c8] sm:$0xff] }
 0x2c6   :  { %2058 = vmatpush.msra.mxu0 %v1633_v29  ;;  %2051 = vmatpush.msrb.mxu3 %v1430_v2  ;;  %v1600_v28 = vld [vmem:[%s5163_s11 + $0x568] sm:$0xff]  ;;  %v1753_v29 = vld [vmem:[%s5163_s11 + $0xa30] sm:$0xff]  ;;  %v1550_v2 = vld [vmem:[%s5163_s11 + $0x3d8] sm:$0xff] }
 0x2c7   :  { %2125 = vmatpush.msra.mxu2 %v1473_v30  ;;  %2052 = vmatmul.f32.vlgmr.msrb.gmra.mxu3 %v4326_v44  ;;  %v1509_v30 = vld [vmem:[%s5163_s11 + $0x290] sm:$0xff] }
 0x2c8   :  { %2059 = vmatpush.msra.mxu0 %v1626_v31  ;;  %2083 = vmatpush.msrb.mxu1 %v1710_v32  ;;  %v1593_v31 = vld [vmem:[%s5163_s11 + $0x530] sm:$0xff]  ;;  %v1746_v32 = vld [vmem:[%s5163_s11 + $0x9f8] sm:$0xff] }
 0x2c9   :  { %2136 = vmatpush.msra.mxu3 %v1648_v27  ;;  %2126 = vmatpush.msra.mxu2 %v1466_v33  ;;  %v1543_v27 = vld [vmem:[%s5163_s11 + $0x3a0] sm:$0xff]  ;;  %v1502_v33 = vld [vmem:[%s5163_s11 + $0x258] sm:$0xff] }
 0x2ca   :  { %2060 = vmatpush.msra.mxu0 %v1619_v34  ;;  %2084 = vmatpush.msrb.mxu1 %v1703_v35  ;;  %v1586_v34 = vld [vmem:[%s5163_s11 + $0x4f8] sm:$0xff]  ;;  %v1739_v35 = vld [vmem:[%s5163_s11 + $0x9c0] sm:$0xff] }
 0x2cb   :  { %2137 = vmatpush.msra.mxu3 %v1641_v9  ;;  %2127 = vmatpush.msra.mxu2 %v1459_v36  ;;  %v1761_v9 = vld [vmem:[%s5163_s11 + $0xa70] sm:$0xff]  ;;  %v1495_v36 = vld [vmem:[%s5163_s11 + $0x220] sm:$0xff] }
 0x2cc   :  { %2061 = vmatpush.msra.mxu0 %v1612_v37  ;;  %2085 = vmatpush.msrb.mxu1 %v1696_v12  ;;  %v1579_v37 = vld [vmem:[%s5163_s11 + $0x4c0] sm:$0xff]  ;;  %v1732_v12 = vld [vmem:[%s5163_s11 + $0x988] sm:$0xff] }
 0x2cd   :  { %2138 = vmatpush.msra.mxu3 %v1634_v38  ;;  %2128 = vmatpush.msra.mxu2 %v1452_v39  ;;  %v1754_v38 = vld [vmem:[%s5163_s11 + $0xa38] sm:$0xff]  ;;  %v1488_v39 = vld [vmem:[%s5163_s11 + $0x1e8] sm:$0xff] }
 0x2ce   :  { %2062 = vmatpush.msra.mxu0 %v1605_v40  ;;  %2086 = vmatpush.msrb.mxu1 %v1689_v61  ;;  %v1572_v40 = vld [vmem:[%s5163_s11 + $0x488] sm:$0xff]  ;;  %v1725_v61 = vld [vmem:[%s5163_s11 + $0x950] sm:$0xff] }
 0x2cf   :  { %2139 = vmatpush.msra.mxu3 %v1627_v41  ;;  %2129 = vmatpush.msra.mxu2 %v1445_v42  ;;  %v1747_v41 = vld [vmem:[%s5163_s11 + $0xa00] sm:$0xff]  ;;  %v1481_v42 = vld [vmem:[%s5163_s11 + $0x1b0] sm:$0xff] }
 0x2d0   :  { %2063 = vmatpush.msra.mxu0 %v1598_v43  ;;  %2087 = vmatpush.msrb.mxu1 %v1682_v7  ;;  %v1565_v43 = vld [vmem:[%s5163_s11 + $0x450] sm:$0xff]  ;;  %v1718_v7 = vld [vmem:[%s5163_s11 + $0x918] sm:$0xff] }
 0x2d1   :  { %2140 = vmatpush.msra.mxu3 %v1620_v45  ;;  %2130 = vmatpush.msra.mxu2 %v1438_v8  ;;  %v1740_v45 = vld [vmem:[%s5163_s11 + $0x9c8] sm:$0xff]  ;;  %v1474_v8 = vld [vmem:[%s5163_s11 + $0x178] sm:$0xff] }
 0x2d2   :  { %2064 = vmatpush.msra.mxu0 %v1591_v46  ;;  %2088 = vmatpush.msrb.mxu1 %v1675_v47  ;;  %v1558_v46 = vld [vmem:[%s5163_s11 + $0x418] sm:$0xff]  ;;  %v1711_v47 = vld [vmem:[%s5163_s11 + $0x8e0] sm:$0xff] }
 0x2d3   :  { %2141 = vmatpush.msra.mxu3 %v1613_v48  ;;  %2131 = vmatpush.msra.mxu2 %v1431_v49  ;;  %v1733_v48 = vld [vmem:[%s5163_s11 + $0x990] sm:$0xff]  ;;  %v1467_v49 = vld [vmem:[%s5163_s11 + $0x140] sm:$0xff] }
 0x2d4   :  { %2065 = vmatpush.msra.mxu0 %v1584_v50  ;;  %2089 = vmatpush.msrb.mxu1 %v1668_v51  ;;  %v1551_v50 = vld [vmem:[%s5163_s11 + $0x3e0] sm:$0xff]  ;;  %v1704_v51 = vld [vmem:[%s5163_s11 + $0x8a8] sm:$0xff] }
 0x2d5   :  { %2132 = vmatmul.f32.vlgmr.msra.gmra.mxu2 %v4326_v44  ;;  %2142 = vmatpush.msra.mxu3 %v1606_v52  ;;  %v1726_v52 = vld [vmem:[%s5163_s11 + $0x958] sm:$0xff] }
 0x2d6   :  { %2216 = vmatpush.msrb.mxu2 %v1649_v53  ;;  %2066 = vmatpush.msra.mxu0 %v1577_v3  ;;  %v1460_v53 = vld [vmem:[%s5163_s11 + $0x108] sm:$0xff] }
 0x2d7   :  { %2090 = vmatpush.msrb.mxu1 %v1661_v54  ;;  %2143 = vmatpush.msra.mxu3 %v1599_v56  ;;  %v1544_v3 = vld [vmem:[%s5163_s11 + $0x3a8] sm:$0xff]  ;;  %v1697_v54 = vld [vmem:[%s5163_s11 + $0x870] sm:$0xff]  ;;  %v1719_v56 = vld [vmem:[%s5163_s11 + $0x920] sm:$0xff] }
 0x2d8   :  { %2217 = vmatpush.msrb.mxu2 %v1642_v57  ;;  %2067 = vmatpush.msra.mxu0 %v1570_v58  ;;  %v1762_v57 = vld [vmem:[%s5163_s11 + $0xa78] sm:$0xff]  ;;  %v1453_v58 = vld [vmem:[%s5163_s11 + $0xd0] sm:$0xff] }
 0x2d9   :  { %2091 = vmatpush.msrb.mxu1 %v1654_v59  ;;  %2144 = vmatpush.msra.mxu3 %v1592_v60  ;;  %v1690_v59 = vld [vmem:[%s5163_s11 + $0x838] sm:$0xff]  ;;  %v1712_v60 = vld [vmem:[%s5163_s11 + $0x8e8] sm:$0xff] }
 0x2da   :  { %2218 = vmatpush.msrb.mxu2 %v1635_v62  ;;  %2092 = vmatmul.f32.vlgmr.msrb.gmra.mxu1 %v4374_v15  ;;  %v1755_v62 = vld [vmem:[%s5163_s11 + $0xa40] sm:$0xff] }
 0x2db   :  { %2190 = vmatpush.msra.mxu1 %v1774_v63  ;;  %2068 = vmatpush.msra.mxu0 %v1563_v0  ;;  %v1446_v63 = vld [vmem:[%s5163_s11 + $0x98] sm:$0xff]  ;;  %v1683_v0 = vld [vmem:[%s5163_s11 + $0x800] sm:$0xff] }
 0x2dc   :  { %2145 = vmatpush.msra.mxu3 %v1585_v1  ;;  %2219 = vmatpush.msrb.mxu2 %v1628_v4  ;;  %v1705_v1 = vld [vmem:[%s5163_s11 + $0x8b0] sm:$0xff]  ;;  %v1748_v4 = vld [vmem:[%s5163_s11 + $0xa08] sm:$0xff] }
 0x2dd   :  { %2191 = vmatpush.msra.mxu1 %v1767_v5  ;;  %2069 = vmatpush.msra.mxu0 %v1556_v10  ;;  %v1439_v5 = vld [vmem:[%s5163_s11 + $0x60] sm:$0xff]  ;;  %v1676_v10 = vld [vmem:[%s5163_s11 + $0x7c8] sm:$0xff] }
 0x2de   :  { %2146 = vmatpush.msra.mxu3 %v1578_v11  ;;  %2220 = vmatpush.msrb.mxu2 %v1621_v14  ;;  %v1698_v11 = vld [vmem:[%s5163_s11 + $0x878] sm:$0xff]  ;;  %v1432_v14 = vld [vmem:[%s5163_s11 + $0x28] sm:$0xff] }
 0x2df   :  { %2196 = vmatpush.msrb.mxu1 %v1537_v13  ;;  %2070 = vmatpush.msra.mxu0 %v1549_v16  ;;  %v1741_v13 = vld [vmem:[%s5163_s11 + $0x9d0] sm:$0xff] }
 0x2e0   :  { %2147 = vmatpush.msra.mxu3 %v1571_v17  ;;  %2221 = vmatpush.msrb.mxu2 %v1614_v19  ;;  %v1669_v16 = vld [vmem:[%s5163_s11 + $0x790] sm:$0xff]  ;;  %v1691_v17 = vld [vmem:[%s5163_s11 + $0x840] sm:$0xff]  ;;  %v1734_v19 = vld [vmem:[%s5163_s11 + $0x998] sm:$0xff] }
 0x2e1   :  { %2197 = vmatpush.msrb.mxu1 %v1530_v18  ;;  %2071 = vmatpush.msra.mxu0 %v1542_v20  ;;  %v1650_v18 = vld [vmem:[%s5163_s11 + $0x6f8] sm:$0xff] }
 0x2e2   :  { %2148 = vmatpush.msra.mxu3 %v1564_v21  ;;  %2222 = vmatpush.msrb.mxu2 %v1607_v23  ;;  %v1662_v20 = vld [vmem:[%s5163_s11 + $0x758] sm:$0xff]  ;;  %v1684_v21 = vld [vmem:[%s5163_s11 + $0x808] sm:$0xff]  ;;  %v1727_v23 = vld [vmem:[%s5163_s11 + $0x960] sm:$0xff] }
 0x2e3   :  { %2198 = vmatpush.msrb.mxu1 %v1523_v22  ;;  %2072 = vmatmul.f32.vlgmr.msra.gmra.mxu0 %v4363_v6  ;;  %v1643_v22 = vld [vmem:[%s5163_s11 + $0x6c0] sm:$0xff] }
 0x2e4   :  { %2156 = vmatpush.msrb.mxu0 %v1760_v24  ;;  %2401 = vmatmul.msk.f32.vlgmr.msra.gmra.mxu1 %vm454_vm0, %v4344_v55  ;;  %v1655_v24 = vld [vmem:[%s5163_s11 + $0x720] sm:$0xff] }
 0x2e5   :  { %2149 = vmatpush.msra.mxu3 %v1557_v25  ;;  %2199 = vmatpush.msrb.mxu1 %v1516_v26  ;;  %v1677_v25 = vld [vmem:[%s5163_s11 + $0x7d0] sm:$0xff]  ;;  %v1636_v26 = vld [vmem:[%s5163_s11 + $0x688] sm:$0xff] }
 0x2e6   :  { %2223 = vmatpush.msrb.mxu2 %v1600_v28  ;;  %2157 = vmatpush.msrb.mxu0 %v1753_v29  ;;  %v1720_v28 = vld [vmem:[%s5163_s11 + $0x928] sm:$0xff]  ;;  %v1670_v29 = vld [vmem:[%s5163_s11 + $0x798] sm:$0xff] }
 0x2e7   :  { %2150 = vmatpush.msra.mxu3 %v1550_v2  ;;  %2200 = vmatpush.msrb.mxu1 %v1509_v30  ;;  %v1775_v2 = vld [vmem:[%s5163_s11 + $0xae0] sm:$0xff]  ;;  %v1629_v30 = vld [vmem:[%s5163_s11 + $0x650] sm:$0xff] }
 0x2e8   :  { %2224 = vmatpush.msrb.mxu2 %v1593_v31  ;;  %2158 = vmatpush.msrb.mxu0 %v1746_v32  ;;  %v1713_v31 = vld [vmem:[%s5163_s11 + $0x8f0] sm:$0xff]  ;;  %v1663_v32 = vld [vmem:[%s5163_s11 + $0x760] sm:$0xff] }
 0x2e9   :  { %2151 = vmatpush.msra.mxu3 %v1543_v27  ;;  %2201 = vmatpush.msrb.mxu1 %v1502_v33  ;;  %v1768_v27 = vld [vmem:[%s5163_s11 + $0xaa8] sm:$0xff]  ;;  %v1622_v33 = vld [vmem:[%s5163_s11 + $0x618] sm:$0xff] }
 0x2ea   :  { %2225 = vmatpush.msrb.mxu2 %v1586_v34  ;;  %2152 = vmatmul.f32.vlgmr.msra.gmra.mxu3 %v4363_v6  ;;  %v1538_v34 = vld [vmem:[%s5163_s11 + $0x378] sm:$0xff] }
 0x2eb   :  { %2159 = vmatpush.msrb.mxu0 %v1739_v35  ;;  %2236 = vmatpush.msrb.mxu3 %v1761_v9  ;;  %v1706_v35 = vld [vmem:[%s5163_s11 + $0x8b8] sm:$0xff]  ;;  %v1656_v9 = vld [vmem:[%s5163_s11 + $0x728] sm:$0xff] }
 0x2ec   :  { %2202 = vmatpush.msrb.mxu1 %v1495_v36  ;;  %2226 = vmatpush.msrb.mxu2 %v1579_v37  ;;  %v1615_v36 = vld [vmem:[%s5163_s11 + $0x5e0] sm:$0xff] }
 0x2ed   :  { %2160 = vmatpush.msrb.mxu0 %v1732_v12  ;;  %2237 = vmatpush.msrb.mxu3 %v1754_v38  ;;  %v1531_v37 = vld [vmem:[%s5163_s11 + $0x340] sm:$0xff]  ;;  %v1608_v38 = vld [vmem:[%s5163_s11 + $0x5a8] sm:$0xff] }
 0x2ee   :  { %2203 = vmatpush.msrb.mxu1 %v1488_v39  ;;  %2227 = vmatpush.msrb.mxu2 %v1572_v40  ;;  %v1699_v12 = vld [vmem:[%s5163_s11 + $0x880] sm:$0xff]  ;;  %v1524_v39 = vld [vmem:[%s5163_s11 + $0x308] sm:$0xff] }
 0x2ef   :  { %2161 = vmatpush.msrb.mxu0 %v1725_v61  ;;  %2238 = vmatpush.msrb.mxu3 %v1747_v41  ;;  %v1692_v40 = vld [vmem:[%s5163_s11 + $0x848] sm:$0xff]  ;;  %v1601_v61 = vld [vmem:[%s5163_s11 + $0x570] sm:$0xff] }
 0x2f0   :  { %2204 = vmatpush.msrb.mxu1 %v1481_v42  ;;  %2228 = vmatpush.msrb.mxu2 %v1565_v43  ;;  %v1517_v41 = vld [vmem:[%s5163_s11 + $0x2d0] sm:$0xff]  ;;  %v1594_v43 = vld [vmem:[%s5163_s11 + $0x538] sm:$0xff] }
 0x2f1   :  { %2162 = vmatpush.msrb.mxu0 %v1718_v7  ;;  %2239 = vmatpush.msrb.mxu3 %v1740_v45  ;;  %v1685_v42 = vld [vmem:[%s5163_s11 + $0x810] sm:$0xff]  ;;  %v1776_v7 = vld [vmem:[%s5163_s11 + $0xae8] sm:$0xff]  ;;  %v1510_v45 = vld [vmem:[%s5163_s11 + $0x298] sm:$0xff] }
 0x2f2   :  { %2205 = vmatpush.msrb.mxu1 %v1474_v8  ;;  %2229 = vmatpush.msrb.mxu2 %v1558_v46  ;;  %v1678_v8 = vld [vmem:[%s5163_s11 + $0x7d8] sm:$0xff]  ;;  %v1587_v46 = vld [vmem:[%s5163_s11 + $0x500] sm:$0xff] }
 0x2f3   :  { %2163 = vmatpush.msrb.mxu0 %v1711_v47  ;;  %2240 = vmatpush.msrb.mxu3 %v1733_v48  ;;  %v1769_v47 = vld [vmem:[%s5163_s11 + $0xab0] sm:$0xff]  ;;  %v1503_v48 = vld [vmem:[%s5163_s11 + $0x260] sm:$0xff] }
 0x2f4   :  { %2206 = vmatpush.msrb.mxu1 %v1467_v49  ;;  %2230 = vmatpush.msrb.mxu2 %v1551_v50  ;;  %v1671_v49 = vld [vmem:[%s5163_s11 + $0x7a0] sm:$0xff]  ;;  %v1580_v50 = vld [vmem:[%s5163_s11 + $0x4c8] sm:$0xff] }
 0x2f5   :  { %2164 = vmatpush.msrb.mxu0 %v1704_v51  ;;  %2241 = vmatpush.msrb.mxu3 %v1726_v52  ;;  %v1496_v51 = vld [vmem:[%s5163_s11 + $0x228] sm:$0xff] }
 0x2f6   :  { %2207 = vmatpush.msrb.mxu1 %v1460_v53  ;;  %2231 = vmatpush.msrb.mxu2 %v1544_v3  ;;  %v1664_v52 = vld [vmem:[%s5163_s11 + $0x768] sm:$0xff]  ;;  %v1573_v53 = vld [vmem:[%s5163_s11 + $0x490] sm:$0xff] }
 0x2f7   :  { %2165 = vmatpush.msrb.mxu0 %v1697_v54  ;;  %2232 = vmatmul.f32.vlgmr.msrb.gmra.mxu2 %v4363_v6  ;;  %v1489_v3 = vld [vmem:[%s5163_s11 + $0x1f0] sm:$0xff] }
 0x2f8   :  { %2242 = vmatpush.msrb.mxu3 %v1719_v56  ;;  %2316 = vmatpush.msra.mxu2 %v1762_v57  ;;  %v1657_v54 = vld [vmem:[%s5163_s11 + $0x730] sm:$0xff]  ;;  %v5083_v56 = vld [vmem:[%s5165_s12] sm:$0x7f] }
 0x2f9   :  { %2208 = vmatpush.msrb.mxu1 %v1453_v58  ;;  %2166 = vmatpush.msrb.mxu0 %v1690_v59  ;;  %v1482_v58 = vld [vmem:[%s5163_s11 + $0x1b8] sm:$0xff]  ;;  %v1559_v59 = vld [vmem:[%s5163_s11 + $0x420] sm:$0xff] }
 0x2fa   :  { %2243 = vmatpush.msrb.mxu3 %v1712_v60  ;;  %2317 = vmatpush.msra.mxu2 %v1755_v62  ;;  %v1779_v60 = vperm.slane %v5083_v56, 0  ;;  %v1475_v62 = vld [vmem:[%s5163_s11 + $0x180] sm:$0xff] }
 0x2fb   :  { %2209 = vmatpush.msrb.mxu1 %v1446_v63  ;;  %2167 = vmatpush.msrb.mxu0 %v1683_v0  ;;  %v1552_v0 = vld [vmem:[%s5163_s11 + $0x3e8] sm:$0xff] }
 0x2fc   :  { %2244 = vmatpush.msrb.mxu3 %v1705_v1  ;;  %2318 = vmatpush.msra.mxu2 %v1748_v4  ;;  %v1468_v1 = vld [vmem:[%s5163_s11 + $0x148] sm:$0xff] }
 0x2fd   :  { %2210 = vmatpush.msrb.mxu1 %v1439_v5  ;;  %2168 = vmatpush.msrb.mxu0 %v1676_v10  ;;  %v1461_v5 = vld [vmem:[%s5163_s11 + $0x110] sm:$0xff] }
 0x2fe   :  { %2245 = vmatpush.msrb.mxu3 %v1698_v11  ;;  %2319 = vmatpush.msra.mxu2 %v1741_v13 }
 0x2ff   :  { %2211 = vmatpush.msrb.mxu1 %v1432_v14  ;;  %2169 = vmatpush.msrb.mxu0 %v1669_v16  ;;  %v1454_v14 = vld [vmem:[%s5163_s11 + $0xd8] sm:$0xff]  ;;  %v1780_v16 = vperm.slane %v5083_v56, 1 }
 0x300   :  { %2212 = vmatmul.f32.vlgmr.msrb.gmra.mxu1 %v4326_v44  ;;  %2246 = vmatpush.msrb.mxu3 %v1691_v17 }
 0x301   :  { %2296 = vmatpush.msra.mxu1 %v1650_v18  ;;  %2320 = vmatpush.msra.mxu2 %v1734_v19  ;;  %v1447_v19 = vld [vmem:[%s5163_s11 + $0xa0] sm:$0xff] }
 0x302   :  { %2170 = vmatpush.msrb.mxu0 %v1662_v20  ;;  %2247 = vmatpush.msrb.mxu3 %v1684_v21 }
 0x303   :  { %2297 = vmatpush.msra.mxu1 %v1643_v22  ;;  %2321 = vmatpush.msra.mxu2 %v1727_v23  ;;  %v1440_v22 = vld [vmem:[%s5163_s11 + $0x68] sm:$0xff] }
 0x304   :  { %2171 = vmatpush.msrb.mxu0 %v1655_v24  ;;  %2248 = vmatpush.msrb.mxu3 %v1677_v25 }
 0x305   :  { %2298 = vmatpush.msra.mxu1 %v1636_v26  ;;  %2322 = vmatpush.msra.mxu2 %v1720_v28 }
 0x306   :  { %2172 = vmatmul.f32.vlgmr.msrb.gmra.mxu0 %v4374_v15  ;;  %2249 = vmatpush.msrb.mxu3 %v1670_v29 }
 0x307   :  { %2270 = vmatpush.msra.mxu0 %v1775_v2  ;;  %2299 = vmatpush.msra.mxu1 %v1629_v30 }
 0x308   :  { %2323 = vmatpush.msra.mxu2 %v1713_v31  ;;  %2250 = vmatpush.msrb.mxu3 %v1663_v32  ;;  %v1781_v31 = vperm.slane %v5083_v56, 2 }
 0x309   :  { %2271 = vmatpush.msra.mxu0 %v1768_v27  ;;  %2300 = vmatpush.msra.mxu1 %v1622_v33 }
 0x30a   :  { %2324 = vmatpush.msra.mxu2 %v1706_v35  ;;  %2251 = vmatpush.msrb.mxu3 %v1656_v9 }
 0x30b   :  { %2276 = vmatpush.msrb.mxu0 %v1538_v34  ;;  %2301 = vmatpush.msra.mxu1 %v1615_v36 }
 0x30c   :  { %2325 = vmatpush.msra.mxu2 %v1699_v12  ;;  %2252 = vmatmul.f32.vlgmr.msrb.gmra.mxu3 %v4374_v15  ;;  %v1782_v12 = vperm.slane %v5083_v56, 3 }
 0x30d   :  { %2277 = vmatpush.msrb.mxu0 %v1531_v37  ;;  %2302 = vmatpush.msra.mxu1 %v1608_v38 }
 0x30e   :  { %2326 = vmatpush.msra.mxu2 %v1692_v40  ;;  %2402 = vmatmul.msk.f32.vlgmr.msra.gmra.mxu0 %vm454_vm0, %v4344_v55 }
 0x30f   :  { %2278 = vmatpush.msrb.mxu0 %v1524_v39  ;;  %2303 = vmatpush.msra.mxu1 %v1601_v61  ;;  %v1813_v63 = vpop.f32.mrf.mxu2 }
 0x310   :  { %2327 = vmatpush.msra.mxu2 %v1685_v42  ;;  %2350 = vmatpush.msra.mxu3 %v1776_v7  ;;  %v1814_v4 = vadd.f32 %v1813_v63, %v1779_v60 }
 0x311   :  { %2279 = vmatpush.msrb.mxu0 %v1517_v41  ;;  %2304 = vmatpush.msra.mxu1 %v1594_v43 }
 0x312   :  { %2328 = vmatpush.msra.mxu2 %v1678_v8  ;;  %2351 = vmatpush.msra.mxu3 %v1769_v47  ;;  %v1873_v57 = vpop.f32.mrf.mxu1  ;;  %v1783_v8 = vperm.slane %v5083_v56, 4 }
 0x313   :  { %2280 = vmatpush.msrb.mxu0 %v1510_v45  ;;  %2305 = vmatpush.msra.mxu1 %v1587_v46 }
 0x314   :  { %2329 = vmatpush.msra.mxu2 %v1671_v49  ;;  %2403 = vmatmul.msk.f32.vlgmr.msra.gmra.mxu3 %vm454_vm0, %v4344_v55  ;;  %v1566_v55 = vld [vmem:[%s5163_s11 + $0x458] sm:$0xff] }
 0x315   :  { %2281 = vmatpush.msrb.mxu0 %v1503_v48  ;;  %2306 = vmatpush.msra.mxu1 %v1580_v50 }
 0x316   :  { %2330 = vmatpush.msra.mxu2 %v1664_v52 }
 0x317   :  { %2282 = vmatpush.msrb.mxu0 %v1496_v51  ;;  %2307 = vmatpush.msra.mxu1 %v1573_v53 }
 0x318   :  { %2331 = vmatpush.msra.mxu2 %v1657_v54 }
 0x319   :  { %2283 = vmatpush.msrb.mxu0 %v1489_v3  ;;  %2332 = vmatmul.f32.vlgmr.msra.gmra.mxu2 %v4374_v15  ;;  %v1545_v15 = vld [vmem:[%s5163_s11 + $0x3b0] sm:$0xff]  ;;  %v1784_v3 = vperm.slane %v5083_v56, 5 }
 0x31a   :  { %2308 = vmatpush.msra.mxu1 %v1566_v55  ;;  %v1853_v11 = vpop.f32.mrf.mxu0  ;;  %v1893_v17 = vpop.f32.mrf.mxu1 }
 0x31b   :  { %2284 = vmatpush.msrb.mxu0 %v1482_v58  ;;  %v1894_v23 = vadd.f32 %v1893_v17, %v1780_v16 }
 0x31c   :  { %2309 = vmatpush.msra.mxu1 %v1559_v59 }
 0x31d   :  { %2285 = vmatpush.msrb.mxu0 %v1475_v62  ;;  %v1833_v10 = vpop.f32.mrf.mxu3 }
 0x31e   :  { %2310 = vmatpush.msra.mxu1 %v1552_v0  ;;  %v1834_v13 = vadd.f32 %v1833_v10, %v1814_v4  ;;  %v1913_v21 = vpop.f32.mrf.mxu2  ;;  %v1785_v4 = vperm.slane %v5083_v56, 6 }
 0x31f   :  { %2286 = vmatpush.msrb.mxu0 %v1468_v1  ;;  %v1914_v24 = vadd.f32 %v1913_v21, %v1894_v23 }
 0x320   :  { %2311 = vmatpush.msra.mxu1 %v1545_v15  ;;  %v1854_v18 = vadd.f32 %v1853_v11, %v1834_v13 }
 0x321   :  { %2287 = vmatpush.msrb.mxu0 %v1461_v5  ;;  %2312 = vmatmul.f32.vlgmr.msra.gmra.mxu1 %v4363_v6  ;;  %v1433_v6 = vld [vmem:[%s5163_s11 + $0x30] sm:$0xff] }
 0x322   :  { %v1874_v20 = vadd.f32 %v1873_v57, %v1854_v18 }
 0x323   :  { %2288 = vmatpush.msrb.mxu0 %v1454_v14  ;;  %v1953_v28 = vpop.f32.mrf.mxu0 }
 0x324   :  { %2406 = vtanh.f32 %v1874_v20 }
 0x325   :  { %2289 = vmatpush.msrb.mxu0 %v1447_v19 }
 0x326   :  { %v1933_v25 = vpop.f32.mrf.mxu3 }
 0x327   :  { %2290 = vmatpush.msrb.mxu0 %v1440_v22  ;;  %v1934_v26 = vadd.f32 %v1933_v25, %v1914_v24 }
 0x329   :  { %2291 = vmatpush.msrb.mxu0 %v1433_v6  ;;  %v1954_v29 = vadd.f32 %v1953_v28, %v1934_v26 }
 0x32a   :  { %2292 = vmatmul.f32.vlgmr.msrb.gmra.mxu0 %v4326_v44  ;;  %v2407_v2 = vpop.eup %2406 }
 0x32b   :  { %2363 = vst [vmem:[%s5166_s13] sm:$0xff] %v2407_v2  ;;  %2408 = vtanh.f32 %v1954_v29 }
 0x331   :  { %v2409_v30 = vpop.eup %2408  ;;  %v2013_v35 = vpop.f32.mrf.mxu2 }
 0x332   :  { %2364 = vst [vmem:[%s5166_s13 + $0x8] sm:$0xff] %v2409_v30  ;;  %v2033_v9 = vpop.f32.mrf.mxu3 }
 0x335   :  { %v1993_v33 = vpop.f32.mrf.mxu1 }
 0x33b   :  { %v2113_v43 = vpop.f32.mrf.mxu2 }
 0x33e   :  { %v1973_v32 = vpop.f32.mrf.mxu0 }
 0x33f   :  { %v1974_v27 = vadd.f32 %v1973_v32, %v1781_v31 }
 0x341   :  { %v1994_v34 = vadd.f32 %v1993_v33, %v1974_v27 }
 0x343   :  { %v2014_v44 = vadd.f32 %v2013_v35, %v1994_v34 }
 0x345   :  { %v2034_v36 = vadd.f32 %v2033_v9, %v2014_v44 }
 0x347   :  { %2410 = vtanh.f32 %v2034_v36 }
 0x34a   :  { %v2053_v38 = vpop.f32.mrf.mxu3 }
 0x34b   :  { %v2054_v39 = vadd.f32 %v2053_v38, %v1782_v12 }
 0x34d   :  { %v2411_v37 = vpop.eup %2410 }
 0x34e   :  { %2365 = vst [vmem:[%s5166_s13 + $0x10] sm:$0xff] %v2411_v37 }
 0x357   :  { %v2093_v41 = vpop.f32.mrf.mxu1 }
 0x358   :  { %v2133_v46 = vpop.f32.mrf.mxu2 }
 0x359   :  { %v2134_v48 = vadd.f32 %v2133_v46, %v1783_v8 }
 0x360   :  { %v2073_v40 = vpop.f32.mrf.mxu0 }
 0x361   :  { %v2074_v61 = vadd.f32 %v2073_v40, %v2054_v39  ;;  %v2193_v49 = vpop.f32.mrf.mxu1 }
 0x363   :  { %v2094_v42 = vadd.f32 %v2093_v41, %v2074_v61 }
 0x365   :  { %v2114_v7 = vadd.f32 %v2113_v43, %v2094_v42 }
 0x367   :  { %2412 = vtanh.f32 %v2114_v7 }
 0x36d   :  { %v2413_v45 = vpop.eup %2412  ;;  %v2153_v47 = vpop.f32.mrf.mxu3 }
 0x36e   :  { %2366 = vst [vmem:[%s5166_s13 + $0x18] sm:$0xff] %v2413_v45  ;;  %v2154_v50 = vadd.f32 %v2153_v47, %v2134_v48 }
 0x37a   :  { %v2233_v58 = vpop.f32.mrf.mxu2 }
 0x37d   :  { %v2213_v54 = vpop.f32.mrf.mxu1 }
 0x37e   :  { %v2214_v55 = vadd.f32 %v2213_v54, %v1784_v3 }
 0x380   :  { %v2234_v59 = vadd.f32 %v2233_v58, %v2214_v55 }
 0x383   :  { %v2173_v51 = vpop.f32.mrf.mxu0 }
 0x384   :  { %v2174_v52 = vadd.f32 %v2173_v51, %v2154_v50 }
 0x386   :  { %v2194_v53 = vadd.f32 %v2193_v49, %v2174_v52 }
 0x388   :  { %2414 = vtanh.f32 %v2194_v53 }
 0x38b   :  { %v2273_v63 = vpop.f32.mrf.mxu0 }
 0x38e   :  { %v2415_v57 = vpop.eup %2414 }
 0x38f   :  { %2367 = vst [vmem:[%s5166_s13 + $0x20] sm:$0xff] %v2415_v57  ;;  %v2253_v60 = vpop.f32.mrf.mxu3 }
 0x390   :  { %v2254_v62 = vadd.f32 %v2253_v60, %v2234_v59 }
 0x392   :  { %v2274_v0 = vadd.f32 %v2273_v63, %v2254_v62 }
 0x394   :  { %2416 = vtanh.f32 %v2274_v0 }
 0x397   :  { %v2353_v16 = vpop.f32.mrf.mxu3 }
 0x39a   :  { %v2417_v1 = vpop.eup %2416 }
 0x39b   :  { %2368 = vst [vmem:[%s5166_s13 + $0x28] sm:$0xff] %v2417_v1 }
 0x39c   :  { %v2333_v13 = vpop.f32.mrf.mxu2 }
 0x39e   :  { %v2313_v10 = vpop.f32.mrf.mxu1 }
 0x3a7   :  { %v2293_v15 = vpop.f32.mrf.mxu0 }
 0x3a8   :  { %v2294_v5 = vadd.f32 %v2293_v15, %v1785_v4 }
 0x3aa   :  { %v2314_v11 = vadd.f32 %v2313_v10, %v2294_v5 }
 0x3ac   :  { %v2334_v14 = vadd.f32 %v2333_v13, %v2314_v11 }
 0x3ae   :  { %v2354_v17 = vadd.f32 %v2353_v16, %v2334_v14 }
 0x3b0   :  { %2418 = vtanh.f32 %v2354_v17 }
 0x3b6   :  { %v2419_v18 = vpop.eup %2418 }
 0x3b7   :  { %2369 = vst.msk [vmem:[%s5166_s13 + $0x30] sm:$0xff] %vm454_vm0, %v2419_v18 }

</bundles_post_ra>
